<compile_context>
chip_gen: v7x
topology: tpu7x:2x2x1
jax: 0.10.0
libtpu: 0.0.40
codegen_flags: <defaults>
</compile_context>

<pallas_src>
import math
from functools import partial

import jax
import jax.numpy as jnp
from jax.experimental import pallas as pl
from jax.experimental.pallas import tpu as pltpu


def _layer_norm(x, gamma, beta, eps=1e-5):
    mean = jnp.mean(x, axis=-1, keepdims=True)
    var = jnp.mean((x - mean) ** 2, axis=-1, keepdims=True)
    return (x - mean) * jax.lax.rsqrt(var + eps) * gamma + beta


# ----------------------------- Pallas kernel --------------------------------
def _encoder_layer_kernel(x_ref, mask_ref,
                          wq_ref, bq_ref, wk_ref, bk_ref, wv_ref, bv_ref,
                          wo_ref, bo_ref, g1_ref, be1_ref,
                          w1_ref, b1_ref, w2_ref, b2_ref, g2_ref, be2_ref,
                          o_ref, *, n_head, tq):
    f32 = jnp.float32
    cdt = x_ref.dtype                      # compute (storage) dtype, bf16
    x = x_ref[0]                           # (S, D) full-sequence K/V source
    S, D = x.shape
    hd = D // n_head
    scale = 1.0 / math.sqrt(hd)

    qi = pl.program_id(1)
    q_start = pl.multiple_of(qi * tq, tq)
    xq = x_ref[0, pl.ds(q_start, tq), :]   # (tq, D) query / residual rows

    # additive attention bias, built once per grid step: 0 attend, -1e9 masked
    bias = (mask_ref[0].astype(f32) - 1.0) * 1e9          # (1, S) -> (h,tq,S)

    # ---- QKV projections: bf16 x bf16 on the MXU, f32 accumulation ----
    q = jnp.dot(xq, wq_ref[...], preferred_element_type=f32) + bq_ref[...].astype(f32)
    k = jnp.dot(x, wk_ref[...], preferred_element_type=f32) + bk_ref[...].astype(f32)
    v = jnp.dot(x, wv_ref[...], preferred_element_type=f32) + bv_ref[...].astype(f32)
    q = q * scale                          # fold 1/sqrt(hd) into (tq,D), not (S,S)

    # Heads as a leading batch dim so both attention matmuls are single batched
    # MXU contractions (instead of n_head tiny matmuls + per-head concatenate).
    qh = jnp.stack([q[:, i * hd:(i + 1) * hd] for i in range(n_head)], axis=0).astype(cdt)
    kh = jnp.stack([k[:, i * hd:(i + 1) * hd] for i in range(n_head)], axis=0).astype(cdt)
    vh = jnp.stack([v[:, i * hd:(i + 1) * hd] for i in range(n_head)], axis=0).astype(cdt)

    s = jnp.einsum("hqd,hkd->hqk", qh, kh, preferred_element_type=f32) + bias
    s = s - jnp.max(s, axis=-1, keepdims=True)
    p = jnp.exp(s)
    p = p * pl.reciprocal(jnp.sum(p, axis=-1, keepdims=True), approx=True)
    ctx = jnp.einsum("hqk,hkd->hqd", p.astype(cdt), vh,
                     preferred_element_type=f32)           # (h, tq, hd) f32
    attn = jnp.concatenate([ctx[i] for i in range(n_head)], axis=-1)  # (tq, D)

    proj = jnp.dot(attn.astype(cdt), wo_ref[...],
                   preferred_element_type=f32) + bo_ref[...].astype(f32)
    x1 = _layer_norm(xq.astype(f32) + proj,
                     g1_ref[...].astype(f32), be1_ref[...].astype(f32))

    # ---- position-wise feed-forward ----
    hmid = jnp.dot(x1.astype(cdt), w1_ref[...],
                   preferred_element_type=f32) + b1_ref[...].astype(f32)
    hmid = jnp.maximum(hmid, 0.0)
    ff = jnp.dot(hmid.astype(cdt), w2_ref[...],
                 preferred_element_type=f32) + b2_ref[...].astype(f32)
    y = _layer_norm(x1 + ff, g2_ref[...].astype(f32), be2_ref[...].astype(f32))

    o_ref[0] = y.astype(o_ref.dtype)


# ----------------------------- pallas_call wrapper ---------------------------
_PARAM_ORDER = ("wq", "bq", "wk", "bk", "wv", "bv", "wo", "bo",
                "ln1_g", "ln1_b", "w1", "b1", "w2", "b2", "ln2_g", "ln2_b")

_SINGLE_BUFFER_WEIGHTS = None   # resolved on first call (Buffered(1) support)


def _layer_pallas_call(B, S, D, F, n_head, tq, act_dtype, weight_bytes,
                       single_buffer_weights):
    n_qt = S // tq

    def wspec(shape):
        nd = len(shape)
        idx = lambda b, q, _n=nd: (0,) * _n
        if single_buffer_weights:
            # constant index_map across the grid -> double buffering buys
            # nothing; single-buffer to halve weight VMEM residency.
            return pl.BlockSpec(shape, idx, pipeline_mode=pl.Buffered(1))
        return pl.BlockSpec(shape, idx)

    in_specs = [
        pl.BlockSpec((1, S, D), lambda b, q: (b, 0, 0)),   # x (full sequence)
        pl.BlockSpec((1, 1, S), lambda b, q: (b, 0, 0)),   # mask
        wspec((D, D)), wspec((1, D)),                      # Wq, bq
        wspec((D, D)), wspec((1, D)),                      # Wk, bk
        wspec((D, D)), wspec((1, D)),                      # Wv, bv
        wspec((D, D)), wspec((1, D)),                      # Wo, bo
        wspec((1, D)), wspec((1, D)),                      # LN1 gamma, beta
        wspec((D, F)), wspec((1, F)),                      # W1, b1
        wspec((F, D)), wspec((1, D)),                      # W2, b2
        wspec((1, D)), wspec((1, D)),                      # LN2 gamma, beta
    ]

    itemsize = jnp.dtype(act_dtype).itemsize
    # Advisory cost estimate (per layer call) so XLA can overlap adjacent calls.
    steps = B * n_qt
    flops_step = 2 * (tq * D * D        # q projection
                      + 2 * S * D * D   # k, v projections (per q-tile)
                      + 2 * tq * S * D  # scores + context
                      + tq * D * D      # output projection
                      + 2 * tq * D * F)  # FFN
    cost = pl.CostEstimate(
        flops=int(flops_step * steps),
        transcendentals=int((n_head * tq * S + n_head * tq) * steps),
        bytes_accessed=int(weight_bytes + 2 * B * S * D * itemsize + B * S * 4),
    )

    # Explicit VMEM budget: weights 1x (or 2x), activation blocks 2x, f32 temps.
    temps_f32 = 4 * (3 * S * D + 4 * tq * D + 2 * n_head * tq * S + tq * F)
    vmem_est = (weight_bytes * (1 if single_buffer_weights else 2)
                + 2 * (S * D + tq * D + S) * itemsize + temps_f32)
    vmem_limit = int(min(96 * 2 ** 20, max(32 * 2 ** 20, 2 * vmem_est)))

    return pl.pallas_call(
        partial(_encoder_layer_kernel, n_head=n_head, tq=tq),
        out_shape=jax.ShapeDtypeStruct((B, S, D), act_dtype),
        grid_spec=pltpu.PrefetchScalarGridSpec(
            num_scalar_prefetch=0,
            grid=(B, n_qt),
            in_specs=in_specs,
            out_specs=pl.BlockSpec((1, tq, D), lambda b, q: (b, q, 0)),
        ),
        compiler_params=pltpu.CompilerParams(
            dimension_semantics=("parallel", "parallel"),
            vmem_limit_bytes=vmem_limit,
        ),
        cost_estimate=cost,
    )


def encoder_layer_pallas(x, mask, p, n_head, tq):
    global _SINGLE_BUFFER_WEIGHTS
    B, S, D = x.shape
    F = p["w1"].shape[1]
    assert S % tq == 0 and D % n_head == 0
    operands = [p[name] for name in _PARAM_ORDER]
    weight_bytes = sum(int(v.size) * v.dtype.itemsize for v in operands)

    attempts = ([True, False] if _SINGLE_BUFFER_WEIGHTS is None
                else [_SINGLE_BUFFER_WEIGHTS])
    err = None
    for single in attempts:
        try:
            call = _layer_pallas_call(B, S, D, F, n_head, tq, x.dtype,
                                      weight_bytes, single)
            out = call(x, mask, *operands)
            _SINGLE_BUFFER_WEIGHTS = single
            return out
        except Exception as e:   # fallback if Buffered(1) unsupported by jax
            err = e
    raise err


# ----------------------------- model glue ------------------------------------
def transformer_embeddings(token_ids, tok_table, pos_table, d_model):
    # Gather stays in plain-JAX glue; dropout is identity in eval mode.
    S = token_ids.shape[1]
    x = jnp.take(tok_table, token_ids, axis=0) * math.sqrt(d_model)
    return x + pos_table[:S][None, :, :]


def _choose_q_tile(S, target=256):
    if S % 8 != 0:
        return S            # whole-sequence block (block must equal full dim)
    for tq in (target, 128, 64, 32, 16, 8):
        if tq <= S and S % tq == 0:
            return tq
    return S


def encoder_forward(token_ids, source_mask, emb_params, layer_params,
                    d_model, n_head, compute_dtype=jnp.bfloat16, q_tile=None):
    x = transformer_embeddings(token_ids, emb_params["tok"], emb_params["pos"],
                               d_model).astype(compute_dtype)
    B, S, D = x.shape
    mask = source_mask.reshape(B, 1, source_mask.shape[-1]).astype(jnp.float32)
    tq = _choose_q_tile(S) if q_tile is None else q_tile
    # TODO(synk): cross-call (P10) prefetch of layer l+1 weights via a
    # semaphore-output pallas_call to hide the per-layer cold weight DMA.
    for p in layer_params:
        p_c = {k: v.astype(compute_dtype) for k, v in p.items()}
        x = encoder_layer_pallas(x, mask, p_c, n_head, tq)
    return x


# -------------------- pure-JAX reference (for sanity check) ------------------
def _ref_layer(x, mask, p, n_head):
    B, S, D = x.shape
    hd = D // n_head
    bias = (mask.reshape(B, 1, 1, S) - 1.0) * 1e9
    q = x @ p["wq"] + p["bq"]
    k = x @ p["wk"] + p["bk"]
    v = x @ p["wv"] + p["bv"]
    q = q.reshape(B, S, n_head, hd).transpose(0, 2, 1, 3)
    k = k.reshape(B, S, n_head, hd).transpose(0, 2, 1, 3)
    v = v.reshape(B, S, n_head, hd).transpose(0, 2, 1, 3)
    s = jnp.einsum("bhqd,bhkd->bhqk", q, k) / math.sqrt(hd) + bias
    pw = jax.nn.softmax(s, axis=-1)
    o = jnp.einsum("bhqk,bhkd->bhqd", pw, v).transpose(0, 2, 1, 3).reshape(B, S, D)
    x1 = _layer_norm(x + (o @ p["wo"] + p["bo"]), p["ln1_g"], p["ln1_b"])
    ff = jnp.maximum(x1 @ p["w1"] + p["b1"], 0.0) @ p["w2"] + p["b2"]
    return _layer_norm(x1 + ff, p["ln2_g"], p["ln2_b"])


def _ref_forward(token_ids, source_mask, emb_params, layer_params, d_model, n_head):
    x = transformer_embeddings(token_ids, emb_params["tok"], emb_params["pos"], d_model)
    # match the kernel's bf16 input rounding so the comparison isolates the
    # (small) intermediate-precision differences
    x = x.astype(jnp.bfloat16).astype(jnp.float32)
    mask = source_mask.reshape(source_mask.shape[0], source_mask.shape[-1]).astype(jnp.float32)
    for p in layer_params:
        x = _ref_layer(x, mask, p, n_head)
    return x


# -------------------- parameter init -----------------------------------------
def init_params(key, vocab, max_length, d_model, ff_dim, n_layers):
    keys = jax.random.split(key, 2 + 6 * n_layers)
    emb = {
        "tok": 0.02 * jax.random.normal(keys[0], (vocab, d_model), jnp.float32),
        "pos": 0.02 * jax.random.normal(keys[1], (max_length, d_model), jnp.float32),
    }
    layers = []
    for l in range(n_layers):
        k = keys[2 + 6 * l: 2 + 6 * (l + 1)]
        layers.append({
            "wq": 0.02 * jax.random.normal(k[0], (d_model, d_model), jnp.float32),
            "bq": jnp.zeros((1, d_model), jnp.float32),
            "wk": 0.02 * jax.random.normal(k[1], (d_model, d_model), jnp.float32),
            "bk": jnp.zeros((1, d_model), jnp.float32),
            "wv": 0.02 * jax.random.normal(k[2], (d_model, d_model), jnp.float32),
            "bv": jnp.zeros((1, d_model), jnp.float32),
            "wo": 0.02 * jax.random.normal(k[3], (d_model, d_model), jnp.float32),
            "bo": jnp.zeros((1, d_model), jnp.float32),
            "ln1_g": jnp.ones((1, d_model), jnp.float32),
            "ln1_b": jnp.zeros((1, d_model), jnp.float32),
            "w1": 0.02 * jax.random.normal(k[4], (d_model, ff_dim), jnp.float32),
            "b1": jnp.zeros((1, ff_dim), jnp.float32),
            "w2": 0.02 * jax.random.normal(k[5], (ff_dim, d_model), jnp.float32),
            "b2": jnp.zeros((1, d_model), jnp.float32),
            "ln2_g": jnp.ones((1, d_model), jnp.float32),
            "ln2_b": jnp.zeros((1, d_model), jnp.float32),
        })
    return emb, layers


if __name__ == "__main__":
    # Small but lane-dense config (D, F multiples of 128 per perf review):
    # enc_vocab_size=50, d_model=128, ff_dim=256, max_length=16, n_head=4,
    # n_layers=2, dropout=0.0 (eval mode).
    VOCAB, D_MODEL, FF_DIM, MAX_LEN, N_HEAD, N_LAYERS = 50, 128, 256, 16, 4, 2
    B, S = 2, 16

    key = jax.random.PRNGKey(0)
    k_tok, k_params = jax.random.split(key)
    token_ids = jax.random.randint(k_tok, (B, S), 0, VOCAB)
    # source_mask: 1 = attend, 0 = padding (last three positions of batch 1).
    source_mask = jnp.ones((B, S), jnp.float32).at[1, -3:].set(0.0)

    emb_params, layer_params = init_params(k_params, VOCAB, MAX_LEN,
                                           D_MODEL, FF_DIM, N_LAYERS)

    # q_tile=8 so the toy run exercises the (batch, query-tile) grid (2 tiles).
    out = encoder_forward(token_ids, source_mask, emb_params, layer_params,
                          D_MODEL, N_HEAD, q_tile=8)
    out = jax.block_until_ready(out)
    assert out.shape == (B, S, D_MODEL)

    # f32 reference with bf16-rounded weights (kernel stores weights in bf16).
    layers_rounded = [{k: v.astype(jnp.bfloat16).astype(jnp.float32)
                       for k, v in p.items()} for p in layer_params]
    ref = _ref_forward(token_ids, source_mask, emb_params, layers_rounded,
                       D_MODEL, N_HEAD)
    max_err = jnp.max(jnp.abs(out.astype(jnp.float32) - ref))
    assert jnp.allclose(out.astype(jnp.float32), ref, rtol=5e-2, atol=5e-2), (
        f"Pallas output mismatch vs JAX reference (max abs err {max_err})")

    print("KERNEL_OK")
</pallas_src>

<mosaic_0001>
module attributes {stable_mosaic.version = 11 : i64} {
  func.func @_encoder_layer_kernel(%arg0: i32, %arg1: i32, %arg2: memref<1x16x128xbf16, #tpu.memory_space<vmem>>, %arg3: memref<1x1x16xf32, #tpu.memory_space<vmem>>, %arg4: memref<128x128xbf16, #tpu.memory_space<vmem>>, %arg5: memref<1x128xbf16, #tpu.memory_space<vmem>>, %arg6: memref<128x128xbf16, #tpu.memory_space<vmem>>, %arg7: memref<1x128xbf16, #tpu.memory_space<vmem>>, %arg8: memref<128x128xbf16, #tpu.memory_space<vmem>>, %arg9: memref<1x128xbf16, #tpu.memory_space<vmem>>, %arg10: memref<128x128xbf16, #tpu.memory_space<vmem>>, %arg11: memref<1x128xbf16, #tpu.memory_space<vmem>>, %arg12: memref<1x128xbf16, #tpu.memory_space<vmem>>, %arg13: memref<1x128xbf16, #tpu.memory_space<vmem>>, %arg14: memref<128x256xbf16, #tpu.memory_space<vmem>>, %arg15: memref<1x256xbf16, #tpu.memory_space<vmem>>, %arg16: memref<256x128xbf16, #tpu.memory_space<vmem>>, %arg17: memref<1x128xbf16, #tpu.memory_space<vmem>>, %arg18: memref<1x128xbf16, #tpu.memory_space<vmem>>, %arg19: memref<1x128xbf16, #tpu.memory_space<vmem>>, %arg20: memref<1x8x128xbf16, #tpu.memory_space<vmem>>) attributes {dimension_semantics = [#tpu.dimension_semantics<parallel>, #tpu.dimension_semantics<parallel>], iteration_bounds = array<i64: 2, 2>, scalar_prefetch = 0 : i64, scratch_operands = 0 : i64, tpu.core_type = #tpu.core_type<tc>, window_params = [{transform_indices = @transform_0, window_bounds = array<i64: 1, 16, 128>}, {transform_indices = @transform_1, window_bounds = array<i64: 1, 1, 16>}, {pipeline_mode = #tpu.pipeline_mode<synchronous>, transform_indices = @transform_2, window_bounds = array<i64: 128, 128>}, {pipeline_mode = #tpu.pipeline_mode<synchronous>, transform_indices = @transform_3, window_bounds = array<i64: 1, 128>}, {pipeline_mode = #tpu.pipeline_mode<synchronous>, transform_indices = @transform_4, window_bounds = array<i64: 128, 128>}, {pipeline_mode = #tpu.pipeline_mode<synchronous>, transform_indices = @transform_5, window_bounds = array<i64: 1, 128>}, {pipeline_mode = #tpu.pipeline_mode<synchronous>, transform_indices = @transform_6, window_bounds = array<i64: 128, 128>}, {pipeline_mode = #tpu.pipeline_mode<synchronous>, transform_indices = @transform_7, window_bounds = array<i64: 1, 128>}, {pipeline_mode = #tpu.pipeline_mode<synchronous>, transform_indices = @transform_8, window_bounds = array<i64: 128, 128>}, {pipeline_mode = #tpu.pipeline_mode<synchronous>, transform_indices = @transform_9, window_bounds = array<i64: 1, 128>}, {pipeline_mode = #tpu.pipeline_mode<synchronous>, transform_indices = @transform_10, window_bounds = array<i64: 1, 128>}, {pipeline_mode = #tpu.pipeline_mode<synchronous>, transform_indices = @transform_11, window_bounds = array<i64: 1, 128>}, {pipeline_mode = #tpu.pipeline_mode<synchronous>, transform_indices = @transform_12, window_bounds = array<i64: 128, 256>}, {pipeline_mode = #tpu.pipeline_mode<synchronous>, transform_indices = @transform_13, window_bounds = array<i64: 1, 256>}, {pipeline_mode = #tpu.pipeline_mode<synchronous>, transform_indices = @transform_14, window_bounds = array<i64: 256, 128>}, {pipeline_mode = #tpu.pipeline_mode<synchronous>, transform_indices = @transform_15, window_bounds = array<i64: 1, 128>}, {pipeline_mode = #tpu.pipeline_mode<synchronous>, transform_indices = @transform_16, window_bounds = array<i64: 1, 128>}, {pipeline_mode = #tpu.pipeline_mode<synchronous>, transform_indices = @transform_17, window_bounds = array<i64: 1, 128>}, {transform_indices = @transform_18, window_bounds = array<i64: 1, 8, 128>}]} {
    %c0 = arith.constant 0 : index
    %c0_0 = arith.constant 0 : index
    %c0_1 = arith.constant 0 : index
    %0 = vector.load %arg2[%c0, %c0_0, %c0_1] : memref<1x16x128xbf16, #tpu.memory_space<vmem>>, vector<1x16x128xbf16>
    %1 = vector.shape_cast %0 : vector<1x16x128xbf16> to vector<16x128xbf16>
    %c8_i32 = arith.constant 8 : i32
    %2 = arith.muli %arg1, %c8_i32 : i32
    %3 = tpu.assume_multiple %2, 8 : i32
    %c0_2 = arith.constant 0 : index
    %4 = arith.index_cast %3 : i32 to index
    %c0_3 = arith.constant 0 : index
    %5 = vector.load %arg2[%c0_2, %4, %c0_3] : memref<1x16x128xbf16, #tpu.memory_space<vmem>>, vector<1x8x128xbf16>
    %6 = vector.shape_cast %5 : vector<1x8x128xbf16> to vector<8x128xbf16>
    %c0_4 = arith.constant 0 : index
    %c0_5 = arith.constant 0 : index
    %c0_6 = arith.constant 0 : index
    %7 = vector.load %arg3[%c0_4, %c0_5, %c0_6] : memref<1x1x16xf32, #tpu.memory_space<vmem>>, vector<1x1x16xf32>
    %8 = vector.shape_cast %7 : vector<1x1x16xf32> to vector<1x16xf32>
    %cst = arith.constant 1.000000e+00 : f32
    %9 = vector.broadcast %cst : f32 to vector<1x16xf32>
    %10 = arith.subf %8, %9 : vector<1x16xf32>
    %cst_7 = arith.constant 1.000000e+09 : f32
    %11 = vector.broadcast %cst_7 : f32 to vector<1x16xf32>
    %12 = arith.mulf %10, %11 : vector<1x16xf32>
    %c0_8 = arith.constant 0 : index
    %c0_9 = arith.constant 0 : index
    %13 = vector.load %arg4[%c0_8, %c0_9] : memref<128x128xbf16, #tpu.memory_space<vmem>>, vector<128x128xbf16>
    %cst_10 = arith.constant dense<0.000000e+00> : vector<8x128xf32>
    %14 = tpu.matmul %6, %13, %cst_10 {dimension_numbers = #tpu.dot_dimension_numbers<[1], [0], [0], [1], [0, 0, 1, 1], [], []>} : vector<8x128xbf16>, vector<128x128xbf16>, vector<8x128xf32> -> vector<8x128xf32>
    %c0_11 = arith.constant 0 : index
    %c0_12 = arith.constant 0 : index
    %15 = vector.load %arg5[%c0_11, %c0_12] : memref<1x128xbf16, #tpu.memory_space<vmem>>, vector<1x128xbf16>
    %16 = arith.extf %15 : vector<1x128xbf16> to vector<1x128xf32>
    %17 = vector.broadcast %16 : vector<1x128xf32> to vector<8x128xf32>
    %18 = arith.addf %14, %17 : vector<8x128xf32>
    %c0_13 = arith.constant 0 : index
    %c0_14 = arith.constant 0 : index
    %19 = vector.load %arg6[%c0_13, %c0_14] : memref<128x128xbf16, #tpu.memory_space<vmem>>, vector<128x128xbf16>
    %cst_15 = arith.constant dense<0.000000e+00> : vector<16x128xf32>
    %20 = tpu.matmul %1, %19, %cst_15 {dimension_numbers = #tpu.dot_dimension_numbers<[1], [0], [0], [1], [0, 0, 1, 1], [], []>} : vector<16x128xbf16>, vector<128x128xbf16>, vector<16x128xf32> -> vector<16x128xf32>
    %c0_16 = arith.constant 0 : index
    %c0_17 = arith.constant 0 : index
    %21 = vector.load %arg7[%c0_16, %c0_17] : memref<1x128xbf16, #tpu.memory_space<vmem>>, vector<1x128xbf16>
    %22 = arith.extf %21 : vector<1x128xbf16> to vector<1x128xf32>
    %23 = vector.broadcast %22 : vector<1x128xf32> to vector<16x128xf32>
    %24 = arith.addf %20, %23 : vector<16x128xf32>
    %c0_18 = arith.constant 0 : index
    %c0_19 = arith.constant 0 : index
    %25 = vector.load %arg8[%c0_18, %c0_19] : memref<128x128xbf16, #tpu.memory_space<vmem>>, vector<128x128xbf16>
    %cst_20 = arith.constant dense<0.000000e+00> : vector<16x128xf32>
    %26 = tpu.matmul %1, %25, %cst_20 {dimension_numbers = #tpu.dot_dimension_numbers<[1], [0], [0], [1], [0, 0, 1, 1], [], []>} : vector<16x128xbf16>, vector<128x128xbf16>, vector<16x128xf32> -> vector<16x128xf32>
    %c0_21 = arith.constant 0 : index
    %c0_22 = arith.constant 0 : index
    %27 = vector.load %arg9[%c0_21, %c0_22] : memref<1x128xbf16, #tpu.memory_space<vmem>>, vector<1x128xbf16>
    %28 = arith.extf %27 : vector<1x128xbf16> to vector<1x128xf32>
    %29 = vector.broadcast %28 : vector<1x128xf32> to vector<16x128xf32>
    %30 = arith.addf %26, %29 : vector<16x128xf32>
    %cst_23 = arith.constant 0.176776692 : f32
    %31 = vector.broadcast %cst_23 : f32 to vector<8x128xf32>
    %32 = arith.mulf %18, %31 : vector<8x128xf32>
    %33 = vector.extract_strided_slice %32 {offsets = [0, 0], sizes = [8, 32], strides = [1, 1]} : vector<8x128xf32> to vector<8x32xf32>
    %34 = vector.extract_strided_slice %32 {offsets = [0, 32], sizes = [8, 32], strides = [1, 1]} : vector<8x128xf32> to vector<8x32xf32>
    %35 = vector.extract_strided_slice %32 {offsets = [0, 64], sizes = [8, 32], strides = [1, 1]} : vector<8x128xf32> to vector<8x32xf32>
    %36 = vector.extract_strided_slice %32 {offsets = [0, 96], sizes = [8, 32], strides = [1, 1]} : vector<8x128xf32> to vector<8x32xf32>
    %37 = vector.shape_cast %33 : vector<8x32xf32> to vector<1x8x32xf32>
    %38 = vector.shape_cast %34 : vector<8x32xf32> to vector<1x8x32xf32>
    %39 = vector.shape_cast %35 : vector<8x32xf32> to vector<1x8x32xf32>
    %40 = vector.shape_cast %36 : vector<8x32xf32> to vector<1x8x32xf32>
    %41 = tpu.concatenate %37, %38, %39, %40 in 0 : vector<1x8x32xf32>, vector<1x8x32xf32>, vector<1x8x32xf32>, vector<1x8x32xf32> -> vector<4x8x32xf32>
    %42 = arith.truncf %41 : vector<4x8x32xf32> to vector<4x8x32xbf16>
    %43 = vector.extract_strided_slice %24 {offsets = [0, 0], sizes = [16, 32], strides = [1, 1]} : vector<16x128xf32> to vector<16x32xf32>
    %44 = vector.extract_strided_slice %24 {offsets = [0, 32], sizes = [16, 32], strides = [1, 1]} : vector<16x128xf32> to vector<16x32xf32>
    %45 = vector.extract_strided_slice %24 {offsets = [0, 64], sizes = [16, 32], strides = [1, 1]} : vector<16x128xf32> to vector<16x32xf32>
    %46 = vector.extract_strided_slice %24 {offsets = [0, 96], sizes = [16, 32], strides = [1, 1]} : vector<16x128xf32> to vector<16x32xf32>
    %47 = vector.shape_cast %43 : vector<16x32xf32> to vector<1x16x32xf32>
    %48 = vector.shape_cast %44 : vector<16x32xf32> to vector<1x16x32xf32>
    %49 = vector.shape_cast %45 : vector<16x32xf32> to vector<1x16x32xf32>
    %50 = vector.shape_cast %46 : vector<16x32xf32> to vector<1x16x32xf32>
    %51 = tpu.concatenate %47, %48, %49, %50 in 0 : vector<1x16x32xf32>, vector<1x16x32xf32>, vector<1x16x32xf32>, vector<1x16x32xf32> -> vector<4x16x32xf32>
    %52 = arith.truncf %51 : vector<4x16x32xf32> to vector<4x16x32xbf16>
    %53 = vector.extract_strided_slice %30 {offsets = [0, 0], sizes = [16, 32], strides = [1, 1]} : vector<16x128xf32> to vector<16x32xf32>
    %54 = vector.extract_strided_slice %30 {offsets = [0, 32], sizes = [16, 32], strides = [1, 1]} : vector<16x128xf32> to vector<16x32xf32>
    %55 = vector.extract_strided_slice %30 {offsets = [0, 64], sizes = [16, 32], strides = [1, 1]} : vector<16x128xf32> to vector<16x32xf32>
    %56 = vector.extract_strided_slice %30 {offsets = [0, 96], sizes = [16, 32], strides = [1, 1]} : vector<16x128xf32> to vector<16x32xf32>
    %57 = vector.shape_cast %53 : vector<16x32xf32> to vector<1x16x32xf32>
    %58 = vector.shape_cast %54 : vector<16x32xf32> to vector<1x16x32xf32>
    %59 = vector.shape_cast %55 : vector<16x32xf32> to vector<1x16x32xf32>
    %60 = vector.shape_cast %56 : vector<16x32xf32> to vector<1x16x32xf32>
    %61 = tpu.concatenate %57, %58, %59, %60 in 0 : vector<1x16x32xf32>, vector<1x16x32xf32>, vector<1x16x32xf32>, vector<1x16x32xf32> -> vector<4x16x32xf32>
    %62 = arith.truncf %61 : vector<4x16x32xf32> to vector<4x16x32xbf16>
    "tpu.trace_start"() <{level = 10 : i32, message = "hqd,hkd->hqk"}> : () -> ()
    %cst_24 = arith.constant dense<0.000000e+00> : vector<4x8x16xf32>
    %63 = tpu.matmul %42, %52, %cst_24 {dimension_numbers = #tpu.dot_dimension_numbers<[2], [2], [1], [1], [0, 0, 0, 1, 1, 1], [0], [0]>} : vector<4x8x32xbf16>, vector<4x16x32xbf16>, vector<4x8x16xf32> -> vector<4x8x16xf32>
    "tpu.trace_stop"() : () -> ()
    %64 = vector.shape_cast %12 : vector<1x16xf32> to vector<1x1x16xf32>
    %65 = vector.broadcast %64 : vector<1x1x16xf32> to vector<4x8x16xf32>
    %66 = arith.addf %63, %65 : vector<4x8x16xf32>
    %cst_25 = arith.constant dense<0xFF800000> : vector<4x8xf32>
    %67 = vector.multi_reduction <maximumf>, %66, %cst_25 [2] : vector<4x8x16xf32> to vector<4x8xf32>
    %68 = vector.shape_cast %67 : vector<4x8xf32> to vector<4x8x1xf32>
    %69 = vector.broadcast %68 : vector<4x8x1xf32> to vector<4x8x16xf32>
    %70 = arith.subf %66, %69 : vector<4x8x16xf32>
    %71 = math.exp %70 : vector<4x8x16xf32>
    %cst_26 = arith.constant dense<0.000000e+00> : vector<4x8xf32>
    %72 = vector.multi_reduction <add>, %71, %cst_26 [2] : vector<4x8x16xf32> to vector<4x8xf32>
    %73 = vector.shape_cast %72 : vector<4x8xf32> to vector<4x8x1xf32>
    %74 = tpu.reciprocal %73 {approx = true} : vector<4x8x1xf32> -> vector<4x8x1xf32>
    %75 = vector.broadcast %74 : vector<4x8x1xf32> to vector<4x8x16xf32>
    %76 = arith.mulf %71, %75 : vector<4x8x16xf32>
    %77 = arith.truncf %76 : vector<4x8x16xf32> to vector<4x8x16xbf16>
    "tpu.trace_start"() <{level = 10 : i32, message = "hqk,hkd->hqd"}> : () -> ()
    %cst_27 = arith.constant dense<0.000000e+00> : vector<4x8x32xf32>
    %78 = tpu.matmul %77, %62, %cst_27 {dimension_numbers = #tpu.dot_dimension_numbers<[2], [1], [1], [2], [0, 0, 0, 1, 1, 2], [0], [0]>} : vector<4x8x16xbf16>, vector<4x16x32xbf16>, vector<4x8x32xf32> -> vector<4x8x32xf32>
    "tpu.trace_stop"() : () -> ()
    %79 = vector.extract_strided_slice %78 {offsets = [0, 0, 0], sizes = [1, 8, 32], strides = [1, 1, 1]} : vector<4x8x32xf32> to vector<1x8x32xf32>
    %80 = vector.shape_cast %79 : vector<1x8x32xf32> to vector<8x32xf32>
    %81 = vector.extract_strided_slice %78 {offsets = [1, 0, 0], sizes = [1, 8, 32], strides = [1, 1, 1]} : vector<4x8x32xf32> to vector<1x8x32xf32>
    %82 = vector.shape_cast %81 : vector<1x8x32xf32> to vector<8x32xf32>
    %83 = vector.extract_strided_slice %78 {offsets = [2, 0, 0], sizes = [1, 8, 32], strides = [1, 1, 1]} : vector<4x8x32xf32> to vector<1x8x32xf32>
    %84 = vector.shape_cast %83 : vector<1x8x32xf32> to vector<8x32xf32>
    %85 = vector.extract_strided_slice %78 {offsets = [3, 0, 0], sizes = [1, 8, 32], strides = [1, 1, 1]} : vector<4x8x32xf32> to vector<1x8x32xf32>
    %86 = vector.shape_cast %85 : vector<1x8x32xf32> to vector<8x32xf32>
    %87 = tpu.concatenate %80, %82, %84, %86 in 1 : vector<8x32xf32>, vector<8x32xf32>, vector<8x32xf32>, vector<8x32xf32> -> vector<8x128xf32>
    %88 = arith.truncf %87 : vector<8x128xf32> to vector<8x128xbf16>
    %c0_28 = arith.constant 0 : index
    %c0_29 = arith.constant 0 : index
    %89 = vector.load %arg10[%c0_28, %c0_29] : memref<128x128xbf16, #tpu.memory_space<vmem>>, vector<128x128xbf16>
    %cst_30 = arith.constant dense<0.000000e+00> : vector<8x128xf32>
    %90 = tpu.matmul %88, %89, %cst_30 {dimension_numbers = #tpu.dot_dimension_numbers<[1], [0], [0], [1], [0, 0, 1, 1], [], []>} : vector<8x128xbf16>, vector<128x128xbf16>, vector<8x128xf32> -> vector<8x128xf32>
    %c0_31 = arith.constant 0 : index
    %c0_32 = arith.constant 0 : index
    %91 = vector.load %arg11[%c0_31, %c0_32] : memref<1x128xbf16, #tpu.memory_space<vmem>>, vector<1x128xbf16>
    %92 = arith.extf %91 : vector<1x128xbf16> to vector<1x128xf32>
    %93 = vector.broadcast %92 : vector<1x128xf32> to vector<8x128xf32>
    %94 = arith.addf %90, %93 : vector<8x128xf32>
    %95 = arith.extf %6 : vector<8x128xbf16> to vector<8x128xf32>
    %96 = arith.addf %95, %94 : vector<8x128xf32>
    %c0_33 = arith.constant 0 : index
    %c0_34 = arith.constant 0 : index
    %97 = vector.load %arg12[%c0_33, %c0_34] : memref<1x128xbf16, #tpu.memory_space<vmem>>, vector<1x128xbf16>
    %98 = arith.extf %97 : vector<1x128xbf16> to vector<1x128xf32>
    %c0_35 = arith.constant 0 : index
    %c0_36 = arith.constant 0 : index
    %99 = vector.load %arg13[%c0_35, %c0_36] : memref<1x128xbf16, #tpu.memory_space<vmem>>, vector<1x128xbf16>
    %100 = arith.extf %99 : vector<1x128xbf16> to vector<1x128xf32>
    %cst_37 = arith.constant dense<0.000000e+00> : vector<8xf32>
    %101 = vector.multi_reduction <add>, %96, %cst_37 [1] : vector<8x128xf32> to vector<8xf32>
    %102 = vector.shape_cast %101 : vector<8xf32> to vector<8x1xf32>
    %cst_38 = arith.constant 1.280000e+02 : f32
    %103 = vector.broadcast %cst_38 : f32 to vector<8x1xf32>
    %104 = arith.divf %102, %103 : vector<8x1xf32>
    %105 = vector.broadcast %104 : vector<8x1xf32> to vector<8x128xf32>
    %106 = arith.subf %96, %105 : vector<8x128xf32>
    %107 = arith.mulf %106, %106 : vector<8x128xf32>
    %cst_39 = arith.constant dense<0.000000e+00> : vector<8xf32>
    %108 = vector.multi_reduction <add>, %107, %cst_39 [1] : vector<8x128xf32> to vector<8xf32>
    %109 = vector.shape_cast %108 : vector<8xf32> to vector<8x1xf32>
    %cst_40 = arith.constant 1.280000e+02 : f32
    %110 = vector.broadcast %cst_40 : f32 to vector<8x1xf32>
    %111 = arith.divf %109, %110 : vector<8x1xf32>
    %112 = vector.broadcast %104 : vector<8x1xf32> to vector<8x128xf32>
    %113 = arith.subf %96, %112 : vector<8x128xf32>
    %cst_41 = arith.constant 9.99999974E-6 : f32
    %114 = vector.broadcast %cst_41 : f32 to vector<8x1xf32>
    %115 = arith.addf %111, %114 : vector<8x1xf32>
    %116 = math.rsqrt %115 : vector<8x1xf32>
    %117 = vector.broadcast %116 : vector<8x1xf32> to vector<8x128xf32>
    %118 = arith.mulf %113, %117 : vector<8x128xf32>
    %119 = vector.broadcast %98 : vector<1x128xf32> to vector<8x128xf32>
    %120 = arith.mulf %118, %119 : vector<8x128xf32>
    %121 = vector.broadcast %100 : vector<1x128xf32> to vector<8x128xf32>
    %122 = arith.addf %120, %121 : vector<8x128xf32>
    %123 = arith.truncf %122 : vector<8x128xf32> to vector<8x128xbf16>
    %c0_42 = arith.constant 0 : index
    %c0_43 = arith.constant 0 : index
    %124 = vector.load %arg14[%c0_42, %c0_43] : memref<128x256xbf16, #tpu.memory_space<vmem>>, vector<128x256xbf16>
    %cst_44 = arith.constant dense<0.000000e+00> : vector<8x256xf32>
    %125 = tpu.matmul %123, %124, %cst_44 {dimension_numbers = #tpu.dot_dimension_numbers<[1], [0], [0], [1], [0, 0, 1, 1], [], []>} : vector<8x128xbf16>, vector<128x256xbf16>, vector<8x256xf32> -> vector<8x256xf32>
    %c0_45 = arith.constant 0 : index
    %c0_46 = arith.constant 0 : index
    %126 = vector.load %arg15[%c0_45, %c0_46] : memref<1x256xbf16, #tpu.memory_space<vmem>>, vector<1x256xbf16>
    %127 = arith.extf %126 : vector<1x256xbf16> to vector<1x256xf32>
    %128 = vector.broadcast %127 : vector<1x256xf32> to vector<8x256xf32>
    %129 = arith.addf %125, %128 : vector<8x256xf32>
    %cst_47 = arith.constant 0.000000e+00 : f32
    %130 = vector.broadcast %cst_47 : f32 to vector<8x256xf32>
    %131 = arith.maximumf %129, %130 : vector<8x256xf32>
    %132 = arith.truncf %131 : vector<8x256xf32> to vector<8x256xbf16>
    %c0_48 = arith.constant 0 : index
    %c0_49 = arith.constant 0 : index
    %133 = vector.load %arg16[%c0_48, %c0_49] : memref<256x128xbf16, #tpu.memory_space<vmem>>, vector<256x128xbf16>
    %cst_50 = arith.constant dense<0.000000e+00> : vector<8x128xf32>
    %134 = tpu.matmul %132, %133, %cst_50 {dimension_numbers = #tpu.dot_dimension_numbers<[1], [0], [0], [1], [0, 0, 1, 1], [], []>} : vector<8x256xbf16>, vector<256x128xbf16>, vector<8x128xf32> -> vector<8x128xf32>
    %c0_51 = arith.constant 0 : index
    %c0_52 = arith.constant 0 : index
    %135 = vector.load %arg17[%c0_51, %c0_52] : memref<1x128xbf16, #tpu.memory_space<vmem>>, vector<1x128xbf16>
    %136 = arith.extf %135 : vector<1x128xbf16> to vector<1x128xf32>
    %137 = vector.broadcast %136 : vector<1x128xf32> to vector<8x128xf32>
    %138 = arith.addf %134, %137 : vector<8x128xf32>
    %139 = arith.addf %122, %138 : vector<8x128xf32>
    %c0_53 = arith.constant 0 : index
    %c0_54 = arith.constant 0 : index
    %140 = vector.load %arg18[%c0_53, %c0_54] : memref<1x128xbf16, #tpu.memory_space<vmem>>, vector<1x128xbf16>
    %141 = arith.extf %140 : vector<1x128xbf16> to vector<1x128xf32>
    %c0_55 = arith.constant 0 : index
    %c0_56 = arith.constant 0 : index
    %142 = vector.load %arg19[%c0_55, %c0_56] : memref<1x128xbf16, #tpu.memory_space<vmem>>, vector<1x128xbf16>
    %143 = arith.extf %142 : vector<1x128xbf16> to vector<1x128xf32>
    %cst_57 = arith.constant dense<0.000000e+00> : vector<8xf32>
    %144 = vector.multi_reduction <add>, %139, %cst_57 [1] : vector<8x128xf32> to vector<8xf32>
    %145 = vector.shape_cast %144 : vector<8xf32> to vector<8x1xf32>
    %cst_58 = arith.constant 1.280000e+02 : f32
    %146 = vector.broadcast %cst_58 : f32 to vector<8x1xf32>
    %147 = arith.divf %145, %146 : vector<8x1xf32>
    %148 = vector.broadcast %147 : vector<8x1xf32> to vector<8x128xf32>
    %149 = arith.subf %139, %148 : vector<8x128xf32>
    %150 = arith.mulf %149, %149 : vector<8x128xf32>
    %cst_59 = arith.constant dense<0.000000e+00> : vector<8xf32>
    %151 = vector.multi_reduction <add>, %150, %cst_59 [1] : vector<8x128xf32> to vector<8xf32>
    %152 = vector.shape_cast %151 : vector<8xf32> to vector<8x1xf32>
    %cst_60 = arith.constant 1.280000e+02 : f32
    %153 = vector.broadcast %cst_60 : f32 to vector<8x1xf32>
    %154 = arith.divf %152, %153 : vector<8x1xf32>
    %155 = vector.broadcast %147 : vector<8x1xf32> to vector<8x128xf32>
    %156 = arith.subf %139, %155 : vector<8x128xf32>
    %cst_61 = arith.constant 9.99999974E-6 : f32
    %157 = vector.broadcast %cst_61 : f32 to vector<8x1xf32>
    %158 = arith.addf %154, %157 : vector<8x1xf32>
    %159 = math.rsqrt %158 : vector<8x1xf32>
    %160 = vector.broadcast %159 : vector<8x1xf32> to vector<8x128xf32>
    %161 = arith.mulf %156, %160 : vector<8x128xf32>
    %162 = vector.broadcast %141 : vector<1x128xf32> to vector<8x128xf32>
    %163 = arith.mulf %161, %162 : vector<8x128xf32>
    %164 = vector.broadcast %143 : vector<1x128xf32> to vector<8x128xf32>
    %165 = arith.addf %163, %164 : vector<8x128xf32>
    %166 = arith.truncf %165 : vector<8x128xf32> to vector<8x128xbf16>
    %c0_62 = arith.constant 0 : index
    %c0_63 = arith.constant 0 : index
    %c0_64 = arith.constant 0 : index
    %167 = vector.load %arg20[%c0_62, %c0_63, %c0_64] : memref<1x8x128xbf16, #tpu.memory_space<vmem>>, vector<1x8x128xbf16>
    %168 = vector.shape_cast %167 : vector<1x8x128xbf16> to vector<8x128xbf16>
    %169 = vector.shape_cast %166 : vector<8x128xbf16> to vector<1x8x128xbf16>
    tpu.vector_store %arg20[%c0_62, %c0_63, %c0_64], %169 {strides = array<i32>} : memref<1x8x128xbf16, #tpu.memory_space<vmem>>, vector<1x8x128xbf16>,
    return
  }
  func.func @transform_0(%arg0: i32, %arg1: i32) -> (i32, i32, i32) {
    %c0_i32 = arith.constant 0 : i32
    %c0_i32_0 = arith.constant 0 : i32
    %c0_i32_1 = arith.constant 0 : i32
    return %arg0, %c0_i32, %c0_i32_0 : i32, i32, i32
  }
  func.func @transform_1(%arg0: i32, %arg1: i32) -> (i32, i32, i32) {
    %c0_i32 = arith.constant 0 : i32
    %c0_i32_0 = arith.constant 0 : i32
    %c0_i32_1 = arith.constant 0 : i32
    return %arg0, %c0_i32, %c0_i32_0 : i32, i32, i32
  }
  func.func @transform_2(%arg0: i32, %arg1: i32) -> (i32, i32) {
    %c0_i32 = arith.constant 0 : i32
    %c0_i32_0 = arith.constant 0 : i32
    %c0_i32_1 = arith.constant 0 : i32
    return %c0_i32, %c0_i32_0 : i32, i32
  }
  func.func @transform_3(%arg0: i32, %arg1: i32) -> (i32, i32) {
    %c0_i32 = arith.constant 0 : i32
    %c0_i32_0 = arith.constant 0 : i32
    %c0_i32_1 = arith.constant 0 : i32
    return %c0_i32, %c0_i32_0 : i32, i32
  }
  func.func @transform_4(%arg0: i32, %arg1: i32) -> (i32, i32) {
    %c0_i32 = arith.constant 0 : i32
    %c0_i32_0 = arith.constant 0 : i32
    %c0_i32_1 = arith.constant 0 : i32
    return %c0_i32, %c0_i32_0 : i32, i32
  }
  func.func @transform_5(%arg0: i32, %arg1: i32) -> (i32, i32) {
    %c0_i32 = arith.constant 0 : i32
    %c0_i32_0 = arith.constant 0 : i32
    %c0_i32_1 = arith.constant 0 : i32
    return %c0_i32, %c0_i32_0 : i32, i32
  }
  func.func @transform_6(%arg0: i32, %arg1: i32) -> (i32, i32) {
    %c0_i32 = arith.constant 0 : i32
    %c0_i32_0 = arith.constant 0 : i32
    %c0_i32_1 = arith.constant 0 : i32
    return %c0_i32, %c0_i32_0 : i32, i32
  }
  func.func @transform_7(%arg0: i32, %arg1: i32) -> (i32, i32) {
    %c0_i32 = arith.constant 0 : i32
    %c0_i32_0 = arith.constant 0 : i32
    %c0_i32_1 = arith.constant 0 : i32
    return %c0_i32, %c0_i32_0 : i32, i32
  }
  func.func @transform_8(%arg0: i32, %arg1: i32) -> (i32, i32) {
    %c0_i32 = arith.constant 0 : i32
    %c0_i32_0 = arith.constant 0 : i32
    %c0_i32_1 = arith.constant 0 : i32
    return %c0_i32, %c0_i32_0 : i32, i32
  }
  func.func @transform_9(%arg0: i32, %arg1: i32) -> (i32, i32) {
    %c0_i32 = arith.constant 0 : i32
    %c0_i32_0 = arith.constant 0 : i32
    %c0_i32_1 = arith.constant 0 : i32
    return %c0_i32, %c0_i32_0 : i32, i32
  }
  func.func @transform_10(%arg0: i32, %arg1: i32) -> (i32, i32) {
    %c0_i32 = arith.constant 0 : i32
    %c0_i32_0 = arith.constant 0 : i32
    %c0_i32_1 = arith.constant 0 : i32
    return %c0_i32, %c0_i32_0 : i32, i32
  }
  func.func @transform_11(%arg0: i32, %arg1: i32) -> (i32, i32) {
    %c0_i32 = arith.constant 0 : i32
    %c0_i32_0 = arith.constant 0 : i32
    %c0_i32_1 = arith.constant 0 : i32
    return %c0_i32, %c0_i32_0 : i32, i32
  }
  func.func @transform_12(%arg0: i32, %arg1: i32) -> (i32, i32) {
    %c0_i32 = arith.constant 0 : i32
    %c0_i32_0 = arith.constant 0 : i32
    %c0_i32_1 = arith.constant 0 : i32
    return %c0_i32, %c0_i32_0 : i32, i32
  }
  func.func @transform_13(%arg0: i32, %arg1: i32) -> (i32, i32) {
    %c0_i32 = arith.constant 0 : i32
    %c0_i32_0 = arith.constant 0 : i32
    %c0_i32_1 = arith.constant 0 : i32
    return %c0_i32, %c0_i32_0 : i32, i32
  }
  func.func @transform_14(%arg0: i32, %arg1: i32) -> (i32, i32) {
    %c0_i32 = arith.constant 0 : i32
    %c0_i32_0 = arith.constant 0 : i32
    %c0_i32_1 = arith.constant 0 : i32
    return %c0_i32, %c0_i32_0 : i32, i32
  }
  func.func @transform_15(%arg0: i32, %arg1: i32) -> (i32, i32) {
    %c0_i32 = arith.constant 0 : i32
    %c0_i32_0 = arith.constant 0 : i32
    %c0_i32_1 = arith.constant 0 : i32
    return %c0_i32, %c0_i32_0 : i32, i32
  }
  func.func @transform_16(%arg0: i32, %arg1: i32) -> (i32, i32) {
    %c0_i32 = arith.constant 0 : i32
    %c0_i32_0 = arith.constant 0 : i32
    %c0_i32_1 = arith.constant 0 : i32
    return %c0_i32, %c0_i32_0 : i32, i32
  }
  func.func @transform_17(%arg0: i32, %arg1: i32) -> (i32, i32) {
    %c0_i32 = arith.constant 0 : i32
    %c0_i32_0 = arith.constant 0 : i32
    %c0_i32_1 = arith.constant 0 : i32
    return %c0_i32, %c0_i32_0 : i32, i32
  }
  func.func @transform_18(%arg0: i32, %arg1: i32) -> (i32, i32, i32) {
    %c0_i32 = arith.constant 0 : i32
    %c0_i32_0 = arith.constant 0 : i32
    return %arg0, %arg1, %c0_i32 : i32, i32, i32
  }
}

module attributes {stable_mosaic.version = 11 : i64} {
  func.func @_encoder_layer_kernel(%arg0: i32, %arg1: i32, %arg2: memref<1x16x128xbf16, #tpu.memory_space<vmem>>, %arg3: memref<1x1x16xf32, #tpu.memory_space<vmem>>, %arg4: memref<128x128xbf16, #tpu.memory_space<vmem>>, %arg5: memref<1x128xbf16, #tpu.memory_space<vmem>>, %arg6: memref<128x128xbf16, #tpu.memory_space<vmem>>, %arg7: memref<1x128xbf16, #tpu.memory_space<vmem>>, %arg8: memref<128x128xbf16, #tpu.memory_space<vmem>>, %arg9: memref<1x128xbf16, #tpu.memory_space<vmem>>, %arg10: memref<128x128xbf16, #tpu.memory_space<vmem>>, %arg11: memref<1x128xbf16, #tpu.memory_space<vmem>>, %arg12: memref<1x128xbf16, #tpu.memory_space<vmem>>, %arg13: memref<1x128xbf16, #tpu.memory_space<vmem>>, %arg14: memref<128x256xbf16, #tpu.memory_space<vmem>>, %arg15: memref<1x256xbf16, #tpu.memory_space<vmem>>, %arg16: memref<256x128xbf16, #tpu.memory_space<vmem>>, %arg17: memref<1x128xbf16, #tpu.memory_space<vmem>>, %arg18: memref<1x128xbf16, #tpu.memory_space<vmem>>, %arg19: memref<1x128xbf16, #tpu.memory_space<vmem>>, %arg20: memref<1x8x128xbf16, #tpu.memory_space<vmem>>) attributes {dimension_semantics = [#tpu.dimension_semantics<parallel>, #tpu.dimension_semantics<parallel>], iteration_bounds = array<i64: 2, 2>, scalar_prefetch = 0 : i64, scratch_operands = 0 : i64, tpu.core_type = #tpu.core_type<tc>, window_params = [{transform_indices = @transform_0, window_bounds = array<i64: 1, 16, 128>}, {transform_indices = @transform_1, window_bounds = array<i64: 1, 1, 16>}, {pipeline_mode = #tpu.pipeline_mode<synchronous>, transform_indices = @transform_2, window_bounds = array<i64: 128, 128>}, {pipeline_mode = #tpu.pipeline_mode<synchronous>, transform_indices = @transform_3, window_bounds = array<i64: 1, 128>}, {pipeline_mode = #tpu.pipeline_mode<synchronous>, transform_indices = @transform_4, window_bounds = array<i64: 128, 128>}, {pipeline_mode = #tpu.pipeline_mode<synchronous>, transform_indices = @transform_5, window_bounds = array<i64: 1, 128>}, {pipeline_mode = #tpu.pipeline_mode<synchronous>, transform_indices = @transform_6, window_bounds = array<i64: 128, 128>}, {pipeline_mode = #tpu.pipeline_mode<synchronous>, transform_indices = @transform_7, window_bounds = array<i64: 1, 128>}, {pipeline_mode = #tpu.pipeline_mode<synchronous>, transform_indices = @transform_8, window_bounds = array<i64: 128, 128>}, {pipeline_mode = #tpu.pipeline_mode<synchronous>, transform_indices = @transform_9, window_bounds = array<i64: 1, 128>}, {pipeline_mode = #tpu.pipeline_mode<synchronous>, transform_indices = @transform_10, window_bounds = array<i64: 1, 128>}, {pipeline_mode = #tpu.pipeline_mode<synchronous>, transform_indices = @transform_11, window_bounds = array<i64: 1, 128>}, {pipeline_mode = #tpu.pipeline_mode<synchronous>, transform_indices = @transform_12, window_bounds = array<i64: 128, 256>}, {pipeline_mode = #tpu.pipeline_mode<synchronous>, transform_indices = @transform_13, window_bounds = array<i64: 1, 256>}, {pipeline_mode = #tpu.pipeline_mode<synchronous>, transform_indices = @transform_14, window_bounds = array<i64: 256, 128>}, {pipeline_mode = #tpu.pipeline_mode<synchronous>, transform_indices = @transform_15, window_bounds = array<i64: 1, 128>}, {pipeline_mode = #tpu.pipeline_mode<synchronous>, transform_indices = @transform_16, window_bounds = array<i64: 1, 128>}, {pipeline_mode = #tpu.pipeline_mode<synchronous>, transform_indices = @transform_17, window_bounds = array<i64: 1, 128>}, {transform_indices = @transform_18, window_bounds = array<i64: 1, 8, 128>}]} {
    %c0 = arith.constant 0 : index
    %c0_0 = arith.constant 0 : index
    %c0_1 = arith.constant 0 : index
    %0 = vector.load %arg2[%c0, %c0_0, %c0_1] : memref<1x16x128xbf16, #tpu.memory_space<vmem>>, vector<1x16x128xbf16>
    %1 = vector.shape_cast %0 : vector<1x16x128xbf16> to vector<16x128xbf16>
    %c8_i32 = arith.constant 8 : i32
    %2 = arith.muli %arg1, %c8_i32 : i32
    %3 = tpu.assume_multiple %2, 8 : i32
    %c0_2 = arith.constant 0 : index
    %4 = arith.index_cast %3 : i32 to index
    %c0_3 = arith.constant 0 : index
    %5 = vector.load %arg2[%c0_2, %4, %c0_3] : memref<1x16x128xbf16, #tpu.memory_space<vmem>>, vector<1x8x128xbf16>
    %6 = vector.shape_cast %5 : vector<1x8x128xbf16> to vector<8x128xbf16>
    %c0_4 = arith.constant 0 : index
    %c0_5 = arith.constant 0 : index
    %c0_6 = arith.constant 0 : index
    %7 = vector.load %arg3[%c0_4, %c0_5, %c0_6] : memref<1x1x16xf32, #tpu.memory_space<vmem>>, vector<1x1x16xf32>
    %8 = vector.shape_cast %7 : vector<1x1x16xf32> to vector<1x16xf32>
    %cst = arith.constant 1.000000e+00 : f32
    %9 = vector.broadcast %cst : f32 to vector<1x16xf32>
    %10 = arith.subf %8, %9 : vector<1x16xf32>
    %cst_7 = arith.constant 1.000000e+09 : f32
    %11 = vector.broadcast %cst_7 : f32 to vector<1x16xf32>
    %12 = arith.mulf %10, %11 : vector<1x16xf32>
    %c0_8 = arith.constant 0 : index
    %c0_9 = arith.constant 0 : index
    %13 = vector.load %arg4[%c0_8, %c0_9] : memref<128x128xbf16, #tpu.memory_space<vmem>>, vector<128x128xbf16>
    %cst_10 = arith.constant dense<0.000000e+00> : vector<8x128xf32>
    %14 = tpu.matmul %6, %13, %cst_10 {dimension_numbers = #tpu.dot_dimension_numbers<[1], [0], [0], [1], [0, 0, 1, 1], [], []>} : vector<8x128xbf16>, vector<128x128xbf16>, vector<8x128xf32> -> vector<8x128xf32>
    %c0_11 = arith.constant 0 : index
    %c0_12 = arith.constant 0 : index
    %15 = vector.load %arg5[%c0_11, %c0_12] : memref<1x128xbf16, #tpu.memory_space<vmem>>, vector<1x128xbf16>
    %16 = arith.extf %15 : vector<1x128xbf16> to vector<1x128xf32>
    %17 = vector.broadcast %16 : vector<1x128xf32> to vector<8x128xf32>
    %18 = arith.addf %14, %17 : vector<8x128xf32>
    %c0_13 = arith.constant 0 : index
    %c0_14 = arith.constant 0 : index
    %19 = vector.load %arg6[%c0_13, %c0_14] : memref<128x128xbf16, #tpu.memory_space<vmem>>, vector<128x128xbf16>
    %cst_15 = arith.constant dense<0.000000e+00> : vector<16x128xf32>
    %20 = tpu.matmul %1, %19, %cst_15 {dimension_numbers = #tpu.dot_dimension_numbers<[1], [0], [0], [1], [0, 0, 1, 1], [], []>} : vector<16x128xbf16>, vector<128x128xbf16>, vector<16x128xf32> -> vector<16x128xf32>
    %c0_16 = arith.constant 0 : index
    %c0_17 = arith.constant 0 : index
    %21 = vector.load %arg7[%c0_16, %c0_17] : memref<1x128xbf16, #tpu.memory_space<vmem>>, vector<1x128xbf16>
    %22 = arith.extf %21 : vector<1x128xbf16> to vector<1x128xf32>
    %23 = vector.broadcast %22 : vector<1x128xf32> to vector<16x128xf32>
    %24 = arith.addf %20, %23 : vector<16x128xf32>
    %c0_18 = arith.constant 0 : index
    %c0_19 = arith.constant 0 : index
    %25 = vector.load %arg8[%c0_18, %c0_19] : memref<128x128xbf16, #tpu.memory_space<vmem>>, vector<128x128xbf16>
    %cst_20 = arith.constant dense<0.000000e+00> : vector<16x128xf32>
    %26 = tpu.matmul %1, %25, %cst_20 {dimension_numbers = #tpu.dot_dimension_numbers<[1], [0], [0], [1], [0, 0, 1, 1], [], []>} : vector<16x128xbf16>, vector<128x128xbf16>, vector<16x128xf32> -> vector<16x128xf32>
    %c0_21 = arith.constant 0 : index
    %c0_22 = arith.constant 0 : index
    %27 = vector.load %arg9[%c0_21, %c0_22] : memref<1x128xbf16, #tpu.memory_space<vmem>>, vector<1x128xbf16>
    %28 = arith.extf %27 : vector<1x128xbf16> to vector<1x128xf32>
    %29 = vector.broadcast %28 : vector<1x128xf32> to vector<16x128xf32>
    %30 = arith.addf %26, %29 : vector<16x128xf32>
    %cst_23 = arith.constant 0.176776692 : f32
    %31 = vector.broadcast %cst_23 : f32 to vector<8x128xf32>
    %32 = arith.mulf %18, %31 : vector<8x128xf32>
    %33 = vector.extract_strided_slice %32 {offsets = [0, 0], sizes = [8, 32], strides = [1, 1]} : vector<8x128xf32> to vector<8x32xf32>
    %34 = vector.extract_strided_slice %32 {offsets = [0, 32], sizes = [8, 32], strides = [1, 1]} : vector<8x128xf32> to vector<8x32xf32>
    %35 = vector.extract_strided_slice %32 {offsets = [0, 64], sizes = [8, 32], strides = [1, 1]} : vector<8x128xf32> to vector<8x32xf32>
    %36 = vector.extract_strided_slice %32 {offsets = [0, 96], sizes = [8, 32], strides = [1, 1]} : vector<8x128xf32> to vector<8x32xf32>
    %37 = vector.shape_cast %33 : vector<8x32xf32> to vector<1x8x32xf32>
    %38 = vector.shape_cast %34 : vector<8x32xf32> to vector<1x8x32xf32>
    %39 = vector.shape_cast %35 : vector<8x32xf32> to vector<1x8x32xf32>
    %40 = vector.shape_cast %36 : vector<8x32xf32> to vector<1x8x32xf32>
    %41 = tpu.concatenate %37, %38, %39, %40 in 0 : vector<1x8x32xf32>, vector<1x8x32xf32>, vector<1x8x32xf32>, vector<1x8x32xf32> -> vector<4x8x32xf32>
    %42 = arith.truncf %41 : vector<4x8x32xf32> to vector<4x8x32xbf16>
    %43 = vector.extract_strided_slice %24 {offsets = [0, 0], sizes = [16, 32], strides = [1, 1]} : vector<16x128xf32> to vector<16x32xf32>
    %44 = vector.extract_strided_slice %24 {offsets = [0, 32], sizes = [16, 32], strides = [1, 1]} : vector<16x128xf32> to vector<16x32xf32>
    %45 = vector.extract_strided_slice %24 {offsets = [0, 64], sizes = [16, 32], strides = [1, 1]} : vector<16x128xf32> to vector<16x32xf32>
    %46 = vector.extract_strided_slice %24 {offsets = [0, 96], sizes = [16, 32], strides = [1, 1]} : vector<16x128xf32> to vector<16x32xf32>
    %47 = vector.shape_cast %43 : vector<16x32xf32> to vector<1x16x32xf32>
    %48 = vector.shape_cast %44 : vector<16x32xf32> to vector<1x16x32xf32>
    %49 = vector.shape_cast %45 : vector<16x32xf32> to vector<1x16x32xf32>
    %50 = vector.shape_cast %46 : vector<16x32xf32> to vector<1x16x32xf32>
    %51 = tpu.concatenate %47, %48, %49, %50 in 0 : vector<1x16x32xf32>, vector<1x16x32xf32>, vector<1x16x32xf32>, vector<1x16x32xf32> -> vector<4x16x32xf32>
    %52 = arith.truncf %51 : vector<4x16x32xf32> to vector<4x16x32xbf16>
    %53 = vector.extract_strided_slice %30 {offsets = [0, 0], sizes = [16, 32], strides = [1, 1]} : vector<16x128xf32> to vector<16x32xf32>
    %54 = vector.extract_strided_slice %30 {offsets = [0, 32], sizes = [16, 32], strides = [1, 1]} : vector<16x128xf32> to vector<16x32xf32>
    %55 = vector.extract_strided_slice %30 {offsets = [0, 64], sizes = [16, 32], strides = [1, 1]} : vector<16x128xf32> to vector<16x32xf32>
    %56 = vector.extract_strided_slice %30 {offsets = [0, 96], sizes = [16, 32], strides = [1, 1]} : vector<16x128xf32> to vector<16x32xf32>
    %57 = vector.shape_cast %53 : vector<16x32xf32> to vector<1x16x32xf32>
    %58 = vector.shape_cast %54 : vector<16x32xf32> to vector<1x16x32xf32>
    %59 = vector.shape_cast %55 : vector<16x32xf32> to vector<1x16x32xf32>
    %60 = vector.shape_cast %56 : vector<16x32xf32> to vector<1x16x32xf32>
    %61 = tpu.concatenate %57, %58, %59, %60 in 0 : vector<1x16x32xf32>, vector<1x16x32xf32>, vector<1x16x32xf32>, vector<1x16x32xf32> -> vector<4x16x32xf32>
    %62 = arith.truncf %61 : vector<4x16x32xf32> to vector<4x16x32xbf16>
    "tpu.trace_start"() <{level = 10 : i32, message = "hqd,hkd->hqk"}> : () -> ()
    %cst_24 = arith.constant dense<0.000000e+00> : vector<4x8x16xf32>
    %63 = tpu.matmul %42, %52, %cst_24 {dimension_numbers = #tpu.dot_dimension_numbers<[2], [2], [1], [1], [0, 0, 0, 1, 1, 1], [0], [0]>} : vector<4x8x32xbf16>, vector<4x16x32xbf16>, vector<4x8x16xf32> -> vector<4x8x16xf32>
    "tpu.trace_stop"() : () -> ()
    %64 = vector.shape_cast %12 : vector<1x16xf32> to vector<1x1x16xf32>
    %65 = vector.broadcast %64 : vector<1x1x16xf32> to vector<4x8x16xf32>
    %66 = arith.addf %63, %65 : vector<4x8x16xf32>
    %cst_25 = arith.constant dense<0xFF800000> : vector<4x8xf32>
    %67 = vector.multi_reduction <maximumf>, %66, %cst_25 [2] : vector<4x8x16xf32> to vector<4x8xf32>
    %68 = vector.shape_cast %67 : vector<4x8xf32> to vector<4x8x1xf32>
    %69 = vector.broadcast %68 : vector<4x8x1xf32> to vector<4x8x16xf32>
    %70 = arith.subf %66, %69 : vector<4x8x16xf32>
    %71 = math.exp %70 : vector<4x8x16xf32>
    %cst_26 = arith.constant dense<0.000000e+00> : vector<4x8xf32>
    %72 = vector.multi_reduction <add>, %71, %cst_26 [2] : vector<4x8x16xf32> to vector<4x8xf32>
    %73 = vector.shape_cast %72 : vector<4x8xf32> to vector<4x8x1xf32>
    %74 = tpu.reciprocal %73 {approx = true} : vector<4x8x1xf32> -> vector<4x8x1xf32>
    %75 = vector.broadcast %74 : vector<4x8x1xf32> to vector<4x8x16xf32>
    %76 = arith.mulf %71, %75 : vector<4x8x16xf32>
    %77 = arith.truncf %76 : vector<4x8x16xf32> to vector<4x8x16xbf16>
    "tpu.trace_start"() <{level = 10 : i32, message = "hqk,hkd->hqd"}> : () -> ()
    %cst_27 = arith.constant dense<0.000000e+00> : vector<4x8x32xf32>
    %78 = tpu.matmul %77, %62, %cst_27 {dimension_numbers = #tpu.dot_dimension_numbers<[2], [1], [1], [2], [0, 0, 0, 1, 1, 2], [0], [0]>} : vector<4x8x16xbf16>, vector<4x16x32xbf16>, vector<4x8x32xf32> -> vector<4x8x32xf32>
    "tpu.trace_stop"() : () -> ()
    %79 = vector.extract_strided_slice %78 {offsets = [0, 0, 0], sizes = [1, 8, 32], strides = [1, 1, 1]} : vector<4x8x32xf32> to vector<1x8x32xf32>
    %80 = vector.shape_cast %79 : vector<1x8x32xf32> to vector<8x32xf32>
    %81 = vector.extract_strided_slice %78 {offsets = [1, 0, 0], sizes = [1, 8, 32], strides = [1, 1, 1]} : vector<4x8x32xf32> to vector<1x8x32xf32>
    %82 = vector.shape_cast %81 : vector<1x8x32xf32> to vector<8x32xf32>
    %83 = vector.extract_strided_slice %78 {offsets = [2, 0, 0], sizes = [1, 8, 32], strides = [1, 1, 1]} : vector<4x8x32xf32> to vector<1x8x32xf32>
    %84 = vector.shape_cast %83 : vector<1x8x32xf32> to vector<8x32xf32>
    %85 = vector.extract_strided_slice %78 {offsets = [3, 0, 0], sizes = [1, 8, 32], strides = [1, 1, 1]} : vector<4x8x32xf32> to vector<1x8x32xf32>
    %86 = vector.shape_cast %85 : vector<1x8x32xf32> to vector<8x32xf32>
    %87 = tpu.concatenate %80, %82, %84, %86 in 1 : vector<8x32xf32>, vector<8x32xf32>, vector<8x32xf32>, vector<8x32xf32> -> vector<8x128xf32>
    %88 = arith.truncf %87 : vector<8x128xf32> to vector<8x128xbf16>
    %c0_28 = arith.constant 0 : index
    %c0_29 = arith.constant 0 : index
    %89 = vector.load %arg10[%c0_28, %c0_29] : memref<128x128xbf16, #tpu.memory_space<vmem>>, vector<128x128xbf16>
    %cst_30 = arith.constant dense<0.000000e+00> : vector<8x128xf32>
    %90 = tpu.matmul %88, %89, %cst_30 {dimension_numbers = #tpu.dot_dimension_numbers<[1], [0], [0], [1], [0, 0, 1, 1], [], []>} : vector<8x128xbf16>, vector<128x128xbf16>, vector<8x128xf32> -> vector<8x128xf32>
    %c0_31 = arith.constant 0 : index
    %c0_32 = arith.constant 0 : index
    %91 = vector.load %arg11[%c0_31, %c0_32] : memref<1x128xbf16, #tpu.memory_space<vmem>>, vector<1x128xbf16>
    %92 = arith.extf %91 : vector<1x128xbf16> to vector<1x128xf32>
    %93 = vector.broadcast %92 : vector<1x128xf32> to vector<8x128xf32>
    %94 = arith.addf %90, %93 : vector<8x128xf32>
    %95 = arith.extf %6 : vector<8x128xbf16> to vector<8x128xf32>
    %96 = arith.addf %95, %94 : vector<8x128xf32>
    %c0_33 = arith.constant 0 : index
    %c0_34 = arith.constant 0 : index
    %97 = vector.load %arg12[%c0_33, %c0_34] : memref<1x128xbf16, #tpu.memory_space<vmem>>, vector<1x128xbf16>
    %98 = arith.extf %97 : vector<1x128xbf16> to vector<1x128xf32>
    %c0_35 = arith.constant 0 : index
    %c0_36 = arith.constant 0 : index
    %99 = vector.load %arg13[%c0_35, %c0_36] : memref<1x128xbf16, #tpu.memory_space<vmem>>, vector<1x128xbf16>
    %100 = arith.extf %99 : vector<1x128xbf16> to vector<1x128xf32>
    %cst_37 = arith.constant dense<0.000000e+00> : vector<8xf32>
    %101 = vector.multi_reduction <add>, %96, %cst_37 [1] : vector<8x128xf32> to vector<8xf32>
    %102 = vector.shape_cast %101 : vector<8xf32> to vector<8x1xf32>
    %cst_38 = arith.constant 1.280000e+02 : f32
    %103 = vector.broadcast %cst_38 : f32 to vector<8x1xf32>
    %104 = arith.divf %102, %103 : vector<8x1xf32>
    %105 = vector.broadcast %104 : vector<8x1xf32> to vector<8x128xf32>
    %106 = arith.subf %96, %105 : vector<8x128xf32>
    %107 = arith.mulf %106, %106 : vector<8x128xf32>
    %cst_39 = arith.constant dense<0.000000e+00> : vector<8xf32>
    %108 = vector.multi_reduction <add>, %107, %cst_39 [1] : vector<8x128xf32> to vector<8xf32>
    %109 = vector.shape_cast %108 : vector<8xf32> to vector<8x1xf32>
    %cst_40 = arith.constant 1.280000e+02 : f32
    %110 = vector.broadcast %cst_40 : f32 to vector<8x1xf32>
    %111 = arith.divf %109, %110 : vector<8x1xf32>
    %112 = vector.broadcast %104 : vector<8x1xf32> to vector<8x128xf32>
    %113 = arith.subf %96, %112 : vector<8x128xf32>
    %cst_41 = arith.constant 9.99999974E-6 : f32
    %114 = vector.broadcast %cst_41 : f32 to vector<8x1xf32>
    %115 = arith.addf %111, %114 : vector<8x1xf32>
    %116 = math.rsqrt %115 : vector<8x1xf32>
    %117 = vector.broadcast %116 : vector<8x1xf32> to vector<8x128xf32>
    %118 = arith.mulf %113, %117 : vector<8x128xf32>
    %119 = vector.broadcast %98 : vector<1x128xf32> to vector<8x128xf32>
    %120 = arith.mulf %118, %119 : vector<8x128xf32>
    %121 = vector.broadcast %100 : vector<1x128xf32> to vector<8x128xf32>
    %122 = arith.addf %120, %121 : vector<8x128xf32>
    %123 = arith.truncf %122 : vector<8x128xf32> to vector<8x128xbf16>
    %c0_42 = arith.constant 0 : index
    %c0_43 = arith.constant 0 : index
    %124 = vector.load %arg14[%c0_42, %c0_43] : memref<128x256xbf16, #tpu.memory_space<vmem>>, vector<128x256xbf16>
    %cst_44 = arith.constant dense<0.000000e+00> : vector<8x256xf32>
    %125 = tpu.matmul %123, %124, %cst_44 {dimension_numbers = #tpu.dot_dimension_numbers<[1], [0], [0], [1], [0, 0, 1, 1], [], []>} : vector<8x128xbf16>, vector<128x256xbf16>, vector<8x256xf32> -> vector<8x256xf32>
    %c0_45 = arith.constant 0 : index
    %c0_46 = arith.constant 0 : index
    %126 = vector.load %arg15[%c0_45, %c0_46] : memref<1x256xbf16, #tpu.memory_space<vmem>>, vector<1x256xbf16>
    %127 = arith.extf %126 : vector<1x256xbf16> to vector<1x256xf32>
    %128 = vector.broadcast %127 : vector<1x256xf32> to vector<8x256xf32>
    %129 = arith.addf %125, %128 : vector<8x256xf32>
    %cst_47 = arith.constant 0.000000e+00 : f32
    %130 = vector.broadcast %cst_47 : f32 to vector<8x256xf32>
    %131 = arith.maximumf %129, %130 : vector<8x256xf32>
    %132 = arith.truncf %131 : vector<8x256xf32> to vector<8x256xbf16>
    %c0_48 = arith.constant 0 : index
    %c0_49 = arith.constant 0 : index
    %133 = vector.load %arg16[%c0_48, %c0_49] : memref<256x128xbf16, #tpu.memory_space<vmem>>, vector<256x128xbf16>
    %cst_50 = arith.constant dense<0.000000e+00> : vector<8x128xf32>
    %134 = tpu.matmul %132, %133, %cst_50 {dimension_numbers = #tpu.dot_dimension_numbers<[1], [0], [0], [1], [0, 0, 1, 1], [], []>} : vector<8x256xbf16>, vector<256x128xbf16>, vector<8x128xf32> -> vector<8x128xf32>
    %c0_51 = arith.constant 0 : index
    %c0_52 = arith.constant 0 : index
    %135 = vector.load %arg17[%c0_51, %c0_52] : memref<1x128xbf16, #tpu.memory_space<vmem>>, vector<1x128xbf16>
    %136 = arith.extf %135 : vector<1x128xbf16> to vector<1x128xf32>
    %137 = vector.broadcast %136 : vector<1x128xf32> to vector<8x128xf32>
    %138 = arith.addf %134, %137 : vector<8x128xf32>
    %139 = arith.addf %122, %138 : vector<8x128xf32>
    %c0_53 = arith.constant 0 : index
    %c0_54 = arith.constant 0 : index
    %140 = vector.load %arg18[%c0_53, %c0_54] : memref<1x128xbf16, #tpu.memory_space<vmem>>, vector<1x128xbf16>
    %141 = arith.extf %140 : vector<1x128xbf16> to vector<1x128xf32>
    %c0_55 = arith.constant 0 : index
    %c0_56 = arith.constant 0 : index
    %142 = vector.load %arg19[%c0_55, %c0_56] : memref<1x128xbf16, #tpu.memory_space<vmem>>, vector<1x128xbf16>
    %143 = arith.extf %142 : vector<1x128xbf16> to vector<1x128xf32>
    %cst_57 = arith.constant dense<0.000000e+00> : vector<8xf32>
    %144 = vector.multi_reduction <add>, %139, %cst_57 [1] : vector<8x128xf32> to vector<8xf32>
    %145 = vector.shape_cast %144 : vector<8xf32> to vector<8x1xf32>
    %cst_58 = arith.constant 1.280000e+02 : f32
    %146 = vector.broadcast %cst_58 : f32 to vector<8x1xf32>
    %147 = arith.divf %145, %146 : vector<8x1xf32>
    %148 = vector.broadcast %147 : vector<8x1xf32> to vector<8x128xf32>
    %149 = arith.subf %139, %148 : vector<8x128xf32>
    %150 = arith.mulf %149, %149 : vector<8x128xf32>
    %cst_59 = arith.constant dense<0.000000e+00> : vector<8xf32>
    %151 = vector.multi_reduction <add>, %150, %cst_59 [1] : vector<8x128xf32> to vector<8xf32>
    %152 = vector.shape_cast %151 : vector<8xf32> to vector<8x1xf32>
    %cst_60 = arith.constant 1.280000e+02 : f32
    %153 = vector.broadcast %cst_60 : f32 to vector<8x1xf32>
    %154 = arith.divf %152, %153 : vector<8x1xf32>
    %155 = vector.broadcast %147 : vector<8x1xf32> to vector<8x128xf32>
    %156 = arith.subf %139, %155 : vector<8x128xf32>
    %cst_61 = arith.constant 9.99999974E-6 : f32
    %157 = vector.broadcast %cst_61 : f32 to vector<8x1xf32>
    %158 = arith.addf %154, %157 : vector<8x1xf32>
    %159 = math.rsqrt %158 : vector<8x1xf32>
    %160 = vector.broadcast %159 : vector<8x1xf32> to vector<8x128xf32>
    %161 = arith.mulf %156, %160 : vector<8x128xf32>
    %162 = vector.broadcast %141 : vector<1x128xf32> to vector<8x128xf32>
    %163 = arith.mulf %161, %162 : vector<8x128xf32>
    %164 = vector.broadcast %143 : vector<1x128xf32> to vector<8x128xf32>
    %165 = arith.addf %163, %164 : vector<8x128xf32>
    %166 = arith.truncf %165 : vector<8x128xf32> to vector<8x128xbf16>
    %c0_62 = arith.constant 0 : index
    %c0_63 = arith.constant 0 : index
    %c0_64 = arith.constant 0 : index
    %167 = vector.load %arg20[%c0_62, %c0_63, %c0_64] : memref<1x8x128xbf16, #tpu.memory_space<vmem>>, vector<1x8x128xbf16>
    %168 = vector.shape_cast %167 : vector<1x8x128xbf16> to vector<8x128xbf16>
    %169 = vector.shape_cast %166 : vector<8x128xbf16> to vector<1x8x128xbf16>
    tpu.vector_store %arg20[%c0_62, %c0_63, %c0_64], %169 {strides = array<i32>} : memref<1x8x128xbf16, #tpu.memory_space<vmem>>, vector<1x8x128xbf16>,
    return
  }
  func.func @transform_0(%arg0: i32, %arg1: i32) -> (i32, i32, i32) {
    %c0_i32 = arith.constant 0 : i32
    %c0_i32_0 = arith.constant 0 : i32
    %c0_i32_1 = arith.constant 0 : i32
    return %arg0, %c0_i32, %c0_i32_0 : i32, i32, i32
  }
  func.func @transform_1(%arg0: i32, %arg1: i32) -> (i32, i32, i32) {
    %c0_i32 = arith.constant 0 : i32
    %c0_i32_0 = arith.constant 0 : i32
    %c0_i32_1 = arith.constant 0 : i32
    return %arg0, %c0_i32, %c0_i32_0 : i32, i32, i32
  }
  func.func @transform_2(%arg0: i32, %arg1: i32) -> (i32, i32) {
    %c0_i32 = arith.constant 0 : i32
    %c0_i32_0 = arith.constant 0 : i32
    %c0_i32_1 = arith.constant 0 : i32
    return %c0_i32, %c0_i32_0 : i32, i32
  }
  func.func @transform_3(%arg0: i32, %arg1: i32) -> (i32, i32) {
    %c0_i32 = arith.constant 0 : i32
    %c0_i32_0 = arith.constant 0 : i32
    %c0_i32_1 = arith.constant 0 : i32
    return %c0_i32, %c0_i32_0 : i32, i32
  }
  func.func @transform_4(%arg0: i32, %arg1: i32) -> (i32, i32) {
    %c0_i32 = arith.constant 0 : i32
    %c0_i32_0 = arith.constant 0 : i32
    %c0_i32_1 = arith.constant 0 : i32
    return %c0_i32, %c0_i32_0 : i32, i32
  }
  func.func @transform_5(%arg0: i32, %arg1: i32) -> (i32, i32) {
    %c0_i32 = arith.constant 0 : i32
    %c0_i32_0 = arith.constant 0 : i32
    %c0_i32_1 = arith.constant 0 : i32
    return %c0_i32, %c0_i32_0 : i32, i32
  }
  func.func @transform_6(%arg0: i32, %arg1: i32) -> (i32, i32) {
    %c0_i32 = arith.constant 0 : i32
    %c0_i32_0 = arith.constant 0 : i32
    %c0_i32_1 = arith.constant 0 : i32
    return %c0_i32, %c0_i32_0 : i32, i32
  }
  func.func @transform_7(%arg0: i32, %arg1: i32) -> (i32, i32) {
    %c0_i32 = arith.constant 0 : i32
    %c0_i32_0 = arith.constant 0 : i32
    %c0_i32_1 = arith.constant 0 : i32
    return %c0_i32, %c0_i32_0 : i32, i32
  }
  func.func @transform_8(%arg0: i32, %arg1: i32) -> (i32, i32) {
    %c0_i32 = arith.constant 0 : i32
    %c0_i32_0 = arith.constant 0 : i32
    %c0_i32_1 = arith.constant 0 : i32
    return %c0_i32, %c0_i32_0 : i32, i32
  }
  func.func @transform_9(%arg0: i32, %arg1: i32) -> (i32, i32) {
    %c0_i32 = arith.constant 0 : i32
    %c0_i32_0 = arith.constant 0 : i32
    %c0_i32_1 = arith.constant 0 : i32
    return %c0_i32, %c0_i32_0 : i32, i32
  }
  func.func @transform_10(%arg0: i32, %arg1: i32) -> (i32, i32) {
    %c0_i32 = arith.constant 0 : i32
    %c0_i32_0 = arith.constant 0 : i32
    %c0_i32_1 = arith.constant 0 : i32
    return %c0_i32, %c0_i32_0 : i32, i32
  }
  func.func @transform_11(%arg0: i32, %arg1: i32) -> (i32, i32) {
    %c0_i32 = arith.constant 0 : i32
    %c0_i32_0 = arith.constant 0 : i32
    %c0_i32_1 = arith.constant 0 : i32
    return %c0_i32, %c0_i32_0 : i32, i32
  }
  func.func @transform_12(%arg0: i32, %arg1: i32) -> (i32, i32) {
    %c0_i32 = arith.constant 0 : i32
    %c0_i32_0 = arith.constant 0 : i32
    %c0_i32_1 = arith.constant 0 : i32
    return %c0_i32, %c0_i32_0 : i32, i32
  }
  func.func @transform_13(%arg0: i32, %arg1: i32) -> (i32, i32) {
    %c0_i32 = arith.constant 0 : i32
    %c0_i32_0 = arith.constant 0 : i32
    %c0_i32_1 = arith.constant 0 : i32
    return %c0_i32, %c0_i32_0 : i32, i32
  }
  func.func @transform_14(%arg0: i32, %arg1: i32) -> (i32, i32) {
    %c0_i32 = arith.constant 0 : i32
    %c0_i32_0 = arith.constant 0 : i32
    %c0_i32_1 = arith.constant 0 : i32
    return %c0_i32, %c0_i32_0 : i32, i32
  }
  func.func @transform_15(%arg0: i32, %arg1: i32) -> (i32, i32) {
    %c0_i32 = arith.constant 0 : i32
    %c0_i32_0 = arith.constant 0 : i32
    %c0_i32_1 = arith.constant 0 : i32
    return %c0_i32, %c0_i32_0 : i32, i32
  }
  func.func @transform_16(%arg0: i32, %arg1: i32) -> (i32, i32) {
    %c0_i32 = arith.constant 0 : i32
    %c0_i32_0 = arith.constant 0 : i32
    %c0_i32_1 = arith.constant 0 : i32
    return %c0_i32, %c0_i32_0 : i32, i32
  }
  func.func @transform_17(%arg0: i32, %arg1: i32) -> (i32, i32) {
    %c0_i32 = arith.constant 0 : i32
    %c0_i32_0 = arith.constant 0 : i32
    %c0_i32_1 = arith.constant 0 : i32
    return %c0_i32, %c0_i32_0 : i32, i32
  }
  func.func @transform_18(%arg0: i32, %arg1: i32) -> (i32, i32, i32) {
    %c0_i32 = arith.constant 0 : i32
    %c0_i32_0 = arith.constant 0 : i32
    return %arg0, %arg1, %c0_i32 : i32, i32, i32
  }
}

</mosaic_0001>

<bundles_post_ra>
// kernel: tpu_custom_call.1
= control target key start
LH: loop header
LB: loop body
LE: loop exit
PB: predicated region body
PF: predicated region fallthrough
CT: control target
= control target key end

     0   :  { %s3856_s0 = inlined_call_operand.hbm [shape: bf16[2,16,128], index: 0, kind: input, shape index: {}]   ;;  %s3857_s1 = inlined_call_operand.vmem [shape: f32[2,1,16], index: 1, kind: input, shape index: {}]   ;;  %s3858_s2 = inlined_call_operand.hbm [shape: bf16[128,128], index: 2, kind: input, shape index: {}]   ;;  %s3859_s3 = inlined_call_operand.vmem [shape: bf16[1,128], index: 3, kind: input, shape index: {}]   ;;  %s3860_s4 = inlined_call_operand.hbm [shape: bf16[128,128], index: 4, kind: input, shape index: {}]   ;;  %s3861_s5 = inlined_call_operand.vmem [shape: bf16[1,128], index: 5, kind: input, shape index: {}]   ;;  %s3862_s6 = inlined_call_operand.hbm [shape: bf16[128,128], index: 6, kind: input, shape index: {}]   ;;  %s3863_s7 = inlined_call_operand.vmem [shape: bf16[1,128], index: 7, kind: input, shape index: {}]   ;;  %s3864_s8 = inlined_call_operand.hbm [shape: bf16[128,128], index: 8, kind: input, shape index: {}]   ;;  %s3865_s9 = inlined_call_operand.vmem [shape: bf16[1,128], index: 9, kind: input, shape index: {}]   ;;  %s3866_s10 = inlined_call_operand.vmem [shape: bf16[1,128], index: 10, kind: input, shape index: {}]   ;;  %s3867_s11 = inlined_call_operand.vmem [shape: bf16[1,128], index: 11, kind: input, shape index: {}]   ;;  %s3868_s12 = inlined_call_operand.hbm [shape: bf16[128,256], index: 12, kind: input, shape index: {}]   ;;  %s3869_s13 = inlined_call_operand.vmem [shape: bf16[1,256], index: 13, kind: input, shape index: {}]   ;;  %s3870_s14 = inlined_call_operand.hbm [shape: bf16[256,128], index: 14, kind: input, shape index: {}]   ;;  %s3871_s15 = inlined_call_operand.vmem [shape: bf16[1,128], index: 15, kind: input, shape index: {}]   ;;  %s3872_s16 = inlined_call_operand.vmem [shape: bf16[1,128], index: 16, kind: input, shape index: {}]   ;;  %s3873_s17 = inlined_call_operand.vmem [shape: bf16[1,128], index: 17, kind: input, shape index: {}]   ;;  %s3874_s18 = inlined_call_operand.hbm [shape: bf16[2,16,128], index: 18, kind: output, shape index: {}]  }
   0x1   :  { %3891 = sst [smem:[#allocation25_spill]] %s3856_s0 }
   0x2   :  { %3892 = sst [smem:[#allocation26_spill]] %s3857_s1 }
   0x3   :  { %3893 = sst [smem:[#allocation27_spill]] %s3858_s2 }
   0x4   :  { %3894 = sst [smem:[#allocation28_spill]] %s3859_s3 }
   0x5   :  { %3895 = sst [smem:[#allocation29_spill]] %s3860_s4 }
   0x6   :  { %3896 = sst [smem:[#allocation30_spill]] %s3861_s5 }
   0x7   :  { %3897 = sst [smem:[#allocation31_spill]] %s3862_s6 }
   0x8   :  { %3898 = sst [smem:[#allocation32_spill]] %s3863_s7 }
   0x9   :  { %3899 = sst [smem:[#allocation33_spill]] %s3864_s8 }
   0xa   :  { %3900 = sst [smem:[#allocation34_spill]] %s3865_s9 }
   0xb   :  { %3901 = sst [smem:[#allocation35_spill]] %s3866_s10 }
   0xc   :  { %3902 = sst [smem:[#allocation36_spill]] %s3867_s11 }
   0xd   :  { %3903 = sst [smem:[#allocation37_spill]] %s3868_s12 }
   0xe   :  { %3904 = sst [smem:[#allocation38_spill]] %s3869_s13 }
   0xf   :  { %3905 = sst [smem:[#allocation39_spill]] %s3871_s15 }
  0x10   :  { %3906 = sst [smem:[#allocation40_spill]] %s3872_s16 }
  0x11   :  { %3907 = sst [smem:[#allocation41_spill]] %s3873_s17 }
  0x12   :  { %3908 = sst [smem:[#allocation42_spill]] %s3874_s18 }
  0x13   :  { %23 = vsyncpa [#allocation3], 0 }
  0x14   :  { %25 = vsyncpa [#allocation3 + $0x1], 0 }
  0x15   :  { %26 = vsyncpa [#allocation6], 0 }
  0x16   :  { %27 = vsyncpa [#allocation9], 0 }
  0x17   :  { %28 = vsyncpa [#allocation12], 0 }
  0x18   :  { %29 = vsyncpa [#allocation4], 0 }
  0x19   :  { %31 = vsyncpa [#allocation4 + $0x1], 0  ;;  %s3271_s27 = smov 0   ;;  %s3273_s28 = smov 0  }
  0x1a   :  { %s3275_s29 = smov 0   ;;  %s3277_s30 = smov 0  }
  0x1b   :  { %s3279_s0 = smov 0   ;;  %s3281_s19 = smov 0  }
  0x1c   :  { %s3283_s1 = smov 0   ;;  %s3285_s20 = smov 0  }
  0x1d   :  { %s3287_s21 = smov 0   ;;  %s3289_s22 = smov 0  }
  0x1e   :  { %s3291_s2 = smov 0  }
  0x1f LB: > { %3909 = sst [smem:[#allocation20_spill]] %s3116_s27  ;;  %s2222_s23 = sadd.s32 4294967295, %s3156_s2   ;;  %s3156_s2 = sphi %s3291_s2, %s37_s2   ;;  %s3152_s22 = sphi %s3289_s22, %s3967_s22   ;;  %s3148_s21 = sphi %s3287_s21, %s3966_s21   ;;  %s3144_s20 = sphi %s3285_s20, %s3965_s20   ;;  %s3140_s1 = sphi %s3283_s1, %s3964_s1   ;;  %s3136_s19 = sphi %s3281_s19, %s3963_s19   ;;  %s3132_s0 = sphi %s3279_s0, %s3962_s0   ;;  %s3128_s30 = sphi %s3277_s30, %s3961_s30   ;;  %s3124_s29 = sphi %s3275_s29, %s3960_s29   ;;  %s3120_s28 = sphi %s3273_s28, %s3959_s28   ;;  %s3116_s27 = sphi %s3271_s27, %s3958_s27  }
  0x20   : > { %3910 = sst [smem:[#allocation21_spill]] %s3140_s1  ;;  %p2224_p0 = scmp.ge.s32.totalorder %s3156_s2, 1 }
  0x21   : > { %3911 = sst [smem:[#allocation22_spill]] %s3144_s20  ;;  %p3328_p1 = scmp.eq.s32.totalorder %s2222_s23, 0 }
  0x22   : > { %p3332_p2 = scmp.eq.s32.totalorder %s2222_s23, 3  ;;  %p470_p3 = scmp.lt.s32.totalorder %s3156_s2, 5 }
  0x23   : > { %s3912_s24 = scalar_select %p3328_p1, 1, 0 }
  0x24   : > { %s3913_s25 = scalar_select %p3332_p2, 1, 0 }
  0x25   : > { %p3337_p4 = pnand %p2224_p0, %p470_p3  ;;  %s3158_s18 = smov [#allocation5]  }
  0x26   : > { %3914 = sst [smem:[#allocation23_spill]] %s3913_s25  ;;  %s482_s17 = sshll.u32 %s3158_s18, 4  ;;  %s3341_s17 = int_to_ptr.vmem [resolvable:$true] %s482_s17 }
  0x27   : > { %s3915_s26 = scalar_select %p3337_p4, 1, 0 }
  0x28   : > { %p2556_p5 = pneg %p3337_p4  ;;  %s3159_s23 = smov [#allocation8]  }
  0x29   : > { %3916 = sst [smem:[#allocation24_spill]] %s3915_s26  ;;  %s514_s15 = sshll.u32 %s3159_s23, 4  ;;  %s3351_s15 = int_to_ptr.vmem [resolvable:$true] %s514_s15 }
  0x2a   : > { %p3347_p6 = pnand %p2556_p5, %p3328_p1  ;;  %s3160_s13 = smov [#allocation11]  }
  0x2b   : > { %s552_s11 = sshll.u32 %s3160_s13, 4  ;;  %s3918_s9 = sld [smem:[#allocation27_spill]]  ;;  %s3353_s11 = int_to_ptr.vmem [resolvable:$true] %s552_s11 }
  0x2c   : > { %p3363_p8 = pneg %p3347_p6 }
  0x31   : > { %s2824_s7 = scalar_lea.hbm %s3918_s9, 1024 }
  0x32   : > { %p2825_p7 = scmp.ne.s32.totalorder %s3918_s9, %s2824_s7  ;;  %p2831_p11 = scmp.lt.u32.totalorder %s2824_s7, %s3918_s9 }
  0x34   : > { %p2827_p9 = pnand %p3363_p8, %p2825_p7 }
  0x36   : > { %p2828_p10 = pneg %p2827_p9 }
  0x38   : > { %p2833_p12 = pnand %p2831_p11, %p2828_p10 }
  0x3a   : > { %2836 = shalt.err (!%p2833_p12)
}
  0x3b   : > { %s2837_s3 = scalar_lea.vmem %s3341_s17, 1024  ;;  %p2845_p5 = scmp.lt.s32.totalorder %s3341_s17, %s3341_s17 }
  0x3c   : > { %p2838_p13 = scmp.ne.s32.totalorder %s3341_s17, %s2837_s3  ;;  %p2846_p4 = scmp.lt.s32.totalorder %s2837_s3, %s2837_s3 }
  0x3e   : > { %p2840_p0 = pnand %p2838_p13, %p3363_p8  ;;  %p2847_p7 = por %p2846_p4, %p2845_p5 }
  0x40   : > { %p2841_p3 = pneg %p2840_p0 }
  0x42   : > { %p2848_p9 = pnand %p2847_p7, %p2841_p3 }
  0x44   : > { %2851 = shalt.err (!%p2848_p9)
}
  0x45   : > { %s3883_s10 = smov 64   ;;  %s3885_s7 = smov 4  }
  0x46   : > { %2559 = dma.hbm_to_vmem [thread:$0]  (!%p3347_p6), %s3918_s9, 1024, %s3341_s17, [#allocation6], %s3883_s10, %s3883_s10, %s3885_s7  }
  0x47   : > { %s3920_s6 = sld [smem:[#allocation31_spill]] }
  0x4d   : > { %s2852_s3 = scalar_lea.hbm %s3920_s6, 1024 }
  0x4e   : > { %p2853_p4 = scmp.ne.s32.totalorder %s3920_s6, %s2852_s3  ;;  %p2859_p12 = scmp.lt.u32.totalorder %s2852_s3, %s3920_s6 }
  0x50   : > { %p2855_p10 = pnand %p2853_p4, %p3363_p8 }
  0x52   : > { %p2856_p11 = pneg %p2855_p10 }
  0x54   : > { %p2861_p13 = pnand %p2859_p12, %p2856_p11 }
  0x56   : > { %2864 = shalt.err (!%p2861_p13)
}
  0x57   : > { %s2865_s17 = scalar_lea.vmem %s3351_s15, 1024  ;;  %p2873_p7 = scmp.lt.s32.totalorder %s3351_s15, %s3351_s15 }
  0x58   : > { %p2866_p0 = scmp.ne.s32.totalorder %s3351_s15, %s2865_s17  ;;  %p2874_p9 = scmp.lt.s32.totalorder %s2865_s17, %s2865_s17 }
  0x5a   : > { %p2868_p3 = pnand %p2866_p0, %p3363_p8  ;;  %p2875_p4 = por %p2874_p9, %p2873_p7 }
  0x5c   : > { %p2869_p5 = pneg %p2868_p3 }
  0x5e   : > { %p2876_p10 = pnand %p2875_p4, %p2869_p5 }
  0x60   : > { %2879 = shalt.err (!%p2876_p10)
}
  0x61   : > { %2565 = dma.hbm_to_vmem [thread:$0]  (!%p3347_p6), %s3920_s6, 1024, %s3351_s15, [#allocation9], %s3883_s10, %s3883_s10, %s3885_s7  }
  0x62   : > { %s3921_s12 = sld [smem:[#allocation37_spill]] }
  0x68   : > { %s2880_s20 = scalar_lea.hbm %s3921_s12, 2048 }
  0x69   : > { %p2881_p11 = scmp.ne.s32.totalorder %s3921_s12, %s2880_s20  ;;  %p2887_p0 = scmp.lt.u32.totalorder %s2880_s20, %s3921_s12 }
  0x6b   : > { %p2883_p12 = pnand %p2881_p11, %p3363_p8 }
  0x6d   : > { %p2884_p13 = pneg %p2883_p12 }
  0x6f   : > { %p2889_p3 = pnand %p2887_p0, %p2884_p13 }
  0x71   : > { %2892 = shalt.err (!%p2889_p3)
}
  0x72   : > { %s2893_s15 = scalar_lea.vmem %s3353_s11, 2048  ;;  %p2901_p4 = scmp.lt.s32.totalorder %s3353_s11, %s3353_s11 }
  0x73   : > { %p2894_p5 = scmp.ne.s32.totalorder %s3353_s11, %s2893_s15  ;;  %p2902_p10 = scmp.lt.s32.totalorder %s2893_s15, %s2893_s15 }
  0x75   : > { %p2896_p7 = pnand %p2894_p5, %p3363_p8  ;;  %p2903_p11 = por %p2902_p10, %p2901_p4 }
  0x77   : > { %p2897_p9 = pneg %p2896_p7 }
  0x79   : > { %p2904_p12 = pnand %p2903_p11, %p2897_p9 }
  0x7b   : > { %2907 = shalt.err (!%p2904_p12)
}
  0x7c   : > { %s3163_s17 = smov 128   ;;  %s3164_s27 = smov 8  }
  0x7d   : > { %2571 = dma.hbm_to_vmem [thread:$0]  (!%p3347_p6), %s3921_s12, 2048, %s3353_s11, [#allocation12], %s3163_s17, %s3163_s17, %s3164_s27  }
  0x7e   : > { %s3165_s26 = smov [#allocation7]   ;;  %s3166_s18 = smov [#allocation10]  }
  0x7f   : > { %s498_s20 = sshll.u32 %s3165_s26, 4  ;;  %s530_s13 = sshll.u32 %s3166_s18, 4  ;;  %s499_s20 = int_to_ptr.vmem [resolvable:$true] %s498_s20  ;;  %s3436_s13 = int_to_ptr.vmem [resolvable:$true] %s530_s13 }
  0x80   : > { %s3922_s4 = sld [smem:[#allocation29_spill]] }
  0x86   : > { %s2908_s15 = scalar_lea.hbm %s3922_s4, 1024 }
  0x87   : > { %p2909_p13 = scmp.ne.s32.totalorder %s3922_s4, %s2908_s15  ;;  %p2915_p5 = scmp.lt.u32.totalorder %s2908_s15, %s3922_s4 }
  0x89   : > { %p2911_p0 = pnand %p2909_p13, %p3363_p8 }
  0x8b   : > { %p2912_p3 = pneg %p2911_p0 }
  0x8d   : > { %p2917_p7 = pnand %p2915_p5, %p2912_p3 }
  0x8f   : > { %2920 = shalt.err (!%p2917_p7)
}
  0x90   : > { %s2921_s17 = scalar_lea.vmem %s499_s20, 1024  ;;  %p2929_p11 = scmp.lt.s32.totalorder %s499_s20, %s499_s20 }
  0x91   : > { %p2922_p9 = scmp.ne.s32.totalorder %s499_s20, %s2921_s17  ;;  %p2930_p12 = scmp.lt.s32.totalorder %s2921_s17, %s2921_s17 }
  0x93   : > { %p2924_p4 = pnand %p2922_p9, %p3363_p8  ;;  %p2931_p2 = por %p2930_p12, %p2929_p11 }
  0x95   : > { %p2925_p10 = pneg %p2924_p4 }
  0x97   : > { %p2932_p1 = pnand %p2931_p2, %p2925_p10 }
  0x99   : > { %2935 = shalt.err (!%p2932_p1)
}
  0x9a   : > { %s3923_s10 = smov 4   ;;  %s3924_s7 = smov 64  }
  0x9b   : > { %2562 = dma.hbm_to_vmem [thread:$0]  (!%p3347_p6), %s3922_s4, 1024, %s499_s20, [#allocation6], %s3924_s7, %s3924_s7, %s3923_s10  }
  0x9c   : > { %s3925_s8 = sld [smem:[#allocation33_spill]] }
  0xa2   : > { %s2936_s23 = scalar_lea.hbm %s3925_s8, 1024 }
  0xa3   : > { %p2937_p13 = scmp.ne.s32.totalorder %s3925_s8, %s2936_s23  ;;  %p2943_p0 = scmp.lt.u32.totalorder %s2936_s23, %s3925_s8 }
  0xa5   : > { %p2939_p1 = pnand %p2937_p13, %p3363_p8 }
  0xa7   : > { %p2940_p2 = pneg %p2939_p1 }
  0xa9   : > { %p2945_p3 = pnand %p2943_p0, %p2940_p2 }
  0xab   : > { %2948 = shalt.err (!%p2945_p3)
}
  0xac   : > { %s2949_s20 = scalar_lea.vmem %s3436_s13, 1024  ;;  %p2957_p4 = scmp.lt.s32.totalorder %s3436_s13, %s3436_s13 }
  0xad   : > { %p2950_p5 = scmp.ne.s32.totalorder %s3436_s13, %s2949_s20  ;;  %p2958_p10 = scmp.lt.s32.totalorder %s2949_s20, %s2949_s20 }
  0xaf   : > { %p2952_p7 = pnand %p2950_p5, %p3363_p8  ;;  %p2959_p11 = por %p2958_p10, %p2957_p4 }
  0xb1   : > { %p2953_p9 = pneg %p2952_p7 }
  0xb3   : > { %p2960_p12 = pnand %p2959_p11, %p2953_p9 }
  0xb5   : > { %2963 = shalt.err (!%p2960_p12)
}
  0xb6   : > { %2568 = dma.hbm_to_vmem [thread:$0]  (!%p3347_p6), %s3925_s8, 1024, %s3436_s13, [#allocation9], %s3924_s7, %s3924_s7, %s3923_s10  }
  0xb7   : > { %s3167_s25 = smov [#allocation13]   ;;  %s2964_s3 = scalar_lea.hbm %s3870_s14, 2048 }
  0xb8   : > { %s568_s26 = sshll.u32 %s3167_s25, 4  ;;  %p2965_p13 = scmp.ne.s32.totalorder %s3870_s14, %s2964_s3  ;;  %s569_s26 = int_to_ptr.vmem [resolvable:$true] %s568_s26 }
  0xb9   : > { %p2971_p0 = scmp.lt.u32.totalorder %s2964_s3, %s3870_s14 }
  0xba   : > { %p2967_p1 = pnand %p2965_p13, %p3363_p8 }
  0xbc   : > { %p2968_p2 = pneg %p2967_p1 }
  0xbe   : > { %p2973_p3 = pnand %p2971_p0, %p2968_p2 }
  0xc0   : > { %2976 = shalt.err (!%p2973_p3)
}
  0xc1   : > { %s2977_s13 = scalar_lea.vmem %s569_s26, 2048  ;;  %p2985_p4 = scmp.lt.s32.totalorder %s569_s26, %s569_s26 }
  0xc2   : > { %p2978_p5 = scmp.ne.s32.totalorder %s569_s26, %s2977_s13  ;;  %p2986_p10 = scmp.lt.s32.totalorder %s2977_s13, %s2977_s13 }
  0xc4   : > { %p2980_p7 = pnand %p2978_p5, %p3363_p8  ;;  %p2987_p11 = por %p2986_p10, %p2985_p4 }
  0xc6   : > { %p2981_p9 = pneg %p2980_p7 }
  0xc8   : > { %p2988_p12 = pnand %p2987_p11, %p2981_p9 }
  0xca   : > { %2991 = shalt.err (!%p2988_p12)
}
  0xcb   : > { %2574 = dma.hbm_to_vmem [thread:$0]  (!%p3347_p6), %s3870_s14, 2048, %s569_s26, [#allocation12], %s3924_s7, %s3924_s7, %s3923_s10  }
  0xcc   : > { %s2223_s5 = sadd.s32 4294967294, %s3156_s2   ;;  %s46_s16 = sadd.s32 1, %s3148_s21 }
  0xcd   : > { %s3926_s25 = sld [smem:[#allocation20_spill]]  ;;  %s49_s18 = sadd.s32 1, %s3152_s22 }
  0xce   : > { %p47_p8 = scmp.ge.s32.totalorder %s46_s16, 2  ;;  %s56_s23 = sadd.s32 1, %s3136_s19 }
  0xcf   : > { %p63_p13 = scmp.ne.s32.totalorder %s3136_s19, %s3132_s0  ;;  %p64_p1 = scmp.eq.s32.totalorder %s3156_s2, 0 }
  0xd0   : > { %s3969_s16 = smov (%p47_p8, %s46_s16), 0  ;;  %s3927_s3 = sld [smem:[#allocation23_spill]] }
  0xd1   : > { %s3971_s18 = smov (!%p47_p8, %s49_s18), %s3152_s22  ;;  %p3516_p2 = por %p64_p1, %p63_p13 }
  0xd2   : > { %p69_p6 = scmp.ne.s32.totalorder %s3132_s0, %s3128_s30  ;;  %p51_p0 = scmp.ge.s32.totalorder %s3971_s18, 2 }
  0xd3   : > { %s442_s15 = ssub.s32 %s3148_s21, %s3969_s16  ;;  %p3929_p3 = scmp.ne.s32.totalorder %s3912_s24, 0 }
  0xd4   : > { %s446_s11 = sadd.s32 1, %s3124_s29  ;;  %s3973_s18 = smov (%p51_p0, %s3971_s18), 0 }
  0xd5   : > { %p3526_p5 = por %p3929_p3, %p69_p6  ;;  %p456_p7 = scmp.ne.s32.totalorder %s3124_s29, %s3120_s28 }
  0xd6   : > { %p462_p9 = scmp.ne.s32.totalorder %s3120_s28, %s3926_s25  ;;  %s53_s20 = ssub.s32 %s3152_s22, %s3973_s18 }
  0xd7   : > { %p463_p4 = scmp.eq.s32.totalorder %s2223_s5, 3  ;;  %p54_p10 = scmp.eq.s32.totalorder %s53_s20, 0 }
  0xd8   : > { %s443_s30 = sor.u32 %s442_s15, %s53_s20  ;;  %p3931_p12 = scmp.ne.s32.totalorder %s3927_s3, 0 }
  0xd9   : > { %p444_p11 = scmp.eq.s32.totalorder %s443_s30, 0  ;;  %p3551_p13 = por %p463_p4, %p462_p9 }
  0xda   : > { %p3541_p8 = por %p3931_p12, %p456_p7  ;;  %p2589_p1 = scmp.lt.s32.totalorder %s3156_s2, 4 }
  0xdb   : > { %s3546_s17 = scalar_select %p54_p10, %s3136_s19, %s56_s23  }
  0xdc   : > { %s3932_s13 = scalar_select %p3541_p8, 1, 0 }
  0xdd   : > { %s3549_s27 = scalar_select %p444_p11, %s3124_s29, %s446_s11  }
  0xde   : > { %s3933_s4 = scalar_select %p3551_p13, 1, 0 }
  0xdf   : > { %s591_s25 = sand.u32 1, %s3136_s19   ;;  %s2325_s6 = sshll.u32 %s3152_s22, 7 }
  0xe0   : > { %s2232_s5 = sshll.u32 %s591_s25, 3  ;;  %s3934_s20 = sld [smem:[#allocation25_spill]] }
  0xe1   : > { %s595_s23 = scalar_lea.vmem [#allocation2], %s2232_s5  ;;  %p3565_p6 = pnand %p2589_p1, %p3516_p2 }
  0xe2   : > { %s602_s11 = sshll.u32 %s595_s23, 4  ;;  %s3571_s12 = scalar_lea.sflag [#allocation3], %s591_s25  ;;  %s3569_s11 = int_to_ptr.vmem [resolvable:$true] %s602_s11 }
  0xe3   : > { %p2994_p3 = pneg %p3565_p6 }
  0xe6   : > { %s3935_s9 = smov %s3934_s20  ;;  %s3561_s3 = scalar_lea.hbm %s3934_s20, %s2325_s6 }
  0xe7   : > { %s2992_s8 = scalar_lea.hbm %s3561_s3, 128  ;;  %s2997_s5 = scalar_lea.hbm %s3935_s9, 256 }
  0xe8   : > { %p2993_p0 = scmp.ne.s32.totalorder %s3561_s3, %s2992_s8  ;;  %p2998_p2 = scmp.lt.u32.totalorder %s3561_s3, %s3935_s9 }
  0xe9   : > { %p2999_p4 = scmp.lt.u32.totalorder %s2997_s5, %s2992_s8  ;;  %p3001_p11 = scmp.lt.u32.totalorder %s2992_s8, %s3561_s3 }
  0xea   : > { %p2995_p7 = pnand %p2994_p3, %p2993_p0 }
  0xeb   : > { %p3000_p10 = por %p2999_p4, %p2998_p2 }
  0xec   : > { %p2996_p9 = pneg %p2995_p7 }
  0xed   : > { %p3002_p12 = por %p3001_p11, %p3000_p10 }
  0xef   : > { %p3003_p1 = pnand %p3002_p12, %p2996_p9 }
  0xf1   : > { %3006 = shalt.err (!%p3003_p1)
}
  0xf2   : > { %s3007_s25 = scalar_lea.vmem %s3569_s11, 128  ;;  %s3168_s23 = smov [#allocation2]  }
  0xf3   : > { %p3008_p0 = scmp.ne.s32.totalorder %s3569_s11, %s3007_s25  ;;  %s3012_s6 = sshll.u32 %s3168_s23, 4  ;;  %s3013_s6 = int_to_ptr.vmem [resolvable:$false] %s3012_s6 }
  0xf4   : > { %s3014_s26 = scalar_lea.vmem %s3013_s6, 256  ;;  %p3015_p8 = scmp.lt.s32.totalorder %s3569_s11, %s3013_s6 }
  0xf5   : > { %p3010_p7 = pnand %p3008_p0, %p2994_p3  ;;  %p3016_p2 = scmp.lt.s32.totalorder %s3014_s26, %s3007_s25 }
  0xf7   : > { %p3011_p13 = pneg %p3010_p7  ;;  %p3017_p4 = por %p3016_p2, %p3015_p8 }
  0xf9   : > { %p3018_p10 = pnand %p3017_p4, %p3011_p13 }
  0xfb   : > { %3021 = shalt.err (!%p3018_p10)
}
  0xfc   : > { %2578 = dma.hbm_to_vmem [thread:$0]  (!%p3565_p6), %s3561_s3, 128, %s3569_s11, %s3571_s12, %s3924_s7, %s3924_s7, %s3923_s10  }
  0xfd   : > { %s3937_s8 = sld [smem:[#allocation24_spill]] }
 0x103   : > { %p3938_p3 = scmp.ne.s32.totalorder %s3937_s8, 0 }
 0x104   : > { %s622_s5 = sand.u32 (!%p3938_p3), 1, %s3132_s0  }
 0x105   : > { %620 = sbr.rel (%p3938_p3) target bundleno = 2830 (0xb0e), region = 92  ;;  %s3605_s15 = sshll.u32 (!%p3938_p3), %s622_s5, 3 }
 0x106   : > { %s623_s20 = scalar_lea.sflag (!%p3938_p3), [#allocation3], %s622_s5  ;;  %s626_s25 = scalar_lea.vmem (!%p3938_p3), [#allocation2], %s3605_s15 }
 0x10c   : > { %3095 = dma.done.wait (%p3526_p5), %s623_s20, 128  }
 0x10d   : > { %3097 = vsyncadd (%p3526_p5), %s623_s20, 4294967168  ;;  %p3939_p8 = scmp.ne.s32.totalorder %s3912_s24, 0 }
 0x10f   : > { %3099 = dma.done.wait (%p3939_p8), [#allocation6], 2048  }
 0x110   : > { %3101 = vsyncadd (%p3939_p8), [#allocation6], 4294965248 }
 0x111   : > { %3103 = dma.done.wait (%p3939_p8), [#allocation9], 2048  }
 0x112   : > { %3105 = vsyncadd (%p3939_p8), [#allocation9], 4294965248 }
 0x113   : > { %3107 = dma.done.wait (%p3939_p8), [#allocation12], 4096  }
 0x114   : > { %3109 = vsyncadd (%p3939_p8), [#allocation12], 4294963200  ;;  %v3169_v0 = vmov 0.0   ;;  %vm3170_vm0 = vmmov 0   ;;  %v2731_v1 = vld [vmem:[#allocation7] sm:$0xff]   ;;  %v2732_v2 = vld [vmem:[#allocation7 + $0x8] sm:$0xff]   ;;  %v739_v19 = vlaneseq }
 0x115   : > { %2420 = vmatprep.subr.bf16.mxu1 %v3169_v0  ;;  %2400 = vmatprep.subr.bf16.mxu0 %v3169_v0  ;;  %s3940_s12 = sld [smem:[#allocation21_spill]]  ;;  %v2733_v3 = vld [vmem:[#allocation5] sm:$0xff]   ;;  %v2735_v4 = vld [vmem:[#allocation5 + $0x8] sm:$0xff]   ;;  %v2734_v5 = vld [vmem:[#allocation7 + $0x10] sm:$0xff]   ;;  %s3941_s30 = sld [smem:[#allocation30_spill]]  ;;  %vm1128_vm1 = vcmask 261120  }
 0x116   : > { %2436 = vmatprep.mubr.msk.bf16.mxu1 %vm3170_vm0, %v3169_v0  ;;  %2416 = vmatprep.mubr.msk.bf16.mxu0 %vm3170_vm0, %v3169_v0  ;;  %v2737_v6 = vld [vmem:[#allocation5 + $0x10] sm:$0xff]   ;;  %v2736_v7 = vld [vmem:[#allocation7 + $0x18] sm:$0xff]   ;;  %v2738_v9 = vld [vmem:[#allocation7 + $0x20] sm:$0xff]   ;;  %v3661_v20 = vshrl.u32 %v739_v19, 7  ;;  %s3942_s26 = sld [smem:[#allocation28_spill]]  ;;  %s3171_s8 = smov 64  }
 0x117   : > { %2421 = vmatpush3.bf16.msra.mxu1 %v2731_v1  ;;  %2401 = vmatpush3.bf16.msra.mxu0 %v2733_v3  ;;  %v2739_v8 = vld [vmem:[#allocation5 + $0x18] sm:$0xff]   ;;  %v2741_v10 = vld [vmem:[#allocation5 + $0x20] sm:$0xff]   ;;  %v2740_v11 = vld [vmem:[#allocation7 + $0x28] sm:$0xff]   ;;  %s3172_s5 = smov 96   ;;  %s3173_s15 = smov 32   ;;  %vm1313_vm2 = vcmask 130048  }
 0x118   : > { %2422 = vmatprep.subr.bf16.mxu1 %v3169_v0  ;;  %2402 = vmatprep.subr.bf16.mxu0 %v3169_v0  ;;  %v2743_v12 = vld [vmem:[#allocation5 + $0x28] sm:$0xff]   ;;  %v2742_v13 = vld [vmem:[#allocation7 + $0x30] sm:$0xff]   ;;  %v2744_v15 = vld [vmem:[#allocation7 + $0x38] sm:$0xff]   ;;  %v3670_v23 = vsub.s32 0, %v3661_v20  ;;  %s3943_s20 = sld [smem:[#allocation22_spill]]  ;;  %vm1547_vm3 = vcmask 523264  }
 0x119   : > { %v2745_v14 = vld [vmem:[#allocation5 + $0x30] sm:$0xff]   ;;  %v2747_v16 = vld [vmem:[#allocation5 + $0x38] sm:$0xff]   ;;  %v2748_v44 = vld [vmem:[#allocation8] sm:$0xff]   ;;  %vm1549_vm4 = vcmask 785408   ;;  %s3949_s3 = sld [smem:[#allocation38_spill]]  ;;  %s3950_s23 = sld [smem:[#allocation39_spill]] }
 0x11a   : > { %v3646_v17 = vld [vmem:[%s626_s25] sm:$0xff]   ;;  %v2749_v45 = vld [vmem:[#allocation8 + $0x8] sm:$0xff]   ;;  %v2752_v48 = vld [vmem:[#allocation8 + $0x20] sm:$0xff]   ;;  %p3954_p6 = scmp.ne.s32.totalorder %s3932_s13, 0 }
 0x11b   : > { %2423 = vmatpush3.bf16.msra.mxu1 %v2732_v2  ;;  %2403 = vmatpush3.bf16.msra.mxu0 %v2735_v4  ;;  %s2244_s24 = sshll.u32 %s3940_s12, 3  ;;  %v847_v21 = vld [vmem:[%s3941_s30] sm:$0x1]  ;;  %v2751_v47 = vld [vmem:[#allocation8 + $0x18] sm:$0xff]   ;;  %v2753_v49 = vld [vmem:[#allocation8 + $0x28] sm:$0xff]   ;;  %s3945_s30 = sld [smem:[#allocation32_spill]] }
 0x11c   : > { %2424 = vmatprep.subr.bf16.mxu1 %v3169_v0  ;;  %2404 = vmatprep.subr.bf16.mxu0 %v3169_v0  ;;  %s713_s10 = sshra.s32 %s2244_s24, 3  ;;  %v737_v22 = vld [vmem:[%s3942_s26] sm:$0x1]  ;;  %v848_v24 = vunpack.c.l.bf16 %v847_v21  ;;  %v2755_v60 = vld [vmem:[#allocation8 + $0x38] sm:$0xff]   ;;  %s3946_s26 = sld [smem:[#allocation34_spill]] }
 0x11d   : > { %s2245_s7 = sshll.u32 %s713_s10, 2  ;;  %v738_v25 = vunpack.c.l.bf16 %v737_v22  ;;  %v2750_v46 = vld [vmem:[#allocation8 + $0x10] sm:$0xff]   ;;  %s3948_s10 = sld [smem:[#allocation36_spill]] }
 0x11e   : > { %s716_s1 = scalar_lea.vmem %s626_s25, %s2245_s7 [#allocation2]  ;;  %v852_v26 = vrot.slane %v848_v24, %v3670_v23  ;;  %v2754_v53 = vld [vmem:[#allocation8 + $0x30] sm:$0xff]   ;;  %p706_p5 = scmp.lt.s32.totalorder %s3943_s20, 1 }
 0x11f   : > { %2425 = vmatpush3.bf16.msra.mxu1 %v2734_v5  ;;  %2405 = vmatpush3.bf16.msra.mxu0 %v2737_v6  ;;  %v3651_v18 = vld [vmem:[%s716_s1] sm:$0xf]  ;;  %v742_v27 = vrot.slane %v738_v25, %v3670_v23  ;;  %s3944_s7 = sld [smem:[#allocation26_spill]]  ;;  %s703_s24 = sand.u32 1, %s3120_s28  }
 0x120   : > { %2426 = vmatprep.subr.bf16.mxu1 %v3169_v0  ;;  %2406 = vmatprep.subr.bf16.mxu0 %v3169_v0  ;;  %s707_s25 = scalar_select %p706_p5, %s3943_s20, 1 }
 0x121   : > { %v964_v22 = vld [vmem:[%s3945_s30] sm:$0x1] }
 0x122   : > { %v965_v24 = vunpack.c.l.bf16 %v964_v22 }
 0x123   : > { %2427 = vmatpush3.bf16.msra.mxu1 %v2736_v7  ;;  %2407 = vmatpush3.bf16.msra.mxu0 %v2739_v8 }
 0x124   : > { %2428 = vmatprep.subr.bf16.mxu1 %v3169_v0  ;;  %2408 = vmatprep.subr.bf16.mxu0 %v3169_v0  ;;  %v969_v25 = vrot.slane %v965_v24, %v3670_v23 }
 0x125   : > { %s708_s1 = scalar_lea.vmem %s3944_s7, %s707_s25  ;;  %s3952_s25 = sld [smem:[#allocation41_spill]] }
 0x126   : > { %s2321_s7 = sshll.u32 %s3943_s20, 1  ;;  %s2056_s20 = scalar_lea.sflag [#allocation4], %s703_s24 }
 0x127   : > { %2429 = vmatpush3.bf16.msra.mxu1 %v2738_v9  ;;  %2409 = vmatpush3.bf16.msra.mxu0 %v2741_v10  ;;  %v718_v10 = vld [vmem:[%s708_s1] sm:$0x1]  ;;  %s2067_s1 = sadd.s32 %s3940_s12, %s2321_s7  ;;  %s3175_s12 = smov [#allocation14]  }
 0x128   : > { %2430 = vmatprep.subr.bf16.mxu1 %v3169_v0  ;;  %2410 = vmatprep.subr.bf16.mxu0 %v3169_v0 }
 0x12b   : > { %2431 = vmatpush3.bf16.msra.mxu1 %v2740_v11  ;;  %2411 = vmatpush3.bf16.msra.mxu0 %v2743_v12  ;;  %v2246_v11 = vadd.f32 -1.0, %v718_v10 }
 0x12c   : > { %2432 = vmatprep.subr.bf16.mxu1 %v3169_v0  ;;  %2412 = vmatprep.subr.bf16.mxu0 %v3169_v0 }
 0x12d   : > { %v720_v12 = vmul.f32 1e+09, %v2246_v11 }
 0x12f   : > { %2433 = vmatpush3.bf16.msra.mxu1 %v2742_v13  ;;  %2413 = vmatpush3.bf16.msra.mxu0 %v2745_v14  ;;  %v1126_v13 = vrot.slane %v720_v12, %v3670_v23 }
 0x130   : > { %2434 = vmatprep.subr.bf16.mxu1 %v3169_v0  ;;  %2414 = vmatprep.subr.bf16.mxu0 %v3169_v0 }
 0x133   : > { %2435 = vmatpush3.bf16.msra.mxu1 %v2744_v15  ;;  %2415 = vmatpush3.bf16.msra.mxu0 %v2747_v16 }
 0x134   : > { %2460 = vmatprep.subr.bf16.mxu1 %v3169_v0  ;;  %2440 = vmatprep.subr.bf16.mxu0 %v3169_v0 }
 0x136   : > { %2437 = vmatmul.mubr.bf16.vlgmr.msra.gmra.mrb[0].mxu1 %v3646_v17  ;;  %2417 = vmatmul.mubr.bf16.vlgmr.msra.gmra.mrb[0].mxu0 %v3651_v18 }
 0x137   : > { %2462 = vmatprep.mubr.msk.bf16.mxu1 %vm3170_vm0, %v3169_v0  ;;  %2456 = vmatprep.mubr.msk.bf16.mxu0 %vm3170_vm0, %v3169_v0 }
 0x138   : > { %2441 = vmatpush3.bf16.msra.mxu0 %v2748_v44 }
 0x139   : > { %2442 = vmatprep.subr.bf16.mxu0 %v3169_v0 }
 0x13c   : > { %2443 = vmatpush3.bf16.msra.mxu0 %v2749_v45 }
 0x13d   : > { %2444 = vmatprep.subr.bf16.mxu0 %v3169_v0 }
 0x140   : > { %2445 = vmatpush3.bf16.msra.mxu0 %v2750_v46 }
 0x141   : > { %2446 = vmatprep.subr.bf16.mxu0 %v3169_v0 }
 0x144   : > { %2447 = vmatpush3.bf16.msra.mxu0 %v2751_v47 }
 0x145   : > { %2448 = vmatprep.subr.bf16.mxu0 %v3169_v0 }
 0x148   : > { %2449 = vmatpush3.bf16.msra.mxu0 %v2752_v48 }
 0x149   : > { %2450 = vmatprep.subr.bf16.mxu0 %v3169_v0 }
 0x14c   : > { %2451 = vmatpush3.bf16.msra.mxu0 %v2753_v49 }
 0x14d   : > { %2452 = vmatprep.subr.bf16.mxu0 %v3169_v0 }
 0x150   : > { %2453 = vmatpush3.bf16.msra.mxu0 %v2754_v53 }
 0x151   : > { %2454 = vmatprep.subr.bf16.mxu0 %v3169_v0 }
 0x154   : > { %2455 = vmatpush3.bf16.msra.mxu0 %v2755_v60 }
 0x155   : > { %2508 = vmatprep.subr.bf16.mxu0 %v3169_v0 }
 0x157   : > { %2457 = vmatmul.mubr.bf16.vlgmr.msra.gmra.mrb[4].mxu0 %v3646_v17 }
 0x158   : > { %2524 = vmatprep.mubr.msk.bf16.mxu0 %vm3170_vm0, %v3169_v0 }
 0x209   : > { %v941_v28 = vpop.f32.mrb[0].mxu1  ;;  %v825_v31 = vpop.f32.mrb[0].mxu0 }
 0x20a   : > { %v2438_v29 = vpop.f32.mrb[1].mxu1  ;;  %v942_v32 = vadd.f32 %v941_v28, %v852_v26  ;;  %v826_v35 = vadd.f32 %v825_v31, %v742_v27  ;;  %v2418_v36 = vpop.f32.mrb[1].mxu0 }
 0x20b   : > { %v944_v30 = vpop.f32.mrb[2].mxu1  ;;  %v828_v37 = vpop.f32.mrb[2].mxu0 }
 0x20c   : > { %v945_v33 = vadd.f32 %v944_v30, %v852_v26  ;;  %v2439_v34 = vpop.f32.mrb[3].mxu1  ;;  %v2419_v40 = vpop.f32.mrb[3].mxu0  ;;  %v1059_v41 = vmul.f32 0.17677669, %v826_v35 }
 0x20e   : > { %v2706_v38 = vpack.i.bf16 %v945_v33, %v942_v32  ;;  %v1094_v39 = vpack.c.bf16 %v945_v33, %v942_v32  ;;  %v1070_v43 = vpack.c.bf16 %v1059_v41, %v1059_v41 }
 0x210   : > { %2707 = vrot.lane.b32.xlu1 %v2706_v38, %s3171_s8  ;;  %2702 = vrot.lane.b32.xlu0 %v2706_v38, %s3172_s5  ;;  %v1133_v42 = vsel %vm1128_vm1, %v1094_v39, 0 }
 0x211   : > { %2461 = vmatpush3.bf16.xpose.msra.mxu1 %v1133_v42 }
 0x212   : > { %2466 = vmatprep.subr.bf16.mxu1 %v3169_v0 }
 0x214   : > { %1061 = vrot.lane.b32.xlu0 %v1059_v41, %s3172_s5  ;;  %1064 = vrot.lane.b32.xlu1 %v1059_v41, %s3171_s8 }
 0x218   : > { %2712 = vrot.lane.b32.xlu0 %v2706_v38, %s3173_s15  ;;  %2463 = vmatmul.mubr.msk.bf16.vlgmr.msra.gmra.mrb[4].mxu1 %vm1128_vm1, %v1070_v43 }
 0x219   : > { %1067 = vrot.lane.b32.xlu1 %v1059_v41, %s3173_s15  ;;  %2468 = vmatprep.mubr.msk.bf16.mxu1 %vm3170_vm0, %v3169_v0 }
 0x22a   : > { %v1052_v26 = vpop.f32.mrb[4].mxu0 }
 0x22b   : > { %v1053_v28 = vadd.f32 %v1052_v26, %v969_v25  ;;  %v2458_v29 = vpop.f32.mrb[5].mxu0 }
 0x22c   : > { %v1055_v32 = vpop.f32.mrb[6].mxu0 }
 0x22d   : > { %v1056_v34 = vadd.f32 %v1055_v32, %v969_v25  ;;  %v2459_v35 = vpop.f32.mrb[7].mxu0 }
 0x22f   : > { %v2716_v38 = vpack.i.bf16 %v1056_v34, %v1053_v28  ;;  %v1118_v39 = vpack.c.bf16 %v1056_v34, %v1053_v28 }
 0x282   : > { %v2703_v50 = vpop.permute.xlu0 %2702  ;;  %v2708_v54 = vpop.permute.xlu1 %2707 }
 0x283   : > { %v2705_v51 = vunpack.i.h.bf16 %v2703_v50  ;;  %v2704_v52 = vunpack.i.l.bf16 %v2703_v50  ;;  %v2710_v57 = vunpack.i.h.bf16 %v2708_v54  ;;  %v2709_v58 = vunpack.i.l.bf16 %v2708_v54 }
 0x285   : > { %v1095_v55 = vpack.c.bf16 %v2705_v51, %v2704_v52  ;;  %v1096_v61 = vpack.c.bf16 %v2710_v57, %v2709_v58 }
 0x286   : > { %v1062_v56 = vpop.permute.xlu0 %1061  ;;  %v1065_v5 = vpop.permute.xlu1 %1064 }
 0x287   : > { %v1179_v59 = vsel %vm1128_vm1, %v1095_v55, 0  ;;  %v1071_v62 = vpack.c.bf16 %v1062_v56, %v1062_v56  ;;  %v1225_v3 = vsel %vm1128_vm1, %v1096_v61, 0  ;;  %v1072_v6 = vpack.c.bf16 %v1065_v5, %v1065_v5 }
 0x288   : > { %2467 = vmatpush3.bf16.xpose.msra.mxu1 %v1179_v59 }
 0x289   : > { %2472 = vmatprep.subr.bf16.mxu1 %v3169_v0 }
 0x28a   : > { %v2713_v63 = vpop.permute.xlu0 %2712 }
 0x28b   : > { %v2715_v1 = vunpack.i.h.bf16 %v2713_v63  ;;  %v2714_v2 = vunpack.i.l.bf16 %v2713_v63  ;;  %v1068_v8 = vpop.permute.xlu1 %1067 }
 0x28c   : > { %v1073_v9 = vpack.c.bf16 %v1068_v8, %v1068_v8 }
 0x28d   : > { %v1097_v4 = vpack.c.bf16 %v2715_v1, %v2714_v2 }
 0x28f   : > { %2469 = vmatmul.mubr.msk.bf16.vlgmr.msra.gmra.mrb[8].mxu1 %vm1128_vm1, %v1071_v62  ;;  %v1271_v7 = vsel %vm1128_vm1, %v1097_v4, 0 }
 0x290   : > { %2473 = vmatpush3.bf16.xpose.msra.mxu1 %v1225_v3  ;;  %2474 = vmatprep.mubr.msk.bf16.mxu1 %vm3170_vm0, %v3169_v0 }
 0x291   : > { %2478 = vmatprep.subr.bf16.mxu1 %v3169_v0 }
 0x297   : > { %2475 = vmatmul.mubr.msk.bf16.vlgmr.msra.gmra.mrb[12].mxu1 %vm1128_vm1, %v1072_v6 }
 0x298   : > { %2479 = vmatpush3.bf16.xpose.msra.mxu1 %v1271_v7  ;;  %2480 = vmatprep.mubr.msk.bf16.mxu1 %vm3170_vm0, %v3169_v0 }
 0x299   : > { %2484 = vmatprep.subr.bf16.mxu1 %v3169_v0 }
 0x29f   : > { %2481 = vmatmul.mubr.msk.bf16.vlgmr.msra.gmra.mrb[16].mxu1 %vm1128_vm1, %v1073_v9 }
 0x2a0   : > { %2486 = vmatprep.mubr.msk.bf16.mxu1 %vm3170_vm0, %v3169_v0  ;;  %2485 = vmatpush3.bf16.msra.mxu1 %v1118_v39 }
 0x2a1   : > { %2490 = vmatprep.subr.bf16.mxu1 %v3169_v0 }
 0x2eb   : > { %v1169_v14 = vpop.f32.mrb[4].mxu1 }
 0x2ec   : > { %v1170_v15 = vadd.f32 %v1169_v14, %v1126_v13  ;;  %v2464_v16 = vpop.f32.mrb[5].mxu1 }
 0x2ed   : > { %v1172_v17 = vpop.f32.mrb[6].mxu1 }
 0x2ee   : > { %v1314_v19 = vsel %vm1313_vm2, %v1170_v15, -inf  ;;  %v2465_v21 = vpop.f32.mrb[7].mxu1 }
 0x2ef   : > { %1315 = vmax.xlane.f32.xlu0 %v1314_v19 }
 0x362   : > { %v1215_v27 = vpop.f32.mrb[8].mxu1 }
 0x363   : > { %v1216_v30 = vadd.f32 %v1215_v27, %v1126_v13  ;;  %v2470_v31 = vpop.f32.mrb[9].mxu1 }
 0x364   : > { %v1218_v33 = vpop.f32.mrb[10].mxu1 }
 0x365   : > { %v2471_v36 = vpop.f32.mrb[11].mxu1  ;;  %v1317_v37 = vsel %vm1313_vm2, %v1216_v30, -inf }
 0x366   : > { %1318 = vmax.xlane.f32.xlu1 %v1317_v37 }
 0x36a   : > { %v1261_v40 = vpop.f32.mrb[12].mxu1 }
 0x36b   : > { %v1262_v41 = vadd.f32 %v1261_v40, %v1126_v13  ;;  %v2476_v42 = vpop.f32.mrb[13].mxu1 }
 0x36c   : > { %v1264_v43 = vpop.f32.mrb[14].mxu1 }
 0x36d   : > { %v2477_v44 = vpop.f32.mrb[15].mxu1  ;;  %v1320_v45 = vsel %vm1313_vm2, %v1262_v41, -inf }
 0x36e   : > { %1321 = vmax.xlane.f32.xlu0 %v1320_v45  ;;  %v2756_v44 = vld [vmem:[#allocation10] sm:$0xff]   ;;  %v2757_v45 = vld [vmem:[#allocation10 + $0x8] sm:$0xff]  }
 0x36f   : > { %2509 = vmatpush3.bf16.msra.mxu0 %v2756_v44  ;;  %v2792_v44 = vld [vmem:[#allocation13 + $0x50] sm:$0xff]  }
 0x370   : > { %2510 = vmatprep.subr.bf16.mxu0 %v3169_v0 }
 0x372   : > { %v1307_v46 = vpop.f32.mrb[16].mxu1 }
 0x373   : > { %v1308_v47 = vadd.f32 %v1307_v46, %v1126_v13  ;;  %v2482_v48 = vpop.f32.mrb[17].mxu1  ;;  %2511 = vmatpush3.bf16.msra.mxu0 %v2757_v45  ;;  %v2758_v46 = vld [vmem:[#allocation10 + $0x10] sm:$0xff]  }
 0x374   : > { %v1310_v49 = vpop.f32.mrb[18].mxu1  ;;  %2512 = vmatprep.subr.bf16.mxu0 %v3169_v0  ;;  %v2760_v48 = vld [vmem:[#allocation10 + $0x20] sm:$0xff]   ;;  %v2793_v45 = vld [vmem:[#allocation13 + $0x10] sm:$0xff]  }
 0x375   : > { %v2483_v50 = vpop.f32.mrb[19].mxu1  ;;  %v1323_v51 = vsel %vm1313_vm2, %v1308_v47, -inf  ;;  %v2761_v49 = vld [vmem:[#allocation10 + $0x28] sm:$0xff]  }
 0x376   : > { %1324 = vmax.xlane.f32.xlu0 %v1323_v51 }
 0x377   : > { %2513 = vmatpush3.bf16.msra.mxu0 %v2758_v46  ;;  %v2794_v46 = vld [vmem:[#allocation13 + $0x58] sm:$0xff]  }
 0x378   : > { %2514 = vmatprep.subr.bf16.mxu0 %v3169_v0 }
 0x37c   : > { %v1316_v52 = vpop.xlane.xlu0 %1315 }
 0x37d   : > { %v1326_v53 = vsub.f32 %v1170_v15, %v1316_v52  ;;  %v2762_v52 = vld [vmem:[#allocation10 + $0x30] sm:$0xff]  }
 0x37f   : > { %v1330_v54 = vmul.f32 1.442695, %v1326_v53 }
 0x381   : > { %2804 = vpow2.f32 %v1330_v54 }
 0x38b   : > { %v2805_v55 = vpop.eup %2804 }
 0x38c   : > { %v1338_v56 = vsel %vm1313_vm2, %v2805_v55, 0.0 }
 0x38d   : > { %1339 = vadd.xlane.f32.xlu1 %v1338_v56 }
 0x39e   : > { %2717 = vrot.lane.b32.xlu1 %v2716_v38, %s3172_s5 }
 0x3f3   : > { %v1319_v57 = vpop.xlane.xlu1 %1318 }
 0x3f4   : > { %v1327_v58 = vsub.f32 %v1216_v30, %v1319_v57 }
 0x3f6   : > { %v1332_v59 = vmul.f32 1.442695, %v1327_v58 }
 0x3f8   : > { %2806 = vpow2.f32 %v1332_v59 }
 0x3fb   : > { %v1322_v60 = vpop.xlane.xlu0 %1321 }
 0x3fc   : > { %v1328_v61 = vsub.f32 %v1262_v41, %v1322_v60 }
 0x3fe   : > { %v1334_v62 = vmul.f32 1.442695, %v1328_v61 }
 0x400   : > { %2808 = vpow2.f32 %v1334_v62 }
 0x402   : > { %v2807_v63 = vpop.eup %2806 }
 0x403   : > { %v1325_v1 = vpop.xlane.xlu0 %1324  ;;  %v1341_v2 = vsel %vm1313_vm2, %v2807_v63, 0.0 }
 0x404   : > { %v1329_v3 = vsub.f32 %v1308_v47, %v1325_v1  ;;  %1342 = vadd.xlane.f32.xlu0 %v1341_v2  ;;  %v2759_v47 = vld [vmem:[#allocation10 + $0x18] sm:$0xff]  }
 0x405   : > { %2515 = vmatpush3.bf16.msra.mxu0 %v2759_v47  ;;  %v2795_v47 = vld [vmem:[#allocation13 + $0x18] sm:$0xff]  }
 0x406   : > { %v1336_v4 = vmul.f32 1.442695, %v1329_v3  ;;  %2516 = vmatprep.subr.bf16.mxu0 %v3169_v0 }
 0x408   : > { %2810 = vpow2.f32 %v1336_v4 }
 0x409   : > { %2517 = vmatpush3.bf16.msra.mxu0 %v2760_v48  ;;  %v2796_v48 = vld [vmem:[#allocation13 + $0x60] sm:$0xff]  }
 0x40a   : > { %v2809_v5 = vpop.eup %2808  ;;  %2518 = vmatprep.subr.bf16.mxu0 %v3169_v0 }
 0x40b   : > { %v1344_v6 = vsel %vm1313_vm2, %v2809_v5, 0.0 }
 0x40c   : > { %1345 = vadd.xlane.f32.xlu1 %v1344_v6 }
 0x40d   : > { %2519 = vmatpush3.bf16.msra.mxu0 %v2761_v49  ;;  %v2797_v49 = vld [vmem:[#allocation13 + $0x20] sm:$0xff]  }
 0x40e   : > { %2520 = vmatprep.subr.bf16.mxu0 %v3169_v0 }
 0x411   : > { %2521 = vmatpush3.bf16.msra.mxu0 %v2762_v52 }
 0x412   : > { %v2811_v7 = vpop.eup %2810  ;;  %2522 = vmatprep.subr.bf16.mxu0 %v3169_v0 }
 0x413   : > { %v1347_v8 = vsel %vm1313_vm2, %v2811_v7, 0.0 }
 0x414   : > { %1348 = vadd.xlane.f32.xlu0 %v1347_v8 }
 0x41a   : > { %v1340_v9 = vpop.xlane.xlu1 %1339 }
 0x41b   : > { %2812 = vrcp.f32 %v1340_v9 }
 0x41d   : > { %2727 = vrot.lane.b32.xlu1 %v2716_v38, %s3173_s15 }
 0x41e   : > { %v2718_v10 = vpop.permute.xlu1 %2717 }
 0x41f   : > { %v2720_v11 = vunpack.i.h.bf16 %v2718_v10  ;;  %v2719_v12 = vunpack.i.l.bf16 %v2718_v10  ;;  %v1662_v10 = vunpack.c.l.bf16 %v3651_v18 }
 0x421   : > { %v1119_v15 = vpack.c.bf16 %v2720_v11, %v2719_v12 }
 0x425   : > { %v2813_v13 = vpop.eup %2812 }
 0x426   : > { %v1354_v14 = vmul.f32 %v2813_v13, %v2805_v55  ;;  %v2763_v55 = vld [vmem:[#allocation10 + $0x38] sm:$0xff]  }
 0x427   : > { %2523 = vmatpush3.bf16.msra.mxu0 %v2763_v55 }
 0x428   : > { %v1358_v16 = vpack.c.bf16 %v1354_v14, %v1354_v14 }
 0x42a   : > { %2487 = vmatmul.mubr.msk.bf16.vlgmr.msra.gmra.mrb[20].mxu1 %vm1313_vm2, %v1358_v16  ;;  %2722 = vrot.lane.b32.xlu0 %v2716_v38, %s3171_s8 }
 0x42b   : > { %2491 = vmatpush3.bf16.msra.mxu1 %v1119_v15  ;;  %2492 = vmatprep.mubr.msk.bf16.mxu1 %vm3170_vm0, %v3169_v0 }
 0x42c   : > { %2496 = vmatprep.subr.bf16.mxu1 %v3169_v0 }
 0x491   : > { %v1343_v17 = vpop.xlane.xlu0 %1342 }
 0x492   : > { %2814 = vrcp.f32 %v1343_v17  ;;  %v2764_v17 = vld [vmem:[#allocation11] ss:$8 sps:$4 sm:$0xff]  }
 0x499   : > { %v1346_v19 = vpop.xlane.xlu1 %1345 }
 0x49a   : > { %2816 = vrcp.f32 %v1346_v19  ;;  %v2766_v19 = vld [vmem:[#allocation11 + $0x4] ss:$8 sps:$4 sm:$0xff]  }
 0x49c   : > { %v2815_v21 = vpop.eup %2814 }
 0x49d   : > { %v1355_v22 = vmul.f32 %v2815_v21, %v2807_v63  ;;  %v2728_v27 = vpop.permute.xlu1 %2727  ;;  %v2769_v21 = vld [vmem:[#allocation11 + $0x14] ss:$8 sps:$4 sm:$0xff]  }
 0x49e   : > { %v2730_v32 = vunpack.i.h.bf16 %v2728_v27  ;;  %v2729_v33 = vunpack.i.l.bf16 %v2728_v27 }
 0x49f   : > { %v1359_v24 = vpack.c.bf16 %v1355_v22, %v1355_v22  ;;  %v2767_v22 = vld [vmem:[#allocation11 + $0x10] ss:$8 sps:$4 sm:$0xff]  }
 0x4a0   : > { %v1121_v37 = vpack.c.bf16 %v2730_v32, %v2729_v33  ;;  %v2776_v32 = vld [vmem:[#allocation11 + $0x40] ss:$8 sps:$4 sm:$0xff]   ;;  %v2781_v33 = vld [vmem:[#allocation11 + $0x54] ss:$8 sps:$4 sm:$0xff]  }
 0x4a1   : > { %2493 = vmatmul.mubr.msk.bf16.vlgmr.msra.gmra.mrb[24].mxu1 %vm1313_vm2, %v1359_v24  ;;  %v1349_v25 = vpop.xlane.xlu0 %1348  ;;  %v2772_v24 = vld [vmem:[#allocation11 + $0x24] ss:$8 sps:$4 sm:$0xff]  }
 0x4a2   : > { %2818 = vrcp.f32 %v1349_v25  ;;  %2498 = vmatprep.mubr.msk.bf16.mxu1 %vm3170_vm0, %v3169_v0  ;;  %v2770_v25 = vld [vmem:[#allocation11 + $0x20] ss:$8 sps:$4 sm:$0xff]  }
 0x4a4   : > { %v2817_v26 = vpop.eup %2816 }
 0x4a5   : > { %v2723_v28 = vpop.permute.xlu0 %2722  ;;  %v1356_v31 = vmul.f32 %v2817_v26, %v2809_v5 }
 0x4a6   : > { %v2725_v29 = vunpack.i.h.bf16 %v2723_v28  ;;  %v2724_v30 = vunpack.i.l.bf16 %v2723_v28 }
 0x4a7   : > { %v1360_v35 = vpack.c.bf16 %v1356_v31, %v1356_v31  ;;  %v2778_v31 = vld [vmem:[#allocation11 + $0x44] ss:$8 sps:$4 sm:$0xff]  }
 0x4a8   : > { %v1120_v34 = vpack.c.bf16 %v2725_v29, %v2724_v30  ;;  %v2775_v29 = vld [vmem:[#allocation11 + $0x34] ss:$8 sps:$4 sm:$0xff]   ;;  %v2773_v30 = vld [vmem:[#allocation11 + $0x30] ss:$8 sps:$4 sm:$0xff]  }
 0x4aa   : > { %2497 = vmatpush3.bf16.msra.mxu1 %v1120_v34  ;;  %v2779_v34 = vld [vmem:[#allocation11 + $0x50] ss:$8 sps:$4 sm:$0xff]  }
 0x4ab   : > { %2502 = vmatprep.subr.bf16.mxu1 %v3169_v0 }
 0x4ac   : > { %v2819_v36 = vpop.eup %2818 }
 0x4ad   : > { %2499 = vmatmul.mubr.msk.bf16.vlgmr.msra.gmra.mrb[28].mxu1 %vm1313_vm2, %v1360_v35  ;;  %v1357_v38 = vmul.f32 %v2819_v36, %v2811_v7  ;;  %v1568_v7 = vld [vmem:[%s3946_s26] sm:$0x1]  ;;  %v2784_v35 = vld [vmem:[#allocation11 + $0x64] ss:$8 sps:$4 sm:$0xff]   ;;  %v2782_v36 = vld [vmem:[#allocation11 + $0x60] ss:$8 sps:$4 sm:$0xff]  }
 0x4ae   : > { %2503 = vmatpush3.bf16.msra.mxu1 %v1121_v37  ;;  %2504 = vmatprep.mubr.msk.bf16.mxu1 %vm3170_vm0, %v3169_v0  ;;  %v1569_v8 = vunpack.c.l.bf16 %v1568_v7  ;;  %v2787_v37 = vld [vmem:[#allocation11 + $0x74] ss:$8 sps:$4 sm:$0xff]   ;;  %s3953_s26 = sld [smem:[#allocation42_spill]] }
 0x4af   : > { %v1361_v39 = vpack.c.bf16 %v1357_v38, %v1357_v38  ;;  %1808 = vmatprep.subr.bf16.mxu1 %v2766_v19  ;;  %v2785_v38 = vld [vmem:[#allocation11 + $0x70] ss:$8 sps:$4 sm:$0xff]  }
 0x4b0   : > { %v1573_v9 = vrot.slane %v1569_v8, %v3670_v23  ;;  %v1716_v8 = vsub.s32 2, %v3661_v20  ;;  %v1885_v20 = vld [vmem:[%s3950_s23] sm:$0x1] }
 0x4b5   : > { %2505 = vmatmul.mubr.msk.bf16.vlgmr.msra.gmra.mrb[32].mxu1 %vm1313_vm2, %v1361_v39  ;;  %v3174_v39 = vmov 0  }
 0x4b6   : > { %1809 = vmatpush1.bf16.msra.mxu1 %v2764_v17  ;;  %1840 = vmatprep.mubr.bf16.mxu1 %v3174_v39 }
 0x4b7   : > { %1810 = vmatprep.subr.bf16.mxu1 %v2769_v21 }
 0x4ba   : > { %1811 = vmatpush1.bf16.msra.mxu1 %v2767_v22 }
 0x4bb   : > { %1812 = vmatprep.subr.bf16.mxu1 %v2772_v24 }
 0x4be   : > { %1813 = vmatpush1.bf16.msra.mxu1 %v2770_v25 }
 0x4bf   : > { %1814 = vmatprep.subr.bf16.mxu1 %v2775_v29 }
 0x4c2   : > { %1815 = vmatpush1.bf16.msra.mxu1 %v2773_v30 }
 0x4c3   : > { %1816 = vmatprep.subr.bf16.mxu1 %v2778_v31 }
 0x4c6   : > { %1817 = vmatpush1.bf16.msra.mxu1 %v2776_v32 }
 0x4c7   : > { %1818 = vmatprep.subr.bf16.mxu1 %v2781_v33 }
 0x4ca   : > { %1819 = vmatpush1.bf16.msra.mxu1 %v2779_v34 }
 0x4cb   : > { %1820 = vmatprep.subr.bf16.mxu1 %v2784_v35 }
 0x4ce   : > { %1821 = vmatpush1.bf16.msra.mxu1 %v2782_v36 }
 0x4cf   : > { %1822 = vmatprep.subr.bf16.mxu1 %v2787_v37 }
 0x4d2   : > { %1823 = vmatpush1.bf16.msra.mxu1 %v2785_v38 }
 0x4fd   : > { %v1399_v40 = vpop.f32.mrb[20].mxu1 }
 0x4fe   : > { %v2488_v41 = vpop.f32.mrb[21].mxu1 }
 0x4ff   : > { %v1402_v42 = vpop.f32.mrb[22].mxu1  ;;  %v2789_v41 = vld [vmem:[#allocation13] sm:$0xff]  }
 0x500   : > { %v2489_v43 = vpop.f32.mrb[23].mxu1  ;;  %v2790_v42 = vld [vmem:[#allocation13 + $0x48] sm:$0xff]  }
 0x501   : > { %v2791_v43 = vld [vmem:[#allocation13 + $0x8] sm:$0xff]  }
 0x574   : > { %v1442_v50 = vpop.f32.mrb[24].mxu1 }
 0x575   : > { %1535 = vrot.lane.b32.xlu1 %v1442_v50, %s3173_s15  ;;  %v2494_v51 = vpop.f32.mrb[25].mxu1  ;;  %v2798_v50 = vld [vmem:[#allocation13 + $0x68] sm:$0xff]   ;;  %s3947_s15 = sld [smem:[#allocation35_spill]] }
 0x576   : > { %v1445_v53 = vpop.f32.mrb[26].mxu1  ;;  %v2799_v51 = vld [vmem:[#allocation13 + $0x28] sm:$0xff]  }
 0x577   : > { %v2495_v54 = vpop.f32.mrb[27].mxu1 }
 0x57b   : > { %v1664_v55 = vld [vmem:[%s3947_s15] sm:$0x1]  ;;  %s3026_s15 = sshll.u32 %s3175_s12, 4  ;;  %s3027_s15 = int_to_ptr.vmem [resolvable:$false] %s3026_s15 }
 0x580   : > { %v1485_v56 = vpop.f32.mrb[28].mxu1 }
 0x581   : > { %1539 = vrot.lane.b32.xlu0 %v1485_v56, %s3171_s8  ;;  %v2500_v57 = vpop.f32.mrb[29].mxu1  ;;  %v1666_v56 = vld [vmem:[%s3948_s10] sm:$0x1]  ;;  %s3951_s8 = sld [smem:[#allocation40_spill]]  ;;  %s2243_s10 = sshll.u32 %s703_s24, 2 }
 0x582   : > { %v1488_v58 = vpop.f32.mrb[30].mxu1  ;;  %v1665_v57 = vunpack.c.l.bf16 %v1664_v55  ;;  %s705_s11 = scalar_lea.vmem [#allocation14], %s2243_s10 }
 0x583   : > { %v2501_v59 = vpop.f32.mrb[31].mxu1  ;;  %v1667_v58 = vunpack.c.l.bf16 %v1666_v56  ;;  %s2071_s30 = sshll.u32 %s705_s11, 4  ;;  %s3796_s30 = int_to_ptr.vmem [resolvable:$true] %s2071_s30 }
 0x584   : > { %v1683_v59 = vrot.slane %v1665_v57, %v3670_v23  ;;  %p3029_p12 = scmp.lt.s32.totalorder %s3796_s30, %s3027_s15 }
 0x588   : > { %v1528_v60 = vpop.f32.mrb[32].mxu1 }
 0x589   : > { %1543 = vrot.lane.b32.xlu1 %v1528_v60, %s3172_s5  ;;  %v2506_v61 = vpop.f32.mrb[33].mxu1  ;;  %s3022_s5 = scalar_lea.vmem %s3796_s30, 64 }
 0x58a   : > { %v1531_v62 = vpop.f32.mrb[34].mxu1  ;;  %p3023_p13 = scmp.ne.s32.totalorder %s3796_s30, %s3022_s5 }
 0x58b   : > { %v2507_v63 = vpop.f32.mrb[35].mxu1  ;;  %v1688_v62 = vrot.slane %v1667_v58, %v3670_v23 }
 0x58c   : > { %p3024_p9 = pnand %p3023_p13, %p3954_p6 }
 0x58e   : > { %p3025_p11 = pneg %p3024_p9 }
 0x5e7   : > { %v1536_v1 = vpop.permute.xlu1 %1535 }
 0x5e8   : > { %v1546_v0 = vsel %vm1128_vm1, %v1399_v40, %v1536_v1  ;;  %v2788_v40 = vld [vmem:[#allocation13 + $0x40] sm:$0xff]  }
 0x5e9   : > { %2378 = vmatprep.subr.bf16.mxu0 %v2788_v40 }
 0x5f3   : > { %v1540_v2 = vpop.permute.xlu0 %1539 }
 0x5f4   : > { %v1548_v3 = vsel %vm1547_vm3, %v1546_v0, %v1540_v2  ;;  %v2800_v0 = vld [vmem:[#allocation13 + $0x70] sm:$0xff]  }
 0x5fb   : > { %v1544_v4 = vpop.permute.xlu1 %1543 }
 0x5fc   : > { %v1550_v5 = vsel %vm1549_vm4, %v1548_v3, %v1544_v4  ;;  %v2801_v3 = vld [vmem:[#allocation13 + $0x30] sm:$0xff]   ;;  %v2802_v4 = vld [vmem:[#allocation13 + $0x78] sm:$0xff]  }
 0x5fd   : > { %v1551_v6 = vpack.c.bf16 %v1550_v5, %v1550_v5  ;;  %v2803_v5 = vld [vmem:[#allocation13 + $0x38] sm:$0xff]  }
 0x5ff   : > { %2525 = vmatmul.mubr.bf16.vlgmr.msra.gmra.mrb[8].mxu0 %v1551_v6  ;;  %v1707_v6 = vld [vmem:[%s3949_s3] sm:$0x3]  ;;  %s2322_s3 = sshll.u32 %s2067_s1, 6 }
 0x600   : > { %2379 = vmatpush3.bf16.msra.mxu0 %v2789_v41  ;;  %v1708_v7 = vunpack.c.l.bf16 %v1707_v6  ;;  %v2028_v41 = vld [vmem:[%s3951_s8] sm:$0x1]  ;;  %s3794_s8 = scalar_lea.hbm %s3953_s26, %s2322_s3 }
 0x601   : > { %2380 = vmatprep.subr.bf16.mxu0 %v2790_v42  ;;  %v2030_v42 = vld [vmem:[%s3952_s25] sm:$0x1]  ;;  %s3028_s25 = scalar_lea.vmem %s3027_s15, 128 }
 0x602   : > { %p3030_p1 = scmp.lt.s32.totalorder %s3028_s25, %s3022_s5 }
 0x604   : > { %2381 = vmatpush3.bf16.msra.mxu0 %v2791_v43  ;;  %v2029_v43 = vunpack.c.l.bf16 %v2028_v41  ;;  %p3031_p0 = por %p3030_p1, %p3029_p12 }
 0x605   : > { %2382 = vmatprep.subr.bf16.mxu0 %v2792_v44  ;;  %v2031_v44 = vunpack.c.l.bf16 %v2030_v42 }
 0x606   : > { %p3032_p7 = pnand %p3031_p0, %p3025_p11 }
 0x608   : > { %2383 = vmatpush3.bf16.msra.mxu0 %v2793_v45  ;;  %v2046_v45 = vrot.slane %v2029_v43, %v3670_v23 }
 0x609   : > { %2384 = vmatprep.subr.bf16.mxu0 %v2794_v46 }
 0x60c   : > { %2385 = vmatpush3.bf16.msra.mxu0 %v2795_v47 }
 0x60d   : > { %2386 = vmatprep.subr.bf16.mxu0 %v2796_v48  ;;  %v2051_v48 = vrot.slane %v2031_v44, %v3670_v23 }
 0x610   : > { %2387 = vmatpush3.bf16.msra.mxu0 %v2797_v49 }
 0x611   : > { %2388 = vmatprep.subr.bf16.mxu0 %v2798_v50 }
 0x614   : > { %2389 = vmatpush3.bf16.msra.mxu0 %v2799_v51 }
 0x615   : > { %2390 = vmatprep.subr.bf16.mxu0 %v2800_v0 }
 0x618   : > { %2391 = vmatpush3.bf16.msra.mxu0 %v2801_v3 }
 0x619   : > { %2392 = vmatprep.subr.bf16.mxu0 %v2802_v4 }
 0x61c   : > { %2393 = vmatpush3.bf16.msra.mxu0 %v2803_v5 }
 0x6d2   : > { %v1656_v11 = vpop.f32.mrb[8].mxu0 }
 0x6d3   : > { %v1657_v12 = vadd.f32 %v1656_v11, %v1573_v9  ;;  %v2526_v13 = vpop.f32.mrb[9].mxu0  ;;  %v1713_v9 = vrot.slane %v1708_v7, %v3670_v23 }
 0x6d4   : > { %v1659_v14 = vpop.f32.mrb[10].mxu0 }
 0x6d5   : > { %v2527_v15 = vpop.f32.mrb[11].mxu0  ;;  %v1663_v16 = vadd.f32 %v1662_v10, %v1657_v12  ;;  %v1717_v10 = vrot.slane %v1708_v7, %v1716_v8  ;;  %v1723_v11 = vrot.slane %v1713_v9, %v3670_v23 }
 0x6d7   : > { %1668 = vadd.xlane.f32.xlu0 %v1663_v16  ;;  %v1727_v12 = vrot.slane %v1717_v10, %v3670_v23 }
 0x764   : > { %v1669_v18 = vpop.xlane.xlu0 %1668 }
 0x765   : > { %v1671_v26 = vmul.f32 0.0078125, %v1669_v18  ;;  %v1886_v18 = vunpack.c.l.bf16 %v1885_v20 }
 0x767   : > { %v1672_v27 = vsub.f32 %v1663_v16, %v1671_v26 }
 0x769   : > { %v1673_v28 = vmul.f32 %v1672_v27, %v1672_v27 }
 0x76b   : > { %1674 = vadd.xlane.f32.xlu1 %v1673_v28 }
 0x7f8   : > { %v1675_v52 = vpop.xlane.xlu1 %1674 }
 0x7f9   : > { %v1676_v53 = vmul.f32 0.0078125, %v1675_v52 }
 0x7fb   : > { %v1677_v54 = vadd.f32 1e-05, %v1676_v53 }
 0x7fd   : > { %2820 = vrsqrt.f32 %v1677_v54 }
 0x807   : > { %v2821_v60 = vpop.eup %2820 }
 0x808   : > { %v1679_v61 = vmul.f32 %v2821_v60, %v1672_v27  ;;  %v1890_v27 = vrot.slane %v1886_v18, %v3670_v23 }
 0x80a   : > { %v1684_v63 = vmul.f32 %v1683_v59, %v1679_v61 }
 0x80c   : > { %v1689_v1 = vadd.f32 %v1688_v62, %v1684_v63 }
 0x80e   : > { %v1690_v2 = vpack.c.bf16 %v1689_v1, %v1689_v1 }
 0x810   : > { %1841 = vmatmul.mubr.bf16.vlgmr.msra.gmra.mrb[36].mxu1 %v1690_v2 }
 0x8e3   : > { %v1842_v13 = vpop.f32.mrb[36].mxu1 }
 0x8e4   : > { %v1843_v14 = vadd.f32 %v1842_v13, %v1723_v11  ;;  %v1844_v15 = vpop.f32.mrb[37].mxu1 }
 0x8e5   : > { %v1845_v16 = vadd.f32 %v1844_v15, %v1727_v12  ;;  %v1846_v17 = vpop.f32.mrb[38].mxu1 }
 0x8e6   : > { %v1849_v19 = vmax.f32 %v1843_v14, 0.0  ;;  %v1847_v21 = vpop.f32.mrb[39].mxu1 }
 0x8e7   : > { %v1850_v22 = vmax.f32 %v1845_v16, 0.0 }
 0x8e8   : > { %v1851_v25 = vpack.c.bf16 %v1849_v19, %v1849_v19 }
 0x8e9   : > { %v1852_v24 = vpack.c.bf16 %v1850_v22, %v1850_v22 }
 0x8eb   : > { %2019 = vmatprep.mubr.bf16.mxu0 %v1852_v24 }
 0x8ec   : > { %2020 = vmatmul.mubr.bf16.vlgmr.msra.gmra.mrb[12].mxu0 %v1851_v25 }
 0x9bf   : > { %v2394_v26 = vpop.f32.mrb[12].mxu0 }
 0x9c0   : > { %v2395_v28 = vpop.f32.mrb[13].mxu0 }
 0x9c1   : > { %v2396_v29 = vadd.f32 %v2395_v28, %v2394_v26  ;;  %v2397_v30 = vpop.f32.mrb[14].mxu0 }
 0x9c2   : > { %v2398_v31 = vpop.f32.mrb[15].mxu0 }
 0x9c3   : > { %v2022_v32 = vadd.f32 %v2396_v29, %v1890_v27 }
 0x9c5   : > { %v2027_v33 = vadd.f32 %v2022_v32, %v1689_v1 }
 0x9c7   : > { %2032 = vadd.xlane.f32.xlu0 %v2027_v33 }
 0xa54   : > { %v2033_v34 = vpop.xlane.xlu0 %2032 }
 0xa55   : > { %v2034_v35 = vmul.f32 0.0078125, %v2033_v34 }
 0xa57   : > { %v2035_v36 = vsub.f32 %v2027_v33, %v2034_v35 }
 0xa59   : > { %v2036_v37 = vmul.f32 %v2035_v36, %v2035_v36 }
 0xa5b   : > { %2037 = vadd.xlane.f32.xlu0 %v2036_v37 }
 0xae8   : > { %v2038_v38 = vpop.xlane.xlu0 %2037 }
 0xae9   : > { %v2039_v39 = vmul.f32 0.0078125, %v2038_v38 }
 0xaeb   : > { %v2040_v40 = vadd.f32 1e-05, %v2039_v39 }
 0xaed   : > { %2822 = vrsqrt.f32 %v2040_v40 }
 0xaf7   : > { %v2823_v46 = vpop.eup %2822 }
 0xaf8   : > { %v2042_v47 = vmul.f32 %v2823_v46, %v2035_v36 }
 0xafa   : > { %v2047_v49 = vmul.f32 %v2046_v45, %v2042_v47 }
 0xafc   : > { %v2052_v50 = vadd.f32 %v2051_v48, %v2047_v49 }
 0xafe   : > { %v2053_v51 = vpack.c.bf16 %v2052_v50, %v2052_v50 }
 0xb00   : > { %2054 = vst [vmem:[%s705_s11] sm:$0xf] %v2053_v51 }
 0xb01   : > { %3035 = shalt.err (!%p3032_p7)
}
 0xb02   : > { %s3036_s24 = scalar_lea.hbm %s3794_s8, 64  ;;  %s3040_s1 = scalar_lea.hbm %s3953_s26, 256 }
 0xb03   : > { %p3037_p2 = scmp.ne.s32.totalorder %s3794_s8, %s3036_s24  ;;  %p3041_p3 = scmp.lt.u32.totalorder %s3794_s8, %s3953_s26 }
 0xb04   : > { %p3042_p8 = scmp.lt.u32.totalorder %s3040_s1, %s3036_s24  ;;  %p3044_p13 = scmp.lt.u32.totalorder %s3036_s24, %s3794_s8 }
 0xb05   : > { %p3038_p4 = pnand %p3037_p2, %p3954_p6 }
 0xb06   : > { %p3043_p5 = por %p3042_p8, %p3041_p3 }
 0xb07   : > { %p3039_p10 = pneg %p3038_p4 }
 0xb08   : > { %p3045_p9 = por %p3044_p13, %p3043_p5 }
 0xb0a   : > { %p3046_p11 = pnand %p3045_p9, %p3039_p10 }
 0xb0c   : > { %3049 = shalt.err (!%p3046_p11)
}
 0xb0d   : > { %2554 = dma.vmem_to_hbm [thread:$0]  (%p3954_p6), %s3796_s30, 64, %s3794_s8, %s2056_s20  }
 0xb0e PF: > { %s3955_s23 = sld [smem:[#allocation20_spill]]  ;;  %p2596_p12 = scmp.ge.s32.totalorder %s3156_s2, 2 }
 0xb0f   : > { %p3956_p1 = scmp.ne.s32.totalorder %s3933_s4, 0 }
 0xb11   : > { %p2580_p0 = pnand %p2596_p12, %p3956_p1 }
 0xb14   : > { %s2083_s6 = sand.u32 1, %s3955_s23  }
 0xb15   : > { %s2084_s5 = scalar_lea.sflag [#allocation4], %s2083_s6 }
 0xb16   : > { %3111 = dma.done.wait (!%p2580_p0), %s2084_s5, 64  }
 0xb17   : > { %3113 = vsyncadd (!%p2580_p0), %s2084_s5, 4294967232  ;;  %s37_s2 = sadd.s32 1, %s3156_s2   ;;  %s3957_s13 = smov %s3549_s27 }
 0xb18   : > { %p34_p7 = scmp.ge.s32.totalorder %s37_s2, 6   ;;  %s3958_s27 = smov %s3120_s28 }
 0xb19   : > { %s3959_s28 = smov %s3124_s29  ;;  %s3960_s29 = smov %s3957_s13 }
 0xb1a   : > { %s3961_s30 = smov %s3132_s0  ;;  %s3962_s0 = smov %s3136_s19 }
 0xb1b   : > { %s3963_s19 = smov %s3546_s17  ;;  %s3964_s1 = smov %s3148_s21 }
 0xb1c   : > { %s3965_s20 = smov %s3152_s22  ;;  %s3966_s21 = smov %s3969_s16 }
 0xb1d   : > { %s3967_s22 = smov %s3973_s18  ;;  %36 = sbr.rel (!%p34_p7) target bundleno = 31 (0x1f), region = 165 }
 0xb24   :  { %2089 = vsyncpa [#allocation3], 1 }
 0xb25   :  { %2091 = vsyncpa [#allocation3 + $0x1], 1 }
 0xb26   :  { %2092 = vsyncpa [#allocation6], 1 }
 0xb27   :  { %2093 = vsyncpa [#allocation9], 1 }
 0xb28   :  { %2094 = vsyncpa [#allocation12], 1 }
 0xb29   :  { %2095 = vsyncpa [#allocation4], 1 }
 0xb2a   :  { %2097 = vsyncpa [#allocation4 + $0x1], 1 }

// kernel: tpu_custom_call.1
= control target key start
LH: loop header
LB: loop body
LE: loop exit
PB: predicated region body
PF: predicated region fallthrough
CT: control target
= control target key end

     0   :  { %s3856_s0 = inlined_call_operand.hbm [shape: bf16[2,16,128], index: 0, kind: input, shape index: {}]   ;;  %s3857_s1 = inlined_call_operand.vmem [shape: f32[2,1,16], index: 1, kind: input, shape index: {}]   ;;  %s3858_s2 = inlined_call_operand.hbm [shape: bf16[128,128], index: 2, kind: input, shape index: {}]   ;;  %s3859_s3 = inlined_call_operand.vmem [shape: bf16[1,128], index: 3, kind: input, shape index: {}]   ;;  %s3860_s4 = inlined_call_operand.hbm [shape: bf16[128,128], index: 4, kind: input, shape index: {}]   ;;  %s3861_s5 = inlined_call_operand.vmem [shape: bf16[1,128], index: 5, kind: input, shape index: {}]   ;;  %s3862_s6 = inlined_call_operand.hbm [shape: bf16[128,128], index: 6, kind: input, shape index: {}]   ;;  %s3863_s7 = inlined_call_operand.vmem [shape: bf16[1,128], index: 7, kind: input, shape index: {}]   ;;  %s3864_s8 = inlined_call_operand.hbm [shape: bf16[128,128], index: 8, kind: input, shape index: {}]   ;;  %s3865_s9 = inlined_call_operand.vmem [shape: bf16[1,128], index: 9, kind: input, shape index: {}]   ;;  %s3866_s10 = inlined_call_operand.vmem [shape: bf16[1,128], index: 10, kind: input, shape index: {}]   ;;  %s3867_s11 = inlined_call_operand.vmem [shape: bf16[1,128], index: 11, kind: input, shape index: {}]   ;;  %s3868_s12 = inlined_call_operand.hbm [shape: bf16[128,256], index: 12, kind: input, shape index: {}]   ;;  %s3869_s13 = inlined_call_operand.vmem [shape: bf16[1,256], index: 13, kind: input, shape index: {}]   ;;  %s3870_s14 = inlined_call_operand.hbm [shape: bf16[256,128], index: 14, kind: input, shape index: {}]   ;;  %s3871_s15 = inlined_call_operand.vmem [shape: bf16[1,128], index: 15, kind: input, shape index: {}]   ;;  %s3872_s16 = inlined_call_operand.vmem [shape: bf16[1,128], index: 16, kind: input, shape index: {}]   ;;  %s3873_s17 = inlined_call_operand.vmem [shape: bf16[1,128], index: 17, kind: input, shape index: {}]   ;;  %s3874_s18 = inlined_call_operand.hbm [shape: bf16[2,16,128], index: 18, kind: output, shape index: {}]  }
   0x1   :  { %3891 = sst [smem:[#allocation25_spill]] %s3856_s0 }
   0x2   :  { %3892 = sst [smem:[#allocation26_spill]] %s3857_s1 }
   0x3   :  { %3893 = sst [smem:[#allocation27_spill]] %s3858_s2 }
   0x4   :  { %3894 = sst [smem:[#allocation28_spill]] %s3859_s3 }
   0x5   :  { %3895 = sst [smem:[#allocation29_spill]] %s3860_s4 }
   0x6   :  { %3896 = sst [smem:[#allocation30_spill]] %s3861_s5 }
   0x7   :  { %3897 = sst [smem:[#allocation31_spill]] %s3862_s6 }
   0x8   :  { %3898 = sst [smem:[#allocation32_spill]] %s3863_s7 }
   0x9   :  { %3899 = sst [smem:[#allocation33_spill]] %s3864_s8 }
   0xa   :  { %3900 = sst [smem:[#allocation34_spill]] %s3865_s9 }
   0xb   :  { %3901 = sst [smem:[#allocation35_spill]] %s3866_s10 }
   0xc   :  { %3902 = sst [smem:[#allocation36_spill]] %s3867_s11 }
   0xd   :  { %3903 = sst [smem:[#allocation37_spill]] %s3868_s12 }
   0xe   :  { %3904 = sst [smem:[#allocation38_spill]] %s3869_s13 }
   0xf   :  { %3905 = sst [smem:[#allocation39_spill]] %s3871_s15 }
  0x10   :  { %3906 = sst [smem:[#allocation40_spill]] %s3872_s16 }
  0x11   :  { %3907 = sst [smem:[#allocation41_spill]] %s3873_s17 }
  0x12   :  { %3908 = sst [smem:[#allocation42_spill]] %s3874_s18 }
  0x13   :  { %23 = vsyncpa [#allocation3], 0 }
  0x14   :  { %25 = vsyncpa [#allocation3 + $0x1], 0 }
  0x15   :  { %26 = vsyncpa [#allocation6], 0 }
  0x16   :  { %27 = vsyncpa [#allocation9], 0 }
  0x17   :  { %28 = vsyncpa [#allocation12], 0 }
  0x18   :  { %29 = vsyncpa [#allocation4], 0 }
  0x19   :  { %31 = vsyncpa [#allocation4 + $0x1], 0  ;;  %s3271_s27 = smov 0   ;;  %s3273_s28 = smov 0  }
  0x1a   :  { %s3275_s29 = smov 0   ;;  %s3277_s30 = smov 0  }
  0x1b   :  { %s3279_s0 = smov 0   ;;  %s3281_s19 = smov 0  }
  0x1c   :  { %s3283_s1 = smov 0   ;;  %s3285_s20 = smov 0  }
  0x1d   :  { %s3287_s21 = smov 0   ;;  %s3289_s22 = smov 0  }
  0x1e   :  { %s3291_s2 = smov 0  }
  0x1f LB: > { %3909 = sst [smem:[#allocation20_spill]] %s3116_s27  ;;  %s2222_s23 = sadd.s32 4294967295, %s3156_s2   ;;  %s3156_s2 = sphi %s3291_s2, %s37_s2   ;;  %s3152_s22 = sphi %s3289_s22, %s3967_s22   ;;  %s3148_s21 = sphi %s3287_s21, %s3966_s21   ;;  %s3144_s20 = sphi %s3285_s20, %s3965_s20   ;;  %s3140_s1 = sphi %s3283_s1, %s3964_s1   ;;  %s3136_s19 = sphi %s3281_s19, %s3963_s19   ;;  %s3132_s0 = sphi %s3279_s0, %s3962_s0   ;;  %s3128_s30 = sphi %s3277_s30, %s3961_s30   ;;  %s3124_s29 = sphi %s3275_s29, %s3960_s29   ;;  %s3120_s28 = sphi %s3273_s28, %s3959_s28   ;;  %s3116_s27 = sphi %s3271_s27, %s3958_s27  }
  0x20   : > { %3910 = sst [smem:[#allocation21_spill]] %s3140_s1  ;;  %p2224_p0 = scmp.ge.s32.totalorder %s3156_s2, 1 }
  0x21   : > { %3911 = sst [smem:[#allocation22_spill]] %s3144_s20  ;;  %p3328_p1 = scmp.eq.s32.totalorder %s2222_s23, 0 }
  0x22   : > { %p3332_p2 = scmp.eq.s32.totalorder %s2222_s23, 3  ;;  %p470_p3 = scmp.lt.s32.totalorder %s3156_s2, 5 }
  0x23   : > { %s3912_s24 = scalar_select %p3328_p1, 1, 0 }
  0x24   : > { %s3913_s25 = scalar_select %p3332_p2, 1, 0 }
  0x25   : > { %p3337_p4 = pnand %p2224_p0, %p470_p3  ;;  %s3158_s18 = smov [#allocation5]  }
  0x26   : > { %3914 = sst [smem:[#allocation23_spill]] %s3913_s25  ;;  %s482_s17 = sshll.u32 %s3158_s18, 4  ;;  %s3341_s17 = int_to_ptr.vmem [resolvable:$true] %s482_s17 }
  0x27   : > { %s3915_s26 = scalar_select %p3337_p4, 1, 0 }
  0x28   : > { %p2556_p5 = pneg %p3337_p4  ;;  %s3159_s23 = smov [#allocation8]  }
  0x29   : > { %3916 = sst [smem:[#allocation24_spill]] %s3915_s26  ;;  %s514_s15 = sshll.u32 %s3159_s23, 4  ;;  %s3351_s15 = int_to_ptr.vmem [resolvable:$true] %s514_s15 }
  0x2a   : > { %p3347_p6 = pnand %p2556_p5, %p3328_p1  ;;  %s3160_s13 = smov [#allocation11]  }
  0x2b   : > { %s552_s11 = sshll.u32 %s3160_s13, 4  ;;  %s3918_s9 = sld [smem:[#allocation27_spill]]  ;;  %s3353_s11 = int_to_ptr.vmem [resolvable:$true] %s552_s11 }
  0x2c   : > { %p3363_p8 = pneg %p3347_p6 }
  0x31   : > { %s2824_s7 = scalar_lea.hbm %s3918_s9, 1024 }
  0x32   : > { %p2825_p7 = scmp.ne.s32.totalorder %s3918_s9, %s2824_s7  ;;  %p2831_p11 = scmp.lt.u32.totalorder %s2824_s7, %s3918_s9 }
  0x34   : > { %p2827_p9 = pnand %p3363_p8, %p2825_p7 }
  0x36   : > { %p2828_p10 = pneg %p2827_p9 }
  0x38   : > { %p2833_p12 = pnand %p2831_p11, %p2828_p10 }
  0x3a   : > { %2836 = shalt.err (!%p2833_p12)
}
  0x3b   : > { %s2837_s3 = scalar_lea.vmem %s3341_s17, 1024  ;;  %p2845_p5 = scmp.lt.s32.totalorder %s3341_s17, %s3341_s17 }
  0x3c   : > { %p2838_p13 = scmp.ne.s32.totalorder %s3341_s17, %s2837_s3  ;;  %p2846_p4 = scmp.lt.s32.totalorder %s2837_s3, %s2837_s3 }
  0x3e   : > { %p2840_p0 = pnand %p2838_p13, %p3363_p8  ;;  %p2847_p7 = por %p2846_p4, %p2845_p5 }
  0x40   : > { %p2841_p3 = pneg %p2840_p0 }
  0x42   : > { %p2848_p9 = pnand %p2847_p7, %p2841_p3 }
  0x44   : > { %2851 = shalt.err (!%p2848_p9)
}
  0x45   : > { %s3883_s10 = smov 64   ;;  %s3885_s7 = smov 4  }
  0x46   : > { %2559 = dma.hbm_to_vmem [thread:$0]  (!%p3347_p6), %s3918_s9, 1024, %s3341_s17, [#allocation6], %s3883_s10, %s3883_s10, %s3885_s7  }
  0x47   : > { %s3920_s6 = sld [smem:[#allocation31_spill]] }
  0x4d   : > { %s2852_s3 = scalar_lea.hbm %s3920_s6, 1024 }
  0x4e   : > { %p2853_p4 = scmp.ne.s32.totalorder %s3920_s6, %s2852_s3  ;;  %p2859_p12 = scmp.lt.u32.totalorder %s2852_s3, %s3920_s6 }
  0x50   : > { %p2855_p10 = pnand %p2853_p4, %p3363_p8 }
  0x52   : > { %p2856_p11 = pneg %p2855_p10 }
  0x54   : > { %p2861_p13 = pnand %p2859_p12, %p2856_p11 }
  0x56   : > { %2864 = shalt.err (!%p2861_p13)
}
  0x57   : > { %s2865_s17 = scalar_lea.vmem %s3351_s15, 1024  ;;  %p2873_p7 = scmp.lt.s32.totalorder %s3351_s15, %s3351_s15 }
  0x58   : > { %p2866_p0 = scmp.ne.s32.totalorder %s3351_s15, %s2865_s17  ;;  %p2874_p9 = scmp.lt.s32.totalorder %s2865_s17, %s2865_s17 }
  0x5a   : > { %p2868_p3 = pnand %p2866_p0, %p3363_p8  ;;  %p2875_p4 = por %p2874_p9, %p2873_p7 }
  0x5c   : > { %p2869_p5 = pneg %p2868_p3 }
  0x5e   : > { %p2876_p10 = pnand %p2875_p4, %p2869_p5 }
  0x60   : > { %2879 = shalt.err (!%p2876_p10)
}
  0x61   : > { %2565 = dma.hbm_to_vmem [thread:$0]  (!%p3347_p6), %s3920_s6, 1024, %s3351_s15, [#allocation9], %s3883_s10, %s3883_s10, %s3885_s7  }
  0x62   : > { %s3921_s12 = sld [smem:[#allocation37_spill]] }
  0x68   : > { %s2880_s20 = scalar_lea.hbm %s3921_s12, 2048 }
  0x69   : > { %p2881_p11 = scmp.ne.s32.totalorder %s3921_s12, %s2880_s20  ;;  %p2887_p0 = scmp.lt.u32.totalorder %s2880_s20, %s3921_s12 }
  0x6b   : > { %p2883_p12 = pnand %p2881_p11, %p3363_p8 }
  0x6d   : > { %p2884_p13 = pneg %p2883_p12 }
  0x6f   : > { %p2889_p3 = pnand %p2887_p0, %p2884_p13 }
  0x71   : > { %2892 = shalt.err (!%p2889_p3)
}
  0x72   : > { %s2893_s15 = scalar_lea.vmem %s3353_s11, 2048  ;;  %p2901_p4 = scmp.lt.s32.totalorder %s3353_s11, %s3353_s11 }
  0x73   : > { %p2894_p5 = scmp.ne.s32.totalorder %s3353_s11, %s2893_s15  ;;  %p2902_p10 = scmp.lt.s32.totalorder %s2893_s15, %s2893_s15 }
  0x75   : > { %p2896_p7 = pnand %p2894_p5, %p3363_p8  ;;  %p2903_p11 = por %p2902_p10, %p2901_p4 }
  0x77   : > { %p2897_p9 = pneg %p2896_p7 }
  0x79   : > { %p2904_p12 = pnand %p2903_p11, %p2897_p9 }
  0x7b   : > { %2907 = shalt.err (!%p2904_p12)
}
  0x7c   : > { %s3163_s17 = smov 128   ;;  %s3164_s27 = smov 8  }
  0x7d   : > { %2571 = dma.hbm_to_vmem [thread:$0]  (!%p3347_p6), %s3921_s12, 2048, %s3353_s11, [#allocation12], %s3163_s17, %s3163_s17, %s3164_s27  }
  0x7e   : > { %s3165_s26 = smov [#allocation7]   ;;  %s3166_s18 = smov [#allocation10]  }
  0x7f   : > { %s498_s20 = sshll.u32 %s3165_s26, 4  ;;  %s530_s13 = sshll.u32 %s3166_s18, 4  ;;  %s499_s20 = int_to_ptr.vmem [resolvable:$true] %s498_s20  ;;  %s3436_s13 = int_to_ptr.vmem [resolvable:$true] %s530_s13 }
  0x80   : > { %s3922_s4 = sld [smem:[#allocation29_spill]] }
  0x86   : > { %s2908_s15 = scalar_lea.hbm %s3922_s4, 1024 }
  0x87   : > { %p2909_p13 = scmp.ne.s32.totalorder %s3922_s4, %s2908_s15  ;;  %p2915_p5 = scmp.lt.u32.totalorder %s2908_s15, %s3922_s4 }
  0x89   : > { %p2911_p0 = pnand %p2909_p13, %p3363_p8 }
  0x8b   : > { %p2912_p3 = pneg %p2911_p0 }
  0x8d   : > { %p2917_p7 = pnand %p2915_p5, %p2912_p3 }
  0x8f   : > { %2920 = shalt.err (!%p2917_p7)
}
  0x90   : > { %s2921_s17 = scalar_lea.vmem %s499_s20, 1024  ;;  %p2929_p11 = scmp.lt.s32.totalorder %s499_s20, %s499_s20 }
  0x91   : > { %p2922_p9 = scmp.ne.s32.totalorder %s499_s20, %s2921_s17  ;;  %p2930_p12 = scmp.lt.s32.totalorder %s2921_s17, %s2921_s17 }
  0x93   : > { %p2924_p4 = pnand %p2922_p9, %p3363_p8  ;;  %p2931_p2 = por %p2930_p12, %p2929_p11 }
  0x95   : > { %p2925_p10 = pneg %p2924_p4 }
  0x97   : > { %p2932_p1 = pnand %p2931_p2, %p2925_p10 }
  0x99   : > { %2935 = shalt.err (!%p2932_p1)
}
  0x9a   : > { %s3923_s10 = smov 4   ;;  %s3924_s7 = smov 64  }
  0x9b   : > { %2562 = dma.hbm_to_vmem [thread:$0]  (!%p3347_p6), %s3922_s4, 1024, %s499_s20, [#allocation6], %s3924_s7, %s3924_s7, %s3923_s10  }
  0x9c   : > { %s3925_s8 = sld [smem:[#allocation33_spill]] }
  0xa2   : > { %s2936_s23 = scalar_lea.hbm %s3925_s8, 1024 }
  0xa3   : > { %p2937_p13 = scmp.ne.s32.totalorder %s3925_s8, %s2936_s23  ;;  %p2943_p0 = scmp.lt.u32.totalorder %s2936_s23, %s3925_s8 }
  0xa5   : > { %p2939_p1 = pnand %p2937_p13, %p3363_p8 }
  0xa7   : > { %p2940_p2 = pneg %p2939_p1 }
  0xa9   : > { %p2945_p3 = pnand %p2943_p0, %p2940_p2 }
  0xab   : > { %2948 = shalt.err (!%p2945_p3)
}
  0xac   : > { %s2949_s20 = scalar_lea.vmem %s3436_s13, 1024  ;;  %p2957_p4 = scmp.lt.s32.totalorder %s3436_s13, %s3436_s13 }
  0xad   : > { %p2950_p5 = scmp.ne.s32.totalorder %s3436_s13, %s2949_s20  ;;  %p2958_p10 = scmp.lt.s32.totalorder %s2949_s20, %s2949_s20 }
  0xaf   : > { %p2952_p7 = pnand %p2950_p5, %p3363_p8  ;;  %p2959_p11 = por %p2958_p10, %p2957_p4 }
  0xb1   : > { %p2953_p9 = pneg %p2952_p7 }
  0xb3   : > { %p2960_p12 = pnand %p2959_p11, %p2953_p9 }
  0xb5   : > { %2963 = shalt.err (!%p2960_p12)
}
  0xb6   : > { %2568 = dma.hbm_to_vmem [thread:$0]  (!%p3347_p6), %s3925_s8, 1024, %s3436_s13, [#allocation9], %s3924_s7, %s3924_s7, %s3923_s10  }
  0xb7   : > { %s3167_s25 = smov [#allocation13]   ;;  %s2964_s3 = scalar_lea.hbm %s3870_s14, 2048 }
  0xb8   : > { %s568_s26 = sshll.u32 %s3167_s25, 4  ;;  %p2965_p13 = scmp.ne.s32.totalorder %s3870_s14, %s2964_s3  ;;  %s569_s26 = int_to_ptr.vmem [resolvable:$true] %s568_s26 }
  0xb9   : > { %p2971_p0 = scmp.lt.u32.totalorder %s2964_s3, %s3870_s14 }
  0xba   : > { %p2967_p1 = pnand %p2965_p13, %p3363_p8 }
  0xbc   : > { %p2968_p2 = pneg %p2967_p1 }
  0xbe   : > { %p2973_p3 = pnand %p2971_p0, %p2968_p2 }
  0xc0   : > { %2976 = shalt.err (!%p2973_p3)
}
  0xc1   : > { %s2977_s13 = scalar_lea.vmem %s569_s26, 2048  ;;  %p2985_p4 = scmp.lt.s32.totalorder %s569_s26, %s569_s26 }
  0xc2   : > { %p2978_p5 = scmp.ne.s32.totalorder %s569_s26, %s2977_s13  ;;  %p2986_p10 = scmp.lt.s32.totalorder %s2977_s13, %s2977_s13 }
  0xc4   : > { %p2980_p7 = pnand %p2978_p5, %p3363_p8  ;;  %p2987_p11 = por %p2986_p10, %p2985_p4 }
  0xc6   : > { %p2981_p9 = pneg %p2980_p7 }
  0xc8   : > { %p2988_p12 = pnand %p2987_p11, %p2981_p9 }
  0xca   : > { %2991 = shalt.err (!%p2988_p12)
}
  0xcb   : > { %2574 = dma.hbm_to_vmem [thread:$0]  (!%p3347_p6), %s3870_s14, 2048, %s569_s26, [#allocation12], %s3924_s7, %s3924_s7, %s3923_s10  }
  0xcc   : > { %s2223_s5 = sadd.s32 4294967294, %s3156_s2   ;;  %s46_s16 = sadd.s32 1, %s3148_s21 }
  0xcd   : > { %s3926_s25 = sld [smem:[#allocation20_spill]]  ;;  %s49_s18 = sadd.s32 1, %s3152_s22 }
  0xce   : > { %p47_p8 = scmp.ge.s32.totalorder %s46_s16, 2  ;;  %s56_s23 = sadd.s32 1, %s3136_s19 }
  0xcf   : > { %p63_p13 = scmp.ne.s32.totalorder %s3136_s19, %s3132_s0  ;;  %p64_p1 = scmp.eq.s32.totalorder %s3156_s2, 0 }
  0xd0   : > { %s3969_s16 = smov (%p47_p8, %s46_s16), 0  ;;  %s3927_s3 = sld [smem:[#allocation23_spill]] }
  0xd1   : > { %s3971_s18 = smov (!%p47_p8, %s49_s18), %s3152_s22  ;;  %p3516_p2 = por %p64_p1, %p63_p13 }
  0xd2   : > { %p69_p6 = scmp.ne.s32.totalorder %s3132_s0, %s3128_s30  ;;  %p51_p0 = scmp.ge.s32.totalorder %s3971_s18, 2 }
  0xd3   : > { %s442_s15 = ssub.s32 %s3148_s21, %s3969_s16  ;;  %p3929_p3 = scmp.ne.s32.totalorder %s3912_s24, 0 }
  0xd4   : > { %s446_s11 = sadd.s32 1, %s3124_s29  ;;  %s3973_s18 = smov (%p51_p0, %s3971_s18), 0 }
  0xd5   : > { %p3526_p5 = por %p3929_p3, %p69_p6  ;;  %p456_p7 = scmp.ne.s32.totalorder %s3124_s29, %s3120_s28 }
  0xd6   : > { %p462_p9 = scmp.ne.s32.totalorder %s3120_s28, %s3926_s25  ;;  %s53_s20 = ssub.s32 %s3152_s22, %s3973_s18 }
  0xd7   : > { %p463_p4 = scmp.eq.s32.totalorder %s2223_s5, 3  ;;  %p54_p10 = scmp.eq.s32.totalorder %s53_s20, 0 }
  0xd8   : > { %s443_s30 = sor.u32 %s442_s15, %s53_s20  ;;  %p3931_p12 = scmp.ne.s32.totalorder %s3927_s3, 0 }
  0xd9   : > { %p444_p11 = scmp.eq.s32.totalorder %s443_s30, 0  ;;  %p3551_p13 = por %p463_p4, %p462_p9 }
  0xda   : > { %p3541_p8 = por %p3931_p12, %p456_p7  ;;  %p2589_p1 = scmp.lt.s32.totalorder %s3156_s2, 4 }
  0xdb   : > { %s3546_s17 = scalar_select %p54_p10, %s3136_s19, %s56_s23  }
  0xdc   : > { %s3932_s13 = scalar_select %p3541_p8, 1, 0 }
  0xdd   : > { %s3549_s27 = scalar_select %p444_p11, %s3124_s29, %s446_s11  }
  0xde   : > { %s3933_s4 = scalar_select %p3551_p13, 1, 0 }
  0xdf   : > { %s591_s25 = sand.u32 1, %s3136_s19   ;;  %s2325_s6 = sshll.u32 %s3152_s22, 7 }
  0xe0   : > { %s2232_s5 = sshll.u32 %s591_s25, 3  ;;  %s3934_s20 = sld [smem:[#allocation25_spill]] }
  0xe1   : > { %s595_s23 = scalar_lea.vmem [#allocation2], %s2232_s5  ;;  %p3565_p6 = pnand %p2589_p1, %p3516_p2 }
  0xe2   : > { %s602_s11 = sshll.u32 %s595_s23, 4  ;;  %s3571_s12 = scalar_lea.sflag [#allocation3], %s591_s25  ;;  %s3569_s11 = int_to_ptr.vmem [resolvable:$true] %s602_s11 }
  0xe3   : > { %p2994_p3 = pneg %p3565_p6 }
  0xe6   : > { %s3935_s9 = smov %s3934_s20  ;;  %s3561_s3 = scalar_lea.hbm %s3934_s20, %s2325_s6 }
  0xe7   : > { %s2992_s8 = scalar_lea.hbm %s3561_s3, 128  ;;  %s2997_s5 = scalar_lea.hbm %s3935_s9, 256 }
  0xe8   : > { %p2993_p0 = scmp.ne.s32.totalorder %s3561_s3, %s2992_s8  ;;  %p2998_p2 = scmp.lt.u32.totalorder %s3561_s3, %s3935_s9 }
  0xe9   : > { %p2999_p4 = scmp.lt.u32.totalorder %s2997_s5, %s2992_s8  ;;  %p3001_p11 = scmp.lt.u32.totalorder %s2992_s8, %s3561_s3 }
  0xea   : > { %p2995_p7 = pnand %p2994_p3, %p2993_p0 }
  0xeb   : > { %p3000_p10 = por %p2999_p4, %p2998_p2 }
  0xec   : > { %p2996_p9 = pneg %p2995_p7 }
  0xed   : > { %p3002_p12 = por %p3001_p11, %p3000_p10 }
  0xef   : > { %p3003_p1 = pnand %p3002_p12, %p2996_p9 }
  0xf1   : > { %3006 = shalt.err (!%p3003_p1)
}
  0xf2   : > { %s3007_s25 = scalar_lea.vmem %s3569_s11, 128  ;;  %s3168_s23 = smov [#allocation2]  }
  0xf3   : > { %p3008_p0 = scmp.ne.s32.totalorder %s3569_s11, %s3007_s25  ;;  %s3012_s6 = sshll.u32 %s3168_s23, 4  ;;  %s3013_s6 = int_to_ptr.vmem [resolvable:$false] %s3012_s6 }
  0xf4   : > { %s3014_s26 = scalar_lea.vmem %s3013_s6, 256  ;;  %p3015_p8 = scmp.lt.s32.totalorder %s3569_s11, %s3013_s6 }
  0xf5   : > { %p3010_p7 = pnand %p3008_p0, %p2994_p3  ;;  %p3016_p2 = scmp.lt.s32.totalorder %s3014_s26, %s3007_s25 }
  0xf7   : > { %p3011_p13 = pneg %p3010_p7  ;;  %p3017_p4 = por %p3016_p2, %p3015_p8 }
  0xf9   : > { %p3018_p10 = pnand %p3017_p4, %p3011_p13 }
  0xfb   : > { %3021 = shalt.err (!%p3018_p10)
}
  0xfc   : > { %2578 = dma.hbm_to_vmem [thread:$0]  (!%p3565_p6), %s3561_s3, 128, %s3569_s11, %s3571_s12, %s3924_s7, %s3924_s7, %s3923_s10  }
  0xfd   : > { %s3937_s8 = sld [smem:[#allocation24_spill]] }
 0x103   : > { %p3938_p3 = scmp.ne.s32.totalorder %s3937_s8, 0 }
 0x104   : > { %s622_s5 = sand.u32 (!%p3938_p3), 1, %s3132_s0  }
 0x105   : > { %620 = sbr.rel (%p3938_p3) target bundleno = 2830 (0xb0e), region = 92  ;;  %s3605_s15 = sshll.u32 (!%p3938_p3), %s622_s5, 3 }
 0x106   : > { %s623_s20 = scalar_lea.sflag (!%p3938_p3), [#allocation3], %s622_s5  ;;  %s626_s25 = scalar_lea.vmem (!%p3938_p3), [#allocation2], %s3605_s15 }
 0x10c   : > { %3095 = dma.done.wait (%p3526_p5), %s623_s20, 128  }
 0x10d   : > { %3097 = vsyncadd (%p3526_p5), %s623_s20, 4294967168  ;;  %p3939_p8 = scmp.ne.s32.totalorder %s3912_s24, 0 }
 0x10f   : > { %3099 = dma.done.wait (%p3939_p8), [#allocation6], 2048  }
 0x110   : > { %3101 = vsyncadd (%p3939_p8), [#allocation6], 4294965248 }
 0x111   : > { %3103 = dma.done.wait (%p3939_p8), [#allocation9], 2048  }
 0x112   : > { %3105 = vsyncadd (%p3939_p8), [#allocation9], 4294965248 }
 0x113   : > { %3107 = dma.done.wait (%p3939_p8), [#allocation12], 4096  }
 0x114   : > { %3109 = vsyncadd (%p3939_p8), [#allocation12], 4294963200  ;;  %v3169_v0 = vmov 0.0   ;;  %vm3170_vm0 = vmmov 0   ;;  %v2731_v1 = vld [vmem:[#allocation7] sm:$0xff]   ;;  %v2732_v2 = vld [vmem:[#allocation7 + $0x8] sm:$0xff]   ;;  %v739_v19 = vlaneseq }
 0x115   : > { %2420 = vmatprep.subr.bf16.mxu1 %v3169_v0  ;;  %2400 = vmatprep.subr.bf16.mxu0 %v3169_v0  ;;  %s3940_s12 = sld [smem:[#allocation21_spill]]  ;;  %v2733_v3 = vld [vmem:[#allocation5] sm:$0xff]   ;;  %v2735_v4 = vld [vmem:[#allocation5 + $0x8] sm:$0xff]   ;;  %v2734_v5 = vld [vmem:[#allocation7 + $0x10] sm:$0xff]   ;;  %s3941_s30 = sld [smem:[#allocation30_spill]]  ;;  %vm1128_vm1 = vcmask 261120  }
 0x116   : > { %2436 = vmatprep.mubr.msk.bf16.mxu1 %vm3170_vm0, %v3169_v0  ;;  %2416 = vmatprep.mubr.msk.bf16.mxu0 %vm3170_vm0, %v3169_v0  ;;  %v2737_v6 = vld [vmem:[#allocation5 + $0x10] sm:$0xff]   ;;  %v2736_v7 = vld [vmem:[#allocation7 + $0x18] sm:$0xff]   ;;  %v2738_v9 = vld [vmem:[#allocation7 + $0x20] sm:$0xff]   ;;  %v3661_v20 = vshrl.u32 %v739_v19, 7  ;;  %s3942_s26 = sld [smem:[#allocation28_spill]]  ;;  %s3171_s8 = smov 64  }
 0x117   : > { %2421 = vmatpush3.bf16.msra.mxu1 %v2731_v1  ;;  %2401 = vmatpush3.bf16.msra.mxu0 %v2733_v3  ;;  %v2739_v8 = vld [vmem:[#allocation5 + $0x18] sm:$0xff]   ;;  %v2741_v10 = vld [vmem:[#allocation5 + $0x20] sm:$0xff]   ;;  %v2740_v11 = vld [vmem:[#allocation7 + $0x28] sm:$0xff]   ;;  %s3172_s5 = smov 96   ;;  %s3173_s15 = smov 32   ;;  %vm1313_vm2 = vcmask 130048  }
 0x118   : > { %2422 = vmatprep.subr.bf16.mxu1 %v3169_v0  ;;  %2402 = vmatprep.subr.bf16.mxu0 %v3169_v0  ;;  %v2743_v12 = vld [vmem:[#allocation5 + $0x28] sm:$0xff]   ;;  %v2742_v13 = vld [vmem:[#allocation7 + $0x30] sm:$0xff]   ;;  %v2744_v15 = vld [vmem:[#allocation7 + $0x38] sm:$0xff]   ;;  %v3670_v23 = vsub.s32 0, %v3661_v20  ;;  %s3943_s20 = sld [smem:[#allocation22_spill]]  ;;  %vm1547_vm3 = vcmask 523264  }
 0x119   : > { %v2745_v14 = vld [vmem:[#allocation5 + $0x30] sm:$0xff]   ;;  %v2747_v16 = vld [vmem:[#allocation5 + $0x38] sm:$0xff]   ;;  %v2748_v44 = vld [vmem:[#allocation8] sm:$0xff]   ;;  %vm1549_vm4 = vcmask 785408   ;;  %s3949_s3 = sld [smem:[#allocation38_spill]]  ;;  %s3950_s23 = sld [smem:[#allocation39_spill]] }
 0x11a   : > { %v3646_v17 = vld [vmem:[%s626_s25] sm:$0xff]   ;;  %v2749_v45 = vld [vmem:[#allocation8 + $0x8] sm:$0xff]   ;;  %v2752_v48 = vld [vmem:[#allocation8 + $0x20] sm:$0xff]   ;;  %p3954_p6 = scmp.ne.s32.totalorder %s3932_s13, 0 }
 0x11b   : > { %2423 = vmatpush3.bf16.msra.mxu1 %v2732_v2  ;;  %2403 = vmatpush3.bf16.msra.mxu0 %v2735_v4  ;;  %s2244_s24 = sshll.u32 %s3940_s12, 3  ;;  %v847_v21 = vld [vmem:[%s3941_s30] sm:$0x1]  ;;  %v2751_v47 = vld [vmem:[#allocation8 + $0x18] sm:$0xff]   ;;  %v2753_v49 = vld [vmem:[#allocation8 + $0x28] sm:$0xff]   ;;  %s3945_s30 = sld [smem:[#allocation32_spill]] }
 0x11c   : > { %2424 = vmatprep.subr.bf16.mxu1 %v3169_v0  ;;  %2404 = vmatprep.subr.bf16.mxu0 %v3169_v0  ;;  %s713_s10 = sshra.s32 %s2244_s24, 3  ;;  %v737_v22 = vld [vmem:[%s3942_s26] sm:$0x1]  ;;  %v848_v24 = vunpack.c.l.bf16 %v847_v21  ;;  %v2755_v60 = vld [vmem:[#allocation8 + $0x38] sm:$0xff]   ;;  %s3946_s26 = sld [smem:[#allocation34_spill]] }
 0x11d   : > { %s2245_s7 = sshll.u32 %s713_s10, 2  ;;  %v738_v25 = vunpack.c.l.bf16 %v737_v22  ;;  %v2750_v46 = vld [vmem:[#allocation8 + $0x10] sm:$0xff]   ;;  %s3948_s10 = sld [smem:[#allocation36_spill]] }
 0x11e   : > { %s716_s1 = scalar_lea.vmem %s626_s25, %s2245_s7 [#allocation2]  ;;  %v852_v26 = vrot.slane %v848_v24, %v3670_v23  ;;  %v2754_v53 = vld [vmem:[#allocation8 + $0x30] sm:$0xff]   ;;  %p706_p5 = scmp.lt.s32.totalorder %s3943_s20, 1 }
 0x11f   : > { %2425 = vmatpush3.bf16.msra.mxu1 %v2734_v5  ;;  %2405 = vmatpush3.bf16.msra.mxu0 %v2737_v6  ;;  %v3651_v18 = vld [vmem:[%s716_s1] sm:$0xf]  ;;  %v742_v27 = vrot.slane %v738_v25, %v3670_v23  ;;  %s3944_s7 = sld [smem:[#allocation26_spill]]  ;;  %s703_s24 = sand.u32 1, %s3120_s28  }
 0x120   : > { %2426 = vmatprep.subr.bf16.mxu1 %v3169_v0  ;;  %2406 = vmatprep.subr.bf16.mxu0 %v3169_v0  ;;  %s707_s25 = scalar_select %p706_p5, %s3943_s20, 1 }
 0x121   : > { %v964_v22 = vld [vmem:[%s3945_s30] sm:$0x1] }
 0x122   : > { %v965_v24 = vunpack.c.l.bf16 %v964_v22 }
 0x123   : > { %2427 = vmatpush3.bf16.msra.mxu1 %v2736_v7  ;;  %2407 = vmatpush3.bf16.msra.mxu0 %v2739_v8 }
 0x124   : > { %2428 = vmatprep.subr.bf16.mxu1 %v3169_v0  ;;  %2408 = vmatprep.subr.bf16.mxu0 %v3169_v0  ;;  %v969_v25 = vrot.slane %v965_v24, %v3670_v23 }
 0x125   : > { %s708_s1 = scalar_lea.vmem %s3944_s7, %s707_s25  ;;  %s3952_s25 = sld [smem:[#allocation41_spill]] }
 0x126   : > { %s2321_s7 = sshll.u32 %s3943_s20, 1  ;;  %s2056_s20 = scalar_lea.sflag [#allocation4], %s703_s24 }
 0x127   : > { %2429 = vmatpush3.bf16.msra.mxu1 %v2738_v9  ;;  %2409 = vmatpush3.bf16.msra.mxu0 %v2741_v10  ;;  %v718_v10 = vld [vmem:[%s708_s1] sm:$0x1]  ;;  %s2067_s1 = sadd.s32 %s3940_s12, %s2321_s7  ;;  %s3175_s12 = smov [#allocation14]  }
 0x128   : > { %2430 = vmatprep.subr.bf16.mxu1 %v3169_v0  ;;  %2410 = vmatprep.subr.bf16.mxu0 %v3169_v0 }
 0x12b   : > { %2431 = vmatpush3.bf16.msra.mxu1 %v2740_v11  ;;  %2411 = vmatpush3.bf16.msra.mxu0 %v2743_v12  ;;  %v2246_v11 = vadd.f32 -1.0, %v718_v10 }
 0x12c   : > { %2432 = vmatprep.subr.bf16.mxu1 %v3169_v0  ;;  %2412 = vmatprep.subr.bf16.mxu0 %v3169_v0 }
 0x12d   : > { %v720_v12 = vmul.f32 1e+09, %v2246_v11 }
 0x12f   : > { %2433 = vmatpush3.bf16.msra.mxu1 %v2742_v13  ;;  %2413 = vmatpush3.bf16.msra.mxu0 %v2745_v14  ;;  %v1126_v13 = vrot.slane %v720_v12, %v3670_v23 }
 0x130   : > { %2434 = vmatprep.subr.bf16.mxu1 %v3169_v0  ;;  %2414 = vmatprep.subr.bf16.mxu0 %v3169_v0 }
 0x133   : > { %2435 = vmatpush3.bf16.msra.mxu1 %v2744_v15  ;;  %2415 = vmatpush3.bf16.msra.mxu0 %v2747_v16 }
 0x134   : > { %2460 = vmatprep.subr.bf16.mxu1 %v3169_v0  ;;  %2440 = vmatprep.subr.bf16.mxu0 %v3169_v0 }
 0x136   : > { %2437 = vmatmul.mubr.bf16.vlgmr.msra.gmra.mrb[0].mxu1 %v3646_v17  ;;  %2417 = vmatmul.mubr.bf16.vlgmr.msra.gmra.mrb[0].mxu0 %v3651_v18 }
 0x137   : > { %2462 = vmatprep.mubr.msk.bf16.mxu1 %vm3170_vm0, %v3169_v0  ;;  %2456 = vmatprep.mubr.msk.bf16.mxu0 %vm3170_vm0, %v3169_v0 }
 0x138   : > { %2441 = vmatpush3.bf16.msra.mxu0 %v2748_v44 }
 0x139   : > { %2442 = vmatprep.subr.bf16.mxu0 %v3169_v0 }
 0x13c   : > { %2443 = vmatpush3.bf16.msra.mxu0 %v2749_v45 }
 0x13d   : > { %2444 = vmatprep.subr.bf16.mxu0 %v3169_v0 }
 0x140   : > { %2445 = vmatpush3.bf16.msra.mxu0 %v2750_v46 }
 0x141   : > { %2446 = vmatprep.subr.bf16.mxu0 %v3169_v0 }
 0x144   : > { %2447 = vmatpush3.bf16.msra.mxu0 %v2751_v47 }
 0x145   : > { %2448 = vmatprep.subr.bf16.mxu0 %v3169_v0 }
 0x148   : > { %2449 = vmatpush3.bf16.msra.mxu0 %v2752_v48 }
 0x149   : > { %2450 = vmatprep.subr.bf16.mxu0 %v3169_v0 }
 0x14c   : > { %2451 = vmatpush3.bf16.msra.mxu0 %v2753_v49 }
 0x14d   : > { %2452 = vmatprep.subr.bf16.mxu0 %v3169_v0 }
 0x150   : > { %2453 = vmatpush3.bf16.msra.mxu0 %v2754_v53 }
 0x151   : > { %2454 = vmatprep.subr.bf16.mxu0 %v3169_v0 }
 0x154   : > { %2455 = vmatpush3.bf16.msra.mxu0 %v2755_v60 }
 0x155   : > { %2508 = vmatprep.subr.bf16.mxu0 %v3169_v0 }
 0x157   : > { %2457 = vmatmul.mubr.bf16.vlgmr.msra.gmra.mrb[4].mxu0 %v3646_v17 }
 0x158   : > { %2524 = vmatprep.mubr.msk.bf16.mxu0 %vm3170_vm0, %v3169_v0 }
 0x209   : > { %v941_v28 = vpop.f32.mrb[0].mxu1  ;;  %v825_v31 = vpop.f32.mrb[0].mxu0 }
 0x20a   : > { %v2438_v29 = vpop.f32.mrb[1].mxu1  ;;  %v942_v32 = vadd.f32 %v941_v28, %v852_v26  ;;  %v826_v35 = vadd.f32 %v825_v31, %v742_v27  ;;  %v2418_v36 = vpop.f32.mrb[1].mxu0 }
 0x20b   : > { %v944_v30 = vpop.f32.mrb[2].mxu1  ;;  %v828_v37 = vpop.f32.mrb[2].mxu0 }
 0x20c   : > { %v945_v33 = vadd.f32 %v944_v30, %v852_v26  ;;  %v2439_v34 = vpop.f32.mrb[3].mxu1  ;;  %v2419_v40 = vpop.f32.mrb[3].mxu0  ;;  %v1059_v41 = vmul.f32 0.17677669, %v826_v35 }
 0x20e   : > { %v2706_v38 = vpack.i.bf16 %v945_v33, %v942_v32  ;;  %v1094_v39 = vpack.c.bf16 %v945_v33, %v942_v32  ;;  %v1070_v43 = vpack.c.bf16 %v1059_v41, %v1059_v41 }
 0x210   : > { %2707 = vrot.lane.b32.xlu1 %v2706_v38, %s3171_s8  ;;  %2702 = vrot.lane.b32.xlu0 %v2706_v38, %s3172_s5  ;;  %v1133_v42 = vsel %vm1128_vm1, %v1094_v39, 0 }
 0x211   : > { %2461 = vmatpush3.bf16.xpose.msra.mxu1 %v1133_v42 }
 0x212   : > { %2466 = vmatprep.subr.bf16.mxu1 %v3169_v0 }
 0x214   : > { %1061 = vrot.lane.b32.xlu0 %v1059_v41, %s3172_s5  ;;  %1064 = vrot.lane.b32.xlu1 %v1059_v41, %s3171_s8 }
 0x218   : > { %2712 = vrot.lane.b32.xlu0 %v2706_v38, %s3173_s15  ;;  %2463 = vmatmul.mubr.msk.bf16.vlgmr.msra.gmra.mrb[4].mxu1 %vm1128_vm1, %v1070_v43 }
 0x219   : > { %1067 = vrot.lane.b32.xlu1 %v1059_v41, %s3173_s15  ;;  %2468 = vmatprep.mubr.msk.bf16.mxu1 %vm3170_vm0, %v3169_v0 }
 0x22a   : > { %v1052_v26 = vpop.f32.mrb[4].mxu0 }
 0x22b   : > { %v1053_v28 = vadd.f32 %v1052_v26, %v969_v25  ;;  %v2458_v29 = vpop.f32.mrb[5].mxu0 }
 0x22c   : > { %v1055_v32 = vpop.f32.mrb[6].mxu0 }
 0x22d   : > { %v1056_v34 = vadd.f32 %v1055_v32, %v969_v25  ;;  %v2459_v35 = vpop.f32.mrb[7].mxu0 }
 0x22f   : > { %v2716_v38 = vpack.i.bf16 %v1056_v34, %v1053_v28  ;;  %v1118_v39 = vpack.c.bf16 %v1056_v34, %v1053_v28 }
 0x282   : > { %v2703_v50 = vpop.permute.xlu0 %2702  ;;  %v2708_v54 = vpop.permute.xlu1 %2707 }
 0x283   : > { %v2705_v51 = vunpack.i.h.bf16 %v2703_v50  ;;  %v2704_v52 = vunpack.i.l.bf16 %v2703_v50  ;;  %v2710_v57 = vunpack.i.h.bf16 %v2708_v54  ;;  %v2709_v58 = vunpack.i.l.bf16 %v2708_v54 }
 0x285   : > { %v1095_v55 = vpack.c.bf16 %v2705_v51, %v2704_v52  ;;  %v1096_v61 = vpack.c.bf16 %v2710_v57, %v2709_v58 }
 0x286   : > { %v1062_v56 = vpop.permute.xlu0 %1061  ;;  %v1065_v5 = vpop.permute.xlu1 %1064 }
 0x287   : > { %v1179_v59 = vsel %vm1128_vm1, %v1095_v55, 0  ;;  %v1071_v62 = vpack.c.bf16 %v1062_v56, %v1062_v56  ;;  %v1225_v3 = vsel %vm1128_vm1, %v1096_v61, 0  ;;  %v1072_v6 = vpack.c.bf16 %v1065_v5, %v1065_v5 }
 0x288   : > { %2467 = vmatpush3.bf16.xpose.msra.mxu1 %v1179_v59 }
 0x289   : > { %2472 = vmatprep.subr.bf16.mxu1 %v3169_v0 }
 0x28a   : > { %v2713_v63 = vpop.permute.xlu0 %2712 }
 0x28b   : > { %v2715_v1 = vunpack.i.h.bf16 %v2713_v63  ;;  %v2714_v2 = vunpack.i.l.bf16 %v2713_v63  ;;  %v1068_v8 = vpop.permute.xlu1 %1067 }
 0x28c   : > { %v1073_v9 = vpack.c.bf16 %v1068_v8, %v1068_v8 }
 0x28d   : > { %v1097_v4 = vpack.c.bf16 %v2715_v1, %v2714_v2 }
 0x28f   : > { %2469 = vmatmul.mubr.msk.bf16.vlgmr.msra.gmra.mrb[8].mxu1 %vm1128_vm1, %v1071_v62  ;;  %v1271_v7 = vsel %vm1128_vm1, %v1097_v4, 0 }
 0x290   : > { %2473 = vmatpush3.bf16.xpose.msra.mxu1 %v1225_v3  ;;  %2474 = vmatprep.mubr.msk.bf16.mxu1 %vm3170_vm0, %v3169_v0 }
 0x291   : > { %2478 = vmatprep.subr.bf16.mxu1 %v3169_v0 }
 0x297   : > { %2475 = vmatmul.mubr.msk.bf16.vlgmr.msra.gmra.mrb[12].mxu1 %vm1128_vm1, %v1072_v6 }
 0x298   : > { %2479 = vmatpush3.bf16.xpose.msra.mxu1 %v1271_v7  ;;  %2480 = vmatprep.mubr.msk.bf16.mxu1 %vm3170_vm0, %v3169_v0 }
 0x299   : > { %2484 = vmatprep.subr.bf16.mxu1 %v3169_v0 }
 0x29f   : > { %2481 = vmatmul.mubr.msk.bf16.vlgmr.msra.gmra.mrb[16].mxu1 %vm1128_vm1, %v1073_v9 }
 0x2a0   : > { %2486 = vmatprep.mubr.msk.bf16.mxu1 %vm3170_vm0, %v3169_v0  ;;  %2485 = vmatpush3.bf16.msra.mxu1 %v1118_v39 }
 0x2a1   : > { %2490 = vmatprep.subr.bf16.mxu1 %v3169_v0 }
 0x2eb   : > { %v1169_v14 = vpop.f32.mrb[4].mxu1 }
 0x2ec   : > { %v1170_v15 = vadd.f32 %v1169_v14, %v1126_v13  ;;  %v2464_v16 = vpop.f32.mrb[5].mxu1 }
 0x2ed   : > { %v1172_v17 = vpop.f32.mrb[6].mxu1 }
 0x2ee   : > { %v1314_v19 = vsel %vm1313_vm2, %v1170_v15, -inf  ;;  %v2465_v21 = vpop.f32.mrb[7].mxu1 }
 0x2ef   : > { %1315 = vmax.xlane.f32.xlu0 %v1314_v19 }
 0x362   : > { %v1215_v27 = vpop.f32.mrb[8].mxu1 }
 0x363   : > { %v1216_v30 = vadd.f32 %v1215_v27, %v1126_v13  ;;  %v2470_v31 = vpop.f32.mrb[9].mxu1 }
 0x364   : > { %v1218_v33 = vpop.f32.mrb[10].mxu1 }
 0x365   : > { %v2471_v36 = vpop.f32.mrb[11].mxu1  ;;  %v1317_v37 = vsel %vm1313_vm2, %v1216_v30, -inf }
 0x366   : > { %1318 = vmax.xlane.f32.xlu1 %v1317_v37 }
 0x36a   : > { %v1261_v40 = vpop.f32.mrb[12].mxu1 }
 0x36b   : > { %v1262_v41 = vadd.f32 %v1261_v40, %v1126_v13  ;;  %v2476_v42 = vpop.f32.mrb[13].mxu1 }
 0x36c   : > { %v1264_v43 = vpop.f32.mrb[14].mxu1 }
 0x36d   : > { %v2477_v44 = vpop.f32.mrb[15].mxu1  ;;  %v1320_v45 = vsel %vm1313_vm2, %v1262_v41, -inf }
 0x36e   : > { %1321 = vmax.xlane.f32.xlu0 %v1320_v45  ;;  %v2756_v44 = vld [vmem:[#allocation10] sm:$0xff]   ;;  %v2757_v45 = vld [vmem:[#allocation10 + $0x8] sm:$0xff]  }
 0x36f   : > { %2509 = vmatpush3.bf16.msra.mxu0 %v2756_v44  ;;  %v2792_v44 = vld [vmem:[#allocation13 + $0x50] sm:$0xff]  }
 0x370   : > { %2510 = vmatprep.subr.bf16.mxu0 %v3169_v0 }
 0x372   : > { %v1307_v46 = vpop.f32.mrb[16].mxu1 }
 0x373   : > { %v1308_v47 = vadd.f32 %v1307_v46, %v1126_v13  ;;  %v2482_v48 = vpop.f32.mrb[17].mxu1  ;;  %2511 = vmatpush3.bf16.msra.mxu0 %v2757_v45  ;;  %v2758_v46 = vld [vmem:[#allocation10 + $0x10] sm:$0xff]  }
 0x374   : > { %v1310_v49 = vpop.f32.mrb[18].mxu1  ;;  %2512 = vmatprep.subr.bf16.mxu0 %v3169_v0  ;;  %v2760_v48 = vld [vmem:[#allocation10 + $0x20] sm:$0xff]   ;;  %v2793_v45 = vld [vmem:[#allocation13 + $0x10] sm:$0xff]  }
 0x375   : > { %v2483_v50 = vpop.f32.mrb[19].mxu1  ;;  %v1323_v51 = vsel %vm1313_vm2, %v1308_v47, -inf  ;;  %v2761_v49 = vld [vmem:[#allocation10 + $0x28] sm:$0xff]  }
 0x376   : > { %1324 = vmax.xlane.f32.xlu0 %v1323_v51 }
 0x377   : > { %2513 = vmatpush3.bf16.msra.mxu0 %v2758_v46  ;;  %v2794_v46 = vld [vmem:[#allocation13 + $0x58] sm:$0xff]  }
 0x378   : > { %2514 = vmatprep.subr.bf16.mxu0 %v3169_v0 }
 0x37c   : > { %v1316_v52 = vpop.xlane.xlu0 %1315 }
 0x37d   : > { %v1326_v53 = vsub.f32 %v1170_v15, %v1316_v52  ;;  %v2762_v52 = vld [vmem:[#allocation10 + $0x30] sm:$0xff]  }
 0x37f   : > { %v1330_v54 = vmul.f32 1.442695, %v1326_v53 }
 0x381   : > { %2804 = vpow2.f32 %v1330_v54 }
 0x38b   : > { %v2805_v55 = vpop.eup %2804 }
 0x38c   : > { %v1338_v56 = vsel %vm1313_vm2, %v2805_v55, 0.0 }
 0x38d   : > { %1339 = vadd.xlane.f32.xlu1 %v1338_v56 }
 0x39e   : > { %2717 = vrot.lane.b32.xlu1 %v2716_v38, %s3172_s5 }
 0x3f3   : > { %v1319_v57 = vpop.xlane.xlu1 %1318 }
 0x3f4   : > { %v1327_v58 = vsub.f32 %v1216_v30, %v1319_v57 }
 0x3f6   : > { %v1332_v59 = vmul.f32 1.442695, %v1327_v58 }
 0x3f8   : > { %2806 = vpow2.f32 %v1332_v59 }
 0x3fb   : > { %v1322_v60 = vpop.xlane.xlu0 %1321 }
 0x3fc   : > { %v1328_v61 = vsub.f32 %v1262_v41, %v1322_v60 }
 0x3fe   : > { %v1334_v62 = vmul.f32 1.442695, %v1328_v61 }
 0x400   : > { %2808 = vpow2.f32 %v1334_v62 }
 0x402   : > { %v2807_v63 = vpop.eup %2806 }
 0x403   : > { %v1325_v1 = vpop.xlane.xlu0 %1324  ;;  %v1341_v2 = vsel %vm1313_vm2, %v2807_v63, 0.0 }
 0x404   : > { %v1329_v3 = vsub.f32 %v1308_v47, %v1325_v1  ;;  %1342 = vadd.xlane.f32.xlu0 %v1341_v2  ;;  %v2759_v47 = vld [vmem:[#allocation10 + $0x18] sm:$0xff]  }
 0x405   : > { %2515 = vmatpush3.bf16.msra.mxu0 %v2759_v47  ;;  %v2795_v47 = vld [vmem:[#allocation13 + $0x18] sm:$0xff]  }
 0x406   : > { %v1336_v4 = vmul.f32 1.442695, %v1329_v3  ;;  %2516 = vmatprep.subr.bf16.mxu0 %v3169_v0 }
 0x408   : > { %2810 = vpow2.f32 %v1336_v4 }
 0x409   : > { %2517 = vmatpush3.bf16.msra.mxu0 %v2760_v48  ;;  %v2796_v48 = vld [vmem:[#allocation13 + $0x60] sm:$0xff]  }
 0x40a   : > { %v2809_v5 = vpop.eup %2808  ;;  %2518 = vmatprep.subr.bf16.mxu0 %v3169_v0 }
 0x40b   : > { %v1344_v6 = vsel %vm1313_vm2, %v2809_v5, 0.0 }
 0x40c   : > { %1345 = vadd.xlane.f32.xlu1 %v1344_v6 }
 0x40d   : > { %2519 = vmatpush3.bf16.msra.mxu0 %v2761_v49  ;;  %v2797_v49 = vld [vmem:[#allocation13 + $0x20] sm:$0xff]  }
 0x40e   : > { %2520 = vmatprep.subr.bf16.mxu0 %v3169_v0 }
 0x411   : > { %2521 = vmatpush3.bf16.msra.mxu0 %v2762_v52 }
 0x412   : > { %v2811_v7 = vpop.eup %2810  ;;  %2522 = vmatprep.subr.bf16.mxu0 %v3169_v0 }
 0x413   : > { %v1347_v8 = vsel %vm1313_vm2, %v2811_v7, 0.0 }
 0x414   : > { %1348 = vadd.xlane.f32.xlu0 %v1347_v8 }
 0x41a   : > { %v1340_v9 = vpop.xlane.xlu1 %1339 }
 0x41b   : > { %2812 = vrcp.f32 %v1340_v9 }
 0x41d   : > { %2727 = vrot.lane.b32.xlu1 %v2716_v38, %s3173_s15 }
 0x41e   : > { %v2718_v10 = vpop.permute.xlu1 %2717 }
 0x41f   : > { %v2720_v11 = vunpack.i.h.bf16 %v2718_v10  ;;  %v2719_v12 = vunpack.i.l.bf16 %v2718_v10  ;;  %v1662_v10 = vunpack.c.l.bf16 %v3651_v18 }
 0x421   : > { %v1119_v15 = vpack.c.bf16 %v2720_v11, %v2719_v12 }
 0x425   : > { %v2813_v13 = vpop.eup %2812 }
 0x426   : > { %v1354_v14 = vmul.f32 %v2813_v13, %v2805_v55  ;;  %v2763_v55 = vld [vmem:[#allocation10 + $0x38] sm:$0xff]  }
 0x427   : > { %2523 = vmatpush3.bf16.msra.mxu0 %v2763_v55 }
 0x428   : > { %v1358_v16 = vpack.c.bf16 %v1354_v14, %v1354_v14 }
 0x42a   : > { %2487 = vmatmul.mubr.msk.bf16.vlgmr.msra.gmra.mrb[20].mxu1 %vm1313_vm2, %v1358_v16  ;;  %2722 = vrot.lane.b32.xlu0 %v2716_v38, %s3171_s8 }
 0x42b   : > { %2491 = vmatpush3.bf16.msra.mxu1 %v1119_v15  ;;  %2492 = vmatprep.mubr.msk.bf16.mxu1 %vm3170_vm0, %v3169_v0 }
 0x42c   : > { %2496 = vmatprep.subr.bf16.mxu1 %v3169_v0 }
 0x491   : > { %v1343_v17 = vpop.xlane.xlu0 %1342 }
 0x492   : > { %2814 = vrcp.f32 %v1343_v17  ;;  %v2764_v17 = vld [vmem:[#allocation11] ss:$8 sps:$4 sm:$0xff]  }
 0x499   : > { %v1346_v19 = vpop.xlane.xlu1 %1345 }
 0x49a   : > { %2816 = vrcp.f32 %v1346_v19  ;;  %v2766_v19 = vld [vmem:[#allocation11 + $0x4] ss:$8 sps:$4 sm:$0xff]  }
 0x49c   : > { %v2815_v21 = vpop.eup %2814 }
 0x49d   : > { %v1355_v22 = vmul.f32 %v2815_v21, %v2807_v63  ;;  %v2728_v27 = vpop.permute.xlu1 %2727  ;;  %v2769_v21 = vld [vmem:[#allocation11 + $0x14] ss:$8 sps:$4 sm:$0xff]  }
 0x49e   : > { %v2730_v32 = vunpack.i.h.bf16 %v2728_v27  ;;  %v2729_v33 = vunpack.i.l.bf16 %v2728_v27 }
 0x49f   : > { %v1359_v24 = vpack.c.bf16 %v1355_v22, %v1355_v22  ;;  %v2767_v22 = vld [vmem:[#allocation11 + $0x10] ss:$8 sps:$4 sm:$0xff]  }
 0x4a0   : > { %v1121_v37 = vpack.c.bf16 %v2730_v32, %v2729_v33  ;;  %v2776_v32 = vld [vmem:[#allocation11 + $0x40] ss:$8 sps:$4 sm:$0xff]   ;;  %v2781_v33 = vld [vmem:[#allocation11 + $0x54] ss:$8 sps:$4 sm:$0xff]  }
 0x4a1   : > { %2493 = vmatmul.mubr.msk.bf16.vlgmr.msra.gmra.mrb[24].mxu1 %vm1313_vm2, %v1359_v24  ;;  %v1349_v25 = vpop.xlane.xlu0 %1348  ;;  %v2772_v24 = vld [vmem:[#allocation11 + $0x24] ss:$8 sps:$4 sm:$0xff]  }
 0x4a2   : > { %2818 = vrcp.f32 %v1349_v25  ;;  %2498 = vmatprep.mubr.msk.bf16.mxu1 %vm3170_vm0, %v3169_v0  ;;  %v2770_v25 = vld [vmem:[#allocation11 + $0x20] ss:$8 sps:$4 sm:$0xff]  }
 0x4a4   : > { %v2817_v26 = vpop.eup %2816 }
 0x4a5   : > { %v2723_v28 = vpop.permute.xlu0 %2722  ;;  %v1356_v31 = vmul.f32 %v2817_v26, %v2809_v5 }
 0x4a6   : > { %v2725_v29 = vunpack.i.h.bf16 %v2723_v28  ;;  %v2724_v30 = vunpack.i.l.bf16 %v2723_v28 }
 0x4a7   : > { %v1360_v35 = vpack.c.bf16 %v1356_v31, %v1356_v31  ;;  %v2778_v31 = vld [vmem:[#allocation11 + $0x44] ss:$8 sps:$4 sm:$0xff]  }
 0x4a8   : > { %v1120_v34 = vpack.c.bf16 %v2725_v29, %v2724_v30  ;;  %v2775_v29 = vld [vmem:[#allocation11 + $0x34] ss:$8 sps:$4 sm:$0xff]   ;;  %v2773_v30 = vld [vmem:[#allocation11 + $0x30] ss:$8 sps:$4 sm:$0xff]  }
 0x4aa   : > { %2497 = vmatpush3.bf16.msra.mxu1 %v1120_v34  ;;  %v2779_v34 = vld [vmem:[#allocation11 + $0x50] ss:$8 sps:$4 sm:$0xff]  }
 0x4ab   : > { %2502 = vmatprep.subr.bf16.mxu1 %v3169_v0 }
 0x4ac   : > { %v2819_v36 = vpop.eup %2818 }
 0x4ad   : > { %2499 = vmatmul.mubr.msk.bf16.vlgmr.msra.gmra.mrb[28].mxu1 %vm1313_vm2, %v1360_v35  ;;  %v1357_v38 = vmul.f32 %v2819_v36, %v2811_v7  ;;  %v1568_v7 = vld [vmem:[%s3946_s26] sm:$0x1]  ;;  %v2784_v35 = vld [vmem:[#allocation11 + $0x64] ss:$8 sps:$4 sm:$0xff]   ;;  %v2782_v36 = vld [vmem:[#allocation11 + $0x60] ss:$8 sps:$4 sm:$0xff]  }
 0x4ae   : > { %2503 = vmatpush3.bf16.msra.mxu1 %v1121_v37  ;;  %2504 = vmatprep.mubr.msk.bf16.mxu1 %vm3170_vm0, %v3169_v0  ;;  %v1569_v8 = vunpack.c.l.bf16 %v1568_v7  ;;  %v2787_v37 = vld [vmem:[#allocation11 + $0x74] ss:$8 sps:$4 sm:$0xff]   ;;  %s3953_s26 = sld [smem:[#allocation42_spill]] }
 0x4af   : > { %v1361_v39 = vpack.c.bf16 %v1357_v38, %v1357_v38  ;;  %1808 = vmatprep.subr.bf16.mxu1 %v2766_v19  ;;  %v2785_v38 = vld [vmem:[#allocation11 + $0x70] ss:$8 sps:$4 sm:$0xff]  }
 0x4b0   : > { %v1573_v9 = vrot.slane %v1569_v8, %v3670_v23  ;;  %v1716_v8 = vsub.s32 2, %v3661_v20  ;;  %v1885_v20 = vld [vmem:[%s3950_s23] sm:$0x1] }
 0x4b5   : > { %2505 = vmatmul.mubr.msk.bf16.vlgmr.msra.gmra.mrb[32].mxu1 %vm1313_vm2, %v1361_v39  ;;  %v3174_v39 = vmov 0  }
 0x4b6   : > { %1809 = vmatpush1.bf16.msra.mxu1 %v2764_v17  ;;  %1840 = vmatprep.mubr.bf16.mxu1 %v3174_v39 }
 0x4b7   : > { %1810 = vmatprep.subr.bf16.mxu1 %v2769_v21 }
 0x4ba   : > { %1811 = vmatpush1.bf16.msra.mxu1 %v2767_v22 }
 0x4bb   : > { %1812 = vmatprep.subr.bf16.mxu1 %v2772_v24 }
 0x4be   : > { %1813 = vmatpush1.bf16.msra.mxu1 %v2770_v25 }
 0x4bf   : > { %1814 = vmatprep.subr.bf16.mxu1 %v2775_v29 }
 0x4c2   : > { %1815 = vmatpush1.bf16.msra.mxu1 %v2773_v30 }
 0x4c3   : > { %1816 = vmatprep.subr.bf16.mxu1 %v2778_v31 }
 0x4c6   : > { %1817 = vmatpush1.bf16.msra.mxu1 %v2776_v32 }
 0x4c7   : > { %1818 = vmatprep.subr.bf16.mxu1 %v2781_v33 }
 0x4ca   : > { %1819 = vmatpush1.bf16.msra.mxu1 %v2779_v34 }
 0x4cb   : > { %1820 = vmatprep.subr.bf16.mxu1 %v2784_v35 }
 0x4ce   : > { %1821 = vmatpush1.bf16.msra.mxu1 %v2782_v36 }
 0x4cf   : > { %1822 = vmatprep.subr.bf16.mxu1 %v2787_v37 }
 0x4d2   : > { %1823 = vmatpush1.bf16.msra.mxu1 %v2785_v38 }
 0x4fd   : > { %v1399_v40 = vpop.f32.mrb[20].mxu1 }
 0x4fe   : > { %v2488_v41 = vpop.f32.mrb[21].mxu1 }
 0x4ff   : > { %v1402_v42 = vpop.f32.mrb[22].mxu1  ;;  %v2789_v41 = vld [vmem:[#allocation13] sm:$0xff]  }
 0x500   : > { %v2489_v43 = vpop.f32.mrb[23].mxu1  ;;  %v2790_v42 = vld [vmem:[#allocation13 + $0x48] sm:$0xff]  }
 0x501   : > { %v2791_v43 = vld [vmem:[#allocation13 + $0x8] sm:$0xff]  }
 0x574   : > { %v1442_v50 = vpop.f32.mrb[24].mxu1 }
 0x575   : > { %1535 = vrot.lane.b32.xlu1 %v1442_v50, %s3173_s15  ;;  %v2494_v51 = vpop.f32.mrb[25].mxu1  ;;  %v2798_v50 = vld [vmem:[#allocation13 + $0x68] sm:$0xff]   ;;  %s3947_s15 = sld [smem:[#allocation35_spill]] }
 0x576   : > { %v1445_v53 = vpop.f32.mrb[26].mxu1  ;;  %v2799_v51 = vld [vmem:[#allocation13 + $0x28] sm:$0xff]  }
 0x577   : > { %v2495_v54 = vpop.f32.mrb[27].mxu1 }
 0x57b   : > { %v1664_v55 = vld [vmem:[%s3947_s15] sm:$0x1]  ;;  %s3026_s15 = sshll.u32 %s3175_s12, 4  ;;  %s3027_s15 = int_to_ptr.vmem [resolvable:$false] %s3026_s15 }
 0x580   : > { %v1485_v56 = vpop.f32.mrb[28].mxu1 }
 0x581   : > { %1539 = vrot.lane.b32.xlu0 %v1485_v56, %s3171_s8  ;;  %v2500_v57 = vpop.f32.mrb[29].mxu1  ;;  %v1666_v56 = vld [vmem:[%s3948_s10] sm:$0x1]  ;;  %s3951_s8 = sld [smem:[#allocation40_spill]]  ;;  %s2243_s10 = sshll.u32 %s703_s24, 2 }
 0x582   : > { %v1488_v58 = vpop.f32.mrb[30].mxu1  ;;  %v1665_v57 = vunpack.c.l.bf16 %v1664_v55  ;;  %s705_s11 = scalar_lea.vmem [#allocation14], %s2243_s10 }
 0x583   : > { %v2501_v59 = vpop.f32.mrb[31].mxu1  ;;  %v1667_v58 = vunpack.c.l.bf16 %v1666_v56  ;;  %s2071_s30 = sshll.u32 %s705_s11, 4  ;;  %s3796_s30 = int_to_ptr.vmem [resolvable:$true] %s2071_s30 }
 0x584   : > { %v1683_v59 = vrot.slane %v1665_v57, %v3670_v23  ;;  %p3029_p12 = scmp.lt.s32.totalorder %s3796_s30, %s3027_s15 }
 0x588   : > { %v1528_v60 = vpop.f32.mrb[32].mxu1 }
 0x589   : > { %1543 = vrot.lane.b32.xlu1 %v1528_v60, %s3172_s5  ;;  %v2506_v61 = vpop.f32.mrb[33].mxu1  ;;  %s3022_s5 = scalar_lea.vmem %s3796_s30, 64 }
 0x58a   : > { %v1531_v62 = vpop.f32.mrb[34].mxu1  ;;  %p3023_p13 = scmp.ne.s32.totalorder %s3796_s30, %s3022_s5 }
 0x58b   : > { %v2507_v63 = vpop.f32.mrb[35].mxu1  ;;  %v1688_v62 = vrot.slane %v1667_v58, %v3670_v23 }
 0x58c   : > { %p3024_p9 = pnand %p3023_p13, %p3954_p6 }
 0x58e   : > { %p3025_p11 = pneg %p3024_p9 }
 0x5e7   : > { %v1536_v1 = vpop.permute.xlu1 %1535 }
 0x5e8   : > { %v1546_v0 = vsel %vm1128_vm1, %v1399_v40, %v1536_v1  ;;  %v2788_v40 = vld [vmem:[#allocation13 + $0x40] sm:$0xff]  }
 0x5e9   : > { %2378 = vmatprep.subr.bf16.mxu0 %v2788_v40 }
 0x5f3   : > { %v1540_v2 = vpop.permute.xlu0 %1539 }
 0x5f4   : > { %v1548_v3 = vsel %vm1547_vm3, %v1546_v0, %v1540_v2  ;;  %v2800_v0 = vld [vmem:[#allocation13 + $0x70] sm:$0xff]  }
 0x5fb   : > { %v1544_v4 = vpop.permute.xlu1 %1543 }
 0x5fc   : > { %v1550_v5 = vsel %vm1549_vm4, %v1548_v3, %v1544_v4  ;;  %v2801_v3 = vld [vmem:[#allocation13 + $0x30] sm:$0xff]   ;;  %v2802_v4 = vld [vmem:[#allocation13 + $0x78] sm:$0xff]  }
 0x5fd   : > { %v1551_v6 = vpack.c.bf16 %v1550_v5, %v1550_v5  ;;  %v2803_v5 = vld [vmem:[#allocation13 + $0x38] sm:$0xff]  }
 0x5ff   : > { %2525 = vmatmul.mubr.bf16.vlgmr.msra.gmra.mrb[8].mxu0 %v1551_v6  ;;  %v1707_v6 = vld [vmem:[%s3949_s3] sm:$0x3]  ;;  %s2322_s3 = sshll.u32 %s2067_s1, 6 }
 0x600   : > { %2379 = vmatpush3.bf16.msra.mxu0 %v2789_v41  ;;  %v1708_v7 = vunpack.c.l.bf16 %v1707_v6  ;;  %v2028_v41 = vld [vmem:[%s3951_s8] sm:$0x1]  ;;  %s3794_s8 = scalar_lea.hbm %s3953_s26, %s2322_s3 }
 0x601   : > { %2380 = vmatprep.subr.bf16.mxu0 %v2790_v42  ;;  %v2030_v42 = vld [vmem:[%s3952_s25] sm:$0x1]  ;;  %s3028_s25 = scalar_lea.vmem %s3027_s15, 128 }
 0x602   : > { %p3030_p1 = scmp.lt.s32.totalorder %s3028_s25, %s3022_s5 }
 0x604   : > { %2381 = vmatpush3.bf16.msra.mxu0 %v2791_v43  ;;  %v2029_v43 = vunpack.c.l.bf16 %v2028_v41  ;;  %p3031_p0 = por %p3030_p1, %p3029_p12 }
 0x605   : > { %2382 = vmatprep.subr.bf16.mxu0 %v2792_v44  ;;  %v2031_v44 = vunpack.c.l.bf16 %v2030_v42 }
 0x606   : > { %p3032_p7 = pnand %p3031_p0, %p3025_p11 }
 0x608   : > { %2383 = vmatpush3.bf16.msra.mxu0 %v2793_v45  ;;  %v2046_v45 = vrot.slane %v2029_v43, %v3670_v23 }
 0x609   : > { %2384 = vmatprep.subr.bf16.mxu0 %v2794_v46 }
 0x60c   : > { %2385 = vmatpush3.bf16.msra.mxu0 %v2795_v47 }
 0x60d   : > { %2386 = vmatprep.subr.bf16.mxu0 %v2796_v48  ;;  %v2051_v48 = vrot.slane %v2031_v44, %v3670_v23 }
 0x610   : > { %2387 = vmatpush3.bf16.msra.mxu0 %v2797_v49 }
 0x611   : > { %2388 = vmatprep.subr.bf16.mxu0 %v2798_v50 }
 0x614   : > { %2389 = vmatpush3.bf16.msra.mxu0 %v2799_v51 }
 0x615   : > { %2390 = vmatprep.subr.bf16.mxu0 %v2800_v0 }
 0x618   : > { %2391 = vmatpush3.bf16.msra.mxu0 %v2801_v3 }
 0x619   : > { %2392 = vmatprep.subr.bf16.mxu0 %v2802_v4 }
 0x61c   : > { %2393 = vmatpush3.bf16.msra.mxu0 %v2803_v5 }
 0x6d2   : > { %v1656_v11 = vpop.f32.mrb[8].mxu0 }
 0x6d3   : > { %v1657_v12 = vadd.f32 %v1656_v11, %v1573_v9  ;;  %v2526_v13 = vpop.f32.mrb[9].mxu0  ;;  %v1713_v9 = vrot.slane %v1708_v7, %v3670_v23 }
 0x6d4   : > { %v1659_v14 = vpop.f32.mrb[10].mxu0 }
 0x6d5   : > { %v2527_v15 = vpop.f32.mrb[11].mxu0  ;;  %v1663_v16 = vadd.f32 %v1662_v10, %v1657_v12  ;;  %v1717_v10 = vrot.slane %v1708_v7, %v1716_v8  ;;  %v1723_v11 = vrot.slane %v1713_v9, %v3670_v23 }
 0x6d7   : > { %1668 = vadd.xlane.f32.xlu0 %v1663_v16  ;;  %v1727_v12 = vrot.slane %v1717_v10, %v3670_v23 }
 0x764   : > { %v1669_v18 = vpop.xlane.xlu0 %1668 }
 0x765   : > { %v1671_v26 = vmul.f32 0.0078125, %v1669_v18  ;;  %v1886_v18 = vunpack.c.l.bf16 %v1885_v20 }
 0x767   : > { %v1672_v27 = vsub.f32 %v1663_v16, %v1671_v26 }
 0x769   : > { %v1673_v28 = vmul.f32 %v1672_v27, %v1672_v27 }
 0x76b   : > { %1674 = vadd.xlane.f32.xlu1 %v1673_v28 }
 0x7f8   : > { %v1675_v52 = vpop.xlane.xlu1 %1674 }
 0x7f9   : > { %v1676_v53 = vmul.f32 0.0078125, %v1675_v52 }
 0x7fb   : > { %v1677_v54 = vadd.f32 1e-05, %v1676_v53 }
 0x7fd   : > { %2820 = vrsqrt.f32 %v1677_v54 }
 0x807   : > { %v2821_v60 = vpop.eup %2820 }
 0x808   : > { %v1679_v61 = vmul.f32 %v2821_v60, %v1672_v27  ;;  %v1890_v27 = vrot.slane %v1886_v18, %v3670_v23 }
 0x80a   : > { %v1684_v63 = vmul.f32 %v1683_v59, %v1679_v61 }
 0x80c   : > { %v1689_v1 = vadd.f32 %v1688_v62, %v1684_v63 }
 0x80e   : > { %v1690_v2 = vpack.c.bf16 %v1689_v1, %v1689_v1 }
 0x810   : > { %1841 = vmatmul.mubr.bf16.vlgmr.msra.gmra.mrb[36].mxu1 %v1690_v2 }
 0x8e3   : > { %v1842_v13 = vpop.f32.mrb[36].mxu1 }
 0x8e4   : > { %v1843_v14 = vadd.f32 %v1842_v13, %v1723_v11  ;;  %v1844_v15 = vpop.f32.mrb[37].mxu1 }
 0x8e5   : > { %v1845_v16 = vadd.f32 %v1844_v15, %v1727_v12  ;;  %v1846_v17 = vpop.f32.mrb[38].mxu1 }
 0x8e6   : > { %v1849_v19 = vmax.f32 %v1843_v14, 0.0  ;;  %v1847_v21 = vpop.f32.mrb[39].mxu1 }
 0x8e7   : > { %v1850_v22 = vmax.f32 %v1845_v16, 0.0 }
 0x8e8   : > { %v1851_v25 = vpack.c.bf16 %v1849_v19, %v1849_v19 }
 0x8e9   : > { %v1852_v24 = vpack.c.bf16 %v1850_v22, %v1850_v22 }
 0x8eb   : > { %2019 = vmatprep.mubr.bf16.mxu0 %v1852_v24 }
 0x8ec   : > { %2020 = vmatmul.mubr.bf16.vlgmr.msra.gmra.mrb[12].mxu0 %v1851_v25 }
 0x9bf   : > { %v2394_v26 = vpop.f32.mrb[12].mxu0 }
 0x9c0   : > { %v2395_v28 = vpop.f32.mrb[13].mxu0 }
 0x9c1   : > { %v2396_v29 = vadd.f32 %v2395_v28, %v2394_v26  ;;  %v2397_v30 = vpop.f32.mrb[14].mxu0 }
 0x9c2   : > { %v2398_v31 = vpop.f32.mrb[15].mxu0 }
 0x9c3   : > { %v2022_v32 = vadd.f32 %v2396_v29, %v1890_v27 }
 0x9c5   : > { %v2027_v33 = vadd.f32 %v2022_v32, %v1689_v1 }
 0x9c7   : > { %2032 = vadd.xlane.f32.xlu0 %v2027_v33 }
 0xa54   : > { %v2033_v34 = vpop.xlane.xlu0 %2032 }
 0xa55   : > { %v2034_v35 = vmul.f32 0.0078125, %v2033_v34 }
 0xa57   : > { %v2035_v36 = vsub.f32 %v2027_v33, %v2034_v35 }
 0xa59   : > { %v2036_v37 = vmul.f32 %v2035_v36, %v2035_v36 }
 0xa5b   : > { %2037 = vadd.xlane.f32.xlu0 %v2036_v37 }
 0xae8   : > { %v2038_v38 = vpop.xlane.xlu0 %2037 }
 0xae9   : > { %v2039_v39 = vmul.f32 0.0078125, %v2038_v38 }
 0xaeb   : > { %v2040_v40 = vadd.f32 1e-05, %v2039_v39 }
 0xaed   : > { %2822 = vrsqrt.f32 %v2040_v40 }
 0xaf7   : > { %v2823_v46 = vpop.eup %2822 }
 0xaf8   : > { %v2042_v47 = vmul.f32 %v2823_v46, %v2035_v36 }
 0xafa   : > { %v2047_v49 = vmul.f32 %v2046_v45, %v2042_v47 }
 0xafc   : > { %v2052_v50 = vadd.f32 %v2051_v48, %v2047_v49 }
 0xafe   : > { %v2053_v51 = vpack.c.bf16 %v2052_v50, %v2052_v50 }
 0xb00   : > { %2054 = vst [vmem:[%s705_s11] sm:$0xf] %v2053_v51 }
 0xb01   : > { %3035 = shalt.err (!%p3032_p7)
}
 0xb02   : > { %s3036_s24 = scalar_lea.hbm %s3794_s8, 64  ;;  %s3040_s1 = scalar_lea.hbm %s3953_s26, 256 }
 0xb03   : > { %p3037_p2 = scmp.ne.s32.totalorder %s3794_s8, %s3036_s24  ;;  %p3041_p3 = scmp.lt.u32.totalorder %s3794_s8, %s3953_s26 }
 0xb04   : > { %p3042_p8 = scmp.lt.u32.totalorder %s3040_s1, %s3036_s24  ;;  %p3044_p13 = scmp.lt.u32.totalorder %s3036_s24, %s3794_s8 }
 0xb05   : > { %p3038_p4 = pnand %p3037_p2, %p3954_p6 }
 0xb06   : > { %p3043_p5 = por %p3042_p8, %p3041_p3 }
 0xb07   : > { %p3039_p10 = pneg %p3038_p4 }
 0xb08   : > { %p3045_p9 = por %p3044_p13, %p3043_p5 }
 0xb0a   : > { %p3046_p11 = pnand %p3045_p9, %p3039_p10 }
 0xb0c   : > { %3049 = shalt.err (!%p3046_p11)
}
 0xb0d   : > { %2554 = dma.vmem_to_hbm [thread:$0]  (%p3954_p6), %s3796_s30, 64, %s3794_s8, %s2056_s20  }
 0xb0e PF: > { %s3955_s23 = sld [smem:[#allocation20_spill]]  ;;  %p2596_p12 = scmp.ge.s32.totalorder %s3156_s2, 2 }
 0xb0f   : > { %p3956_p1 = scmp.ne.s32.totalorder %s3933_s4, 0 }
 0xb11   : > { %p2580_p0 = pnand %p2596_p12, %p3956_p1 }
 0xb14   : > { %s2083_s6 = sand.u32 1, %s3955_s23  }
 0xb15   : > { %s2084_s5 = scalar_lea.sflag [#allocation4], %s2083_s6 }
 0xb16   : > { %3111 = dma.done.wait (!%p2580_p0), %s2084_s5, 64  }
 0xb17   : > { %3113 = vsyncadd (!%p2580_p0), %s2084_s5, 4294967232  ;;  %s37_s2 = sadd.s32 1, %s3156_s2   ;;  %s3957_s13 = smov %s3549_s27 }
 0xb18   : > { %p34_p7 = scmp.ge.s32.totalorder %s37_s2, 6   ;;  %s3958_s27 = smov %s3120_s28 }
 0xb19   : > { %s3959_s28 = smov %s3124_s29  ;;  %s3960_s29 = smov %s3957_s13 }
 0xb1a   : > { %s3961_s30 = smov %s3132_s0  ;;  %s3962_s0 = smov %s3136_s19 }
 0xb1b   : > { %s3963_s19 = smov %s3546_s17  ;;  %s3964_s1 = smov %s3148_s21 }
 0xb1c   : > { %s3965_s20 = smov %s3152_s22  ;;  %s3966_s21 = smov %s3969_s16 }
 0xb1d   : > { %s3967_s22 = smov %s3973_s18  ;;  %36 = sbr.rel (!%p34_p7) target bundleno = 31 (0x1f), region = 165 }
 0xb24   :  { %2089 = vsyncpa [#allocation3], 1 }
 0xb25   :  { %2091 = vsyncpa [#allocation3 + $0x1], 1 }
 0xb26   :  { %2092 = vsyncpa [#allocation6], 1 }
 0xb27   :  { %2093 = vsyncpa [#allocation9], 1 }
 0xb28   :  { %2094 = vsyncpa [#allocation12], 1 }
 0xb29   :  { %2095 = vsyncpa [#allocation4], 1 }
 0xb2a   :  { %2097 = vsyncpa [#allocation4 + $0x1], 1 }

</bundles_post_ra>
